<compile_context>
chip_gen: v7x
topology: tpu7x:2x2x1
jax: 0.10.0
libtpu: 0.0.40
codegen_flags: <defaults>
</compile_context>

<pallas_src>
import functools

import jax
import jax.numpy as jnp
import numpy as np
from jax import lax
from jax.experimental import pallas as pl
from jax.experimental.pallas import tpu as pltpu

NEG_SLOPE = 0.125   # LeakyReLU(negative_slope=0.125)
LANE = 128          # TPU lane width


def _round_up(x, m):
    return (x + m - 1) // m * m


def _leaky_relu(x):
    return jnp.where(x >= 0, x, NEG_SLOPE * x)


def _default_tile_h(h, cap=32):
    """Largest divisor of h that is <= cap (tune per chip / VMEM budget)."""
    best = 1
    for t in range(1, min(h, cap) + 1):
        if h % t == 0:
            best = t
    return best


def _fused_unetconv2_kernel(x_hbm, w1_ref, b1_ref, w2_ref, b2_ref, o_ref,
                            xbuf, y1buf, in_sem):
    """One (batch, H-tile) grid step of the fused (conv3x3+LReLU) x 2 block.

    x_hbm : (N, H+4, W+4, Cin_p)   spatially pre-padded input, left in HBM
    w1_ref: (3, 3, Cin_p, Cm_p)    conv1 weights (VMEM resident)
    b1_ref: (1, Cm_p)
    w2_ref: (3, 3, Cm_p, Cm_p)     conv2 weights (VMEM resident)
    b2_ref: (1, Cm_p)
    o_ref : (TH, W, Cm_p)          output tile (batch dim squeezed by BlockSpec)
    xbuf  : (2, TH+4, W+4, Cin_p)  double-buffered input halo window (VMEM)
    y1buf : (TH+2, W+2, Cm_p)      conv1 output incl. conv2's zero halo (VMEM)
    in_sem: (2,) DMA semaphores
    """
    th, w_out, cout_p = o_ref.shape
    rows_in = xbuf.shape[1]          # TH + 4
    rows_mid = th + 2                # conv1-output rows this tile needs
    w_mid = w_out + 2                # conv1-output cols incl. conv2 halo
    cin_p = xbuf.shape[-1]
    cmid_p = y1buf.shape[-1]

    n = pl.program_id(0)
    i = pl.program_id(1)
    num_i = pl.num_programs(1)
    h_total = num_i * th
    slot = i % 2

    def in_copy(tile_idx, slot_idx):
        start = pl.multiple_of(tile_idx * th, th)
        return pltpu.make_async_copy(
            x_hbm.at[n, pl.ds(start, rows_in)],   # (TH+4, W+4, Cin_p) window
            xbuf.at[slot_idx],
            in_sem.at[slot_idx])

    # Prime the DMA pipeline at the start of each image's row sweep.
    @pl.when(i == 0)
    def _():
        in_copy(0, 0).start()

    # Wait for this tile's input window, then prefetch the next one so the
    # HBM->VMEM copy overlaps this tile's compute.
    in_copy(i, slot).wait()

    @pl.when(i + 1 < num_i)
    def _():
        in_copy(i + 1, 1 - slot).start()

    xw = xbuf[slot]                  # (TH+4, W+4, Cin_p)

    # ---- conv1 (3x3, pad 1) + bias + LeakyReLU -> y1buf --------------------
    # y1buf row t / col cc hold conv1-output row (i*TH - 1 + t), col (cc - 1);
    # positions outside conv1's valid output are forced to zero (that is the
    # zero padding conv2 expects).
    acc1 = None
    for kh in range(3):
        for kw in range(3):
            patch = xw[kh:kh + rows_mid, kw:kw + w_mid, :]
            contrib = jnp.dot(patch.reshape(rows_mid * w_mid, cin_p),
                              w1_ref[kh, kw],
                              preferred_element_type=jnp.float32)
            acc1 = contrib if acc1 is None else acc1 + contrib
    acc1 = acc1 + b1_ref[0].astype(jnp.float32)
    y1 = _leaky_relu(acc1).reshape(rows_mid, w_mid, cmid_p)

    row_g = i * th - 1 + lax.broadcasted_iota(jnp.int32, (rows_mid, w_mid, 1), 0)
    col_g = lax.broadcasted_iota(jnp.int32, (rows_mid, w_mid, 1), 1) - 1
    valid = ((row_g >= 0) & (row_g < h_total) &
             (col_g >= 0) & (col_g < w_out))
    y1buf[...] = jnp.where(valid, y1, 0.0).astype(y1buf.dtype)

    # ---- conv2 (3x3, pad 1) + bias + LeakyReLU -> o_ref --------------------
    acc2 = None
    for kh in range(3):
        for kw in range(3):
            patch = y1buf[kh:kh + th, kw:kw + w_out, :]
            contrib = jnp.dot(patch.reshape(th * w_out, cmid_p),
                              w2_ref[kh, kw],
                              preferred_element_type=jnp.float32)
            acc2 = contrib if acc2 is None else acc2 + contrib
    acc2 = acc2 + b2_ref[0].astype(jnp.float32)
    o_ref[...] = _leaky_relu(acc2).reshape(th, w_out, cout_p).astype(o_ref.dtype)


def unet_conv2_forward(x_nchw, params, *, tile_h=None,
                       compute_dtype=jnp.float32):
    """unetConv2.forward (is_batchnorm=False).  Input/output NCHW like PyTorch."""
    w1, b1, w2, b2 = params           # w: (3, 3, Cin, Cout) HWIO, b: (Cout,)
    n, cin, h, w = x_nchw.shape
    cout = w1.shape[-1]
    assert w2.shape[-2] == cout and w2.shape[-1] == cout

    th = tile_h if tile_h is not None else _default_tile_h(h)
    if h % th != 0:
        raise ValueError(f"tile_h={th} must divide H={h}")

    cin_p = _round_up(cin, LANE)
    cout_p = _round_up(cout, LANE)

    # NCHW -> NHWC, spatial zero-pad (+/-2 rows & cols: conv pad + tile halo),
    # channel zero-pad to a lane multiple (extra channels stay exactly zero
    # through both conv+LeakyReLU stages, so they are sliced off at the end).
    x = jnp.transpose(x_nchw, (0, 2, 3, 1)).astype(compute_dtype)
    x_pad = jnp.pad(x, ((0, 0), (2, 2), (2, 2), (0, cin_p - cin)))

    w1p = jnp.pad(w1, ((0, 0), (0, 0), (0, cin_p - cin),
                       (0, cout_p - cout))).astype(compute_dtype)
    w2p = jnp.pad(w2, ((0, 0), (0, 0), (0, cout_p - cout),
                       (0, cout_p - cout))).astype(compute_dtype)
    b1p = jnp.pad(b1, (0, cout_p - cout)).astype(jnp.float32).reshape(1, cout_p)
    b2p = jnp.pad(b2, (0, cout_p - cout)).astype(jnp.float32).reshape(1, cout_p)

    grid = (n, h // th)
    itemsize = jnp.dtype(compute_dtype).itemsize
    flops = 2 * 9 * n * h * w * (cin_p * cout_p + cout_p * cout_p)
    bytes_accessed = (x_pad.size * itemsize
                      + n * h * w * cout_p * 4
                      + (w1p.size + w2p.size) * itemsize
                      + (b1p.size + b2p.size) * 4)

    out = pl.pallas_call(
        _fused_unetconv2_kernel,
        out_shape=jax.ShapeDtypeStruct((n, h, w, cout_p), jnp.float32),
        grid_spec=pltpu.PrefetchScalarGridSpec(
            num_scalar_prefetch=0,
            grid=grid,
            in_specs=[
                pl.BlockSpec(memory_space=pl.ANY),                       # x_pad (HBM)
                pl.BlockSpec((3, 3, cin_p, cout_p), lambda bn, bi: (0, 0, 0, 0)),
                pl.BlockSpec((1, cout_p), lambda bn, bi: (0, 0)),
                pl.BlockSpec((3, 3, cout_p, cout_p), lambda bn, bi: (0, 0, 0, 0)),
                pl.BlockSpec((1, cout_p), lambda bn, bi: (0, 0)),
            ],
            out_specs=pl.BlockSpec((None, th, w, cout_p),
                                   lambda bn, bi: (bn, bi, 0, 0)),
            scratch_shapes=[
                pltpu.VMEM((2, th + 4, w + 4, cin_p), compute_dtype),  # input halo
                pltpu.VMEM((th + 2, w + 2, cout_p), compute_dtype),    # conv1 out
                pltpu.SemaphoreType.DMA((2,)),
            ]),
        compiler_params=pltpu.CompilerParams(
            dimension_semantics=("parallel", "arbitrary")),
        cost_estimate=pl.CostEstimate(flops=flops, transcendentals=0,
                                      bytes_accessed=bytes_accessed),
    )(x_pad, w1p, b1p, w2p, b2p)

    out = out[..., :cout]                        # drop channel padding
    return jnp.transpose(out, (0, 3, 1, 2)).astype(x_nchw.dtype)


def init_params(key, in_size, out_size):
    """Deterministic synthetic parameters.

    PyTorch Conv2d weight is (Cout, Cin, kh, kw); stored here as the equivalent
    (kh, kw, Cin, Cout) tensor for the channels-last kernel.
    """
    k1, k2, k3, k4 = jax.random.split(key, 4)
    w1 = jax.random.normal(k1, (3, 3, in_size, out_size), jnp.float32) * 0.1
    b1 = jax.random.normal(k2, (out_size,), jnp.float32) * 0.01
    w2 = jax.random.normal(k3, (3, 3, out_size, out_size), jnp.float32) * 0.1
    b2 = jax.random.normal(k4, (out_size,), jnp.float32) * 0.01
    return (w1, b1, w2, b2)


def _ref_forward(x_nchw, params):
    """Pure-JAX reference (lax conv, f32) for correctness checking."""
    w1, b1, w2, b2 = params
    x = jnp.transpose(x_nchw, (0, 2, 3, 1))

    def conv(x, wt, b):
        y = lax.conv_general_dilated(
            x, wt, window_strides=(1, 1), padding=((1, 1), (1, 1)),
            dimension_numbers=("NHWC", "HWIO", "NHWC"),
            precision=lax.Precision.HIGHEST)
        y = y + b
        return jnp.where(y >= 0, y, NEG_SLOPE * y)

    y = conv(x, w1, b1)
    y = conv(y, w2, b2)
    return jnp.transpose(y, (0, 3, 1, 2))


if __name__ == "__main__":
    key = jax.random.PRNGKey(0)
    kx, kp = jax.random.split(key)

    # Small shapes consistent with the module: batch=2, in=4, out=8, 16x16.
    N, Cin, Cout, H, W = 2, 4, 8, 16, 16
    x = jax.random.normal(kx, (N, Cin, H, W), jnp.float32)   # NCHW, like PyTorch
    params = init_params(kp, Cin, Cout)

    # tile_h=4 -> grid (2 batches, 4 H-tiles): exercises first / interior /
    # last halo handling of the fused kernel.
    fwd = jax.jit(functools.partial(unet_conv2_forward, tile_h=4))
    out = jax.block_until_ready(fwd(x, params))
    assert out.shape == (N, Cout, H, W)

    ref = jax.block_until_ready(_ref_forward(x, params))
    assert np.allclose(np.asarray(out), np.asarray(ref), atol=1e-4, rtol=1e-4), (
        float(np.max(np.abs(np.asarray(out) - np.asarray(ref)))))

    print("KERNEL_OK")
</pallas_src>

<mosaic_0001>
module attributes {stable_mosaic.version = 11 : i64} {
  func.func @_fused_unetconv2_kernel(%arg0: i32, %arg1: i32, %arg2: memref<2x20x20x128xf32, #tpu.memory_space<any>>, %arg3: memref<3x3x128x128xf32, #tpu.memory_space<vmem>>, %arg4: memref<1x128xf32, #tpu.memory_space<vmem>>, %arg5: memref<3x3x128x128xf32, #tpu.memory_space<vmem>>, %arg6: memref<1x128xf32, #tpu.memory_space<vmem>>, %arg7: memref<1x4x16x128xf32, #tpu.memory_space<vmem>>, %arg8: memref<2x8x20x128xf32, #tpu.memory_space<vmem>>, %arg9: memref<6x18x128xf32, #tpu.memory_space<vmem>>, %arg10: memref<2x!tpu.dma_semaphore, #tpu.memory_space<semaphore_mem>>) attributes {dimension_semantics = [#tpu.dimension_semantics<parallel>, #tpu.dimension_semantics<arbitrary>], iteration_bounds = array<i64: 2, 4>, scalar_prefetch = 0 : i64, scratch_operands = 3 : i64, tpu.core_type = #tpu.core_type<tc>, window_params = [{}, {pipeline_mode = #tpu.pipeline_mode<synchronous>, transform_indices = @transform_1, window_bounds = array<i64: 3, 3, 128, 128>}, {pipeline_mode = #tpu.pipeline_mode<synchronous>, transform_indices = @transform_2, window_bounds = array<i64: 1, 128>}, {pipeline_mode = #tpu.pipeline_mode<synchronous>, transform_indices = @transform_3, window_bounds = array<i64: 3, 3, 128, 128>}, {pipeline_mode = #tpu.pipeline_mode<synchronous>, transform_indices = @transform_4, window_bounds = array<i64: 1, 128>}, {transform_indices = @transform_5, window_bounds = array<i64: 1, 4, 16, 128>}]} {
    %c2_i32 = arith.constant 2 : i32
    %c0_i32 = arith.constant 0 : i32
    %0 = arith.cmpi eq, %c2_i32, %c0_i32 : i32
    %c1_i32 = arith.constant 1 : i32
    %1 = arith.select %0, %c1_i32, %c2_i32 : i32
    %2 = arith.remsi %arg1, %1 : i32
    %c0_i32_0 = arith.constant 0 : i32
    %3 = arith.cmpi ne, %2, %c0_i32_0 : i32
    %c0_i32_1 = arith.constant 0 : i32
    %4 = arith.cmpi slt, %2, %c0_i32_1 : i32
    %c0_i32_2 = arith.constant 0 : i32
    %5 = arith.cmpi slt, %1, %c0_i32_2 : i32
    %6 = arith.xori %4, %5 : i1
    %7 = arith.andi %6, %3 : i1
    %8 = arith.addi %2, %1 : i32
    %9 = arith.select %7, %8, %2 : i32
    %c0_i32_3 = arith.constant 0 : i32
    %10 = arith.cmpi eq, %arg1, %c0_i32_3 : i32
    %11 = arith.extui %10 : i1 to i32
    %c0_i32_4 = arith.constant 0 : i32
    %12 = arith.cmpi ne, %11, %c0_i32_4 : i32
    scf.if %12 {
      %c0_i32_151 = arith.constant 0 : i32
      %183 = tpu.assume_multiple %c0_i32_151, 4 : i32
      %c0_i32_152 = arith.constant 0 : i32
      %c0_i32_153 = arith.constant 0 : i32
      %c0_i32_154 = arith.constant 0 : i32
      %c0_i32_155 = arith.constant 0 : i32
      %184 = tpu.memref_slice %arg2[%arg0, %183, %c0_i32_154, %c0_i32_155] : memref<2x20x20x128xf32, #tpu.memory_space<any>> -> memref<1x8x20x128xf32, #tpu.memory_space<any>>
      %185 = tpu.memref_squeeze %184 : memref<1x8x20x128xf32, #tpu.memory_space<any>> -> memref<8x20x128xf32, #tpu.memory_space<any>>
      %c0_i32_156 = arith.constant 0 : i32
      %c0_i32_157 = arith.constant 0 : i32
      %c0_i32_158 = arith.constant 0 : i32
      %186 = tpu.memref_slice %arg8[%c0_i32_152, %c0_i32_156, %c0_i32_157, %c0_i32_158] : memref<2x8x20x128xf32, #tpu.memory_space<vmem>> -> memref<1x8x20x128xf32, #tpu.memory_space<vmem>>
      %187 = tpu.memref_squeeze %186 : memref<1x8x20x128xf32, #tpu.memory_space<vmem>> -> memref<8x20x128xf32, #tpu.memory_space<vmem>>
      %188 = tpu.memref_slice %arg10[%c0_i32_153] : memref<2x!tpu.dma_semaphore, #tpu.memory_space<semaphore_mem>> -> memref<1x!tpu.dma_semaphore, #tpu.memory_space<semaphore_mem>>
      %189 = tpu.memref_squeeze %188 : memref<1x!tpu.dma_semaphore, #tpu.memory_space<semaphore_mem>> -> memref<!tpu.dma_semaphore, #tpu.memory_space<semaphore_mem>>
      tpu.enqueue_dma source(%185 : memref<8x20x128xf32, #tpu.memory_space<any>>) target(%187 : memref<8x20x128xf32, #tpu.memory_space<vmem>>) target_semaphore(%189 : memref<!tpu.dma_semaphore, #tpu.memory_space<semaphore_mem>>)
    } else {
    }
    %c4_i32 = arith.constant 4 : i32
    %13 = arith.muli %arg1, %c4_i32 : i32
    %14 = tpu.assume_multiple %13, 4 : i32
    %c0_i32_5 = arith.constant 0 : i32
    %c0_i32_6 = arith.constant 0 : i32
    %15 = tpu.memref_slice %arg2[%arg0, %14, %c0_i32_5, %c0_i32_6] : memref<2x20x20x128xf32, #tpu.memory_space<any>> -> memref<1x8x20x128xf32, #tpu.memory_space<any>>
    %16 = tpu.memref_squeeze %15 : memref<1x8x20x128xf32, #tpu.memory_space<any>> -> memref<8x20x128xf32, #tpu.memory_space<any>>
    %c0_i32_7 = arith.constant 0 : i32
    %c0_i32_8 = arith.constant 0 : i32
    %c0_i32_9 = arith.constant 0 : i32
    %17 = tpu.memref_slice %arg8[%9, %c0_i32_7, %c0_i32_8, %c0_i32_9] : memref<2x8x20x128xf32, #tpu.memory_space<vmem>> -> memref<1x8x20x128xf32, #tpu.memory_space<vmem>>
    %18 = tpu.memref_squeeze %17 : memref<1x8x20x128xf32, #tpu.memory_space<vmem>> -> memref<8x20x128xf32, #tpu.memory_space<vmem>>
    %19 = tpu.memref_slice %arg10[%9] : memref<2x!tpu.dma_semaphore, #tpu.memory_space<semaphore_mem>> -> memref<1x!tpu.dma_semaphore, #tpu.memory_space<semaphore_mem>>
    %20 = tpu.memref_squeeze %19 : memref<1x!tpu.dma_semaphore, #tpu.memory_space<semaphore_mem>> -> memref<!tpu.dma_semaphore, #tpu.memory_space<semaphore_mem>>
    tpu.wait_dma2 semaphore(%20 : memref<!tpu.dma_semaphore, #tpu.memory_space<semaphore_mem>>) src(%16 : memref<8x20x128xf32, #tpu.memory_space<any>>) dst(%18 : memref<8x20x128xf32, #tpu.memory_space<vmem>>)
    %c1_i32_10 = arith.constant 1 : i32
    %21 = arith.addi %arg1, %c1_i32_10 : i32
    %c4_i32_11 = arith.constant 4 : i32
    %22 = arith.cmpi slt, %21, %c4_i32_11 : i32
    %23 = arith.extui %22 : i1 to i32
    %c0_i32_12 = arith.constant 0 : i32
    %24 = arith.cmpi ne, %23, %c0_i32_12 : i32
    scf.if %24 {
      %c1_i32_151 = arith.constant 1 : i32
      %183 = arith.addi %arg1, %c1_i32_151 : i32
      %c1_i32_152 = arith.constant 1 : i32
      %184 = arith.subi %c1_i32_152, %9 : i32
      %c4_i32_153 = arith.constant 4 : i32
      %185 = arith.muli %183, %c4_i32_153 : i32
      %186 = tpu.assume_multiple %185, 4 : i32
      %c0_i32_154 = arith.constant 0 : i32
      %c0_i32_155 = arith.constant 0 : i32
      %187 = tpu.memref_slice %arg2[%arg0, %186, %c0_i32_154, %c0_i32_155] : memref<2x20x20x128xf32, #tpu.memory_space<any>> -> memref<1x8x20x128xf32, #tpu.memory_space<any>>
      %188 = tpu.memref_squeeze %187 : memref<1x8x20x128xf32, #tpu.memory_space<any>> -> memref<8x20x128xf32, #tpu.memory_space<any>>
      %c0_i32_156 = arith.constant 0 : i32
      %c0_i32_157 = arith.constant 0 : i32
      %c0_i32_158 = arith.constant 0 : i32
      %189 = tpu.memref_slice %arg8[%184, %c0_i32_156, %c0_i32_157, %c0_i32_158] : memref<2x8x20x128xf32, #tpu.memory_space<vmem>> -> memref<1x8x20x128xf32, #tpu.memory_space<vmem>>
      %190 = tpu.memref_squeeze %189 : memref<1x8x20x128xf32, #tpu.memory_space<vmem>> -> memref<8x20x128xf32, #tpu.memory_space<vmem>>
      %191 = tpu.memref_slice %arg10[%184] : memref<2x!tpu.dma_semaphore, #tpu.memory_space<semaphore_mem>> -> memref<1x!tpu.dma_semaphore, #tpu.memory_space<semaphore_mem>>
      %192 = tpu.memref_squeeze %191 : memref<1x!tpu.dma_semaphore, #tpu.memory_space<semaphore_mem>> -> memref<!tpu.dma_semaphore, #tpu.memory_space<semaphore_mem>>
      tpu.enqueue_dma source(%188 : memref<8x20x128xf32, #tpu.memory_space<any>>) target(%190 : memref<8x20x128xf32, #tpu.memory_space<vmem>>) target_semaphore(%192 : memref<!tpu.dma_semaphore, #tpu.memory_space<semaphore_mem>>)
    } else {
    }
    %25 = arith.index_cast %9 : i32 to index
    %c0 = arith.constant 0 : index
    %c0_13 = arith.constant 0 : index
    %c0_14 = arith.constant 0 : index
    %26 = vector.load %arg8[%25, %c0, %c0_13, %c0_14] : memref<2x8x20x128xf32, #tpu.memory_space<vmem>>, vector<1x8x20x128xf32>
    %27 = vector.shape_cast %26 : vector<1x8x20x128xf32> to vector<8x20x128xf32>
    %28 = vector.extract_strided_slice %27 {offsets = [0, 0, 0], sizes = [6, 18, 128], strides = [1, 1, 1]} : vector<8x20x128xf32> to vector<6x18x128xf32>
    %29 = vector.shape_cast %28 : vector<6x18x128xf32> to vector<108x128xf32>
    %c0_15 = arith.constant 0 : index
    %c0_16 = arith.constant 0 : index
    %c0_17 = arith.constant 0 : index
    %c0_18 = arith.constant 0 : index
    %30 = vector.load %arg3[%c0_15, %c0_16, %c0_17, %c0_18] : memref<3x3x128x128xf32, #tpu.memory_space<vmem>>, vector<1x1x128x128xf32>
    %31 = vector.shape_cast %30 : vector<1x1x128x128xf32> to vector<128x128xf32>
    %cst = arith.constant dense<0.000000e+00> : vector<108x128xf32>
    %32 = tpu.matmul %29, %31, %cst {dimension_numbers = #tpu.dot_dimension_numbers<[1], [0], [0], [1], [0, 0, 1, 1], [], []>} : vector<108x128xf32>, vector<128x128xf32>, vector<108x128xf32> -> vector<108x128xf32>
    %33 = vector.extract_strided_slice %27 {offsets = [0, 1, 0], sizes = [6, 18, 128], strides = [1, 1, 1]} : vector<8x20x128xf32> to vector<6x18x128xf32>
    %34 = vector.shape_cast %33 : vector<6x18x128xf32> to vector<108x128xf32>
    %c0_19 = arith.constant 0 : index
    %c1 = arith.constant 1 : index
    %c0_20 = arith.constant 0 : index
    %c0_21 = arith.constant 0 : index
    %35 = vector.load %arg3[%c0_19, %c1, %c0_20, %c0_21] : memref<3x3x128x128xf32, #tpu.memory_space<vmem>>, vector<1x1x128x128xf32>
    %36 = vector.shape_cast %35 : vector<1x1x128x128xf32> to vector<128x128xf32>
    %cst_22 = arith.constant dense<0.000000e+00> : vector<108x128xf32>
    %37 = tpu.matmul %34, %36, %cst_22 {dimension_numbers = #tpu.dot_dimension_numbers<[1], [0], [0], [1], [0, 0, 1, 1], [], []>} : vector<108x128xf32>, vector<128x128xf32>, vector<108x128xf32> -> vector<108x128xf32>
    %38 = arith.addf %32, %37 : vector<108x128xf32>
    %39 = vector.extract_strided_slice %27 {offsets = [0, 2, 0], sizes = [6, 18, 128], strides = [1, 1, 1]} : vector<8x20x128xf32> to vector<6x18x128xf32>
    %40 = vector.shape_cast %39 : vector<6x18x128xf32> to vector<108x128xf32>
    %c0_23 = arith.constant 0 : index
    %c2 = arith.constant 2 : index
    %c0_24 = arith.constant 0 : index
    %c0_25 = arith.constant 0 : index
    %41 = vector.load %arg3[%c0_23, %c2, %c0_24, %c0_25] : memref<3x3x128x128xf32, #tpu.memory_space<vmem>>, vector<1x1x128x128xf32>
    %42 = vector.shape_cast %41 : vector<1x1x128x128xf32> to vector<128x128xf32>
    %cst_26 = arith.constant dense<0.000000e+00> : vector<108x128xf32>
    %43 = tpu.matmul %40, %42, %cst_26 {dimension_numbers = #tpu.dot_dimension_numbers<[1], [0], [0], [1], [0, 0, 1, 1], [], []>} : vector<108x128xf32>, vector<128x128xf32>, vector<108x128xf32> -> vector<108x128xf32>
    %44 = arith.addf %38, %43 : vector<108x128xf32>
    %45 = vector.extract_strided_slice %27 {offsets = [1, 0, 0], sizes = [6, 18, 128], strides = [1, 1, 1]} : vector<8x20x128xf32> to vector<6x18x128xf32>
    %46 = vector.shape_cast %45 : vector<6x18x128xf32> to vector<108x128xf32>
    %c1_27 = arith.constant 1 : index
    %c0_28 = arith.constant 0 : index
    %c0_29 = arith.constant 0 : index
    %c0_30 = arith.constant 0 : index
    %47 = vector.load %arg3[%c1_27, %c0_28, %c0_29, %c0_30] : memref<3x3x128x128xf32, #tpu.memory_space<vmem>>, vector<1x1x128x128xf32>
    %48 = vector.shape_cast %47 : vector<1x1x128x128xf32> to vector<128x128xf32>
    %cst_31 = arith.constant dense<0.000000e+00> : vector<108x128xf32>
    %49 = tpu.matmul %46, %48, %cst_31 {dimension_numbers = #tpu.dot_dimension_numbers<[1], [0], [0], [1], [0, 0, 1, 1], [], []>} : vector<108x128xf32>, vector<128x128xf32>, vector<108x128xf32> -> vector<108x128xf32>
    %50 = arith.addf %44, %49 : vector<108x128xf32>
    %51 = vector.extract_strided_slice %27 {offsets = [1, 1, 0], sizes = [6, 18, 128], strides = [1, 1, 1]} : vector<8x20x128xf32> to vector<6x18x128xf32>
    %52 = vector.shape_cast %51 : vector<6x18x128xf32> to vector<108x128xf32>
    %c1_32 = arith.constant 1 : index
    %c1_33 = arith.constant 1 : index
    %c0_34 = arith.constant 0 : index
    %c0_35 = arith.constant 0 : index
    %53 = vector.load %arg3[%c1_32, %c1_33, %c0_34, %c0_35] : memref<3x3x128x128xf32, #tpu.memory_space<vmem>>, vector<1x1x128x128xf32>
    %54 = vector.shape_cast %53 : vector<1x1x128x128xf32> to vector<128x128xf32>
    %cst_36 = arith.constant dense<0.000000e+00> : vector<108x128xf32>
    %55 = tpu.matmul %52, %54, %cst_36 {dimension_numbers = #tpu.dot_dimension_numbers<[1], [0], [0], [1], [0, 0, 1, 1], [], []>} : vector<108x128xf32>, vector<128x128xf32>, vector<108x128xf32> -> vector<108x128xf32>
    %56 = arith.addf %50, %55 : vector<108x128xf32>
    %57 = vector.extract_strided_slice %27 {offsets = [1, 2, 0], sizes = [6, 18, 128], strides = [1, 1, 1]} : vector<8x20x128xf32> to vector<6x18x128xf32>
    %58 = vector.shape_cast %57 : vector<6x18x128xf32> to vector<108x128xf32>
    %c1_37 = arith.constant 1 : index
    %c2_38 = arith.constant 2 : index
    %c0_39 = arith.constant 0 : index
    %c0_40 = arith.constant 0 : index
    %59 = vector.load %arg3[%c1_37, %c2_38, %c0_39, %c0_40] : memref<3x3x128x128xf32, #tpu.memory_space<vmem>>, vector<1x1x128x128xf32>
    %60 = vector.shape_cast %59 : vector<1x1x128x128xf32> to vector<128x128xf32>
    %cst_41 = arith.constant dense<0.000000e+00> : vector<108x128xf32>
    %61 = tpu.matmul %58, %60, %cst_41 {dimension_numbers = #tpu.dot_dimension_numbers<[1], [0], [0], [1], [0, 0, 1, 1], [], []>} : vector<108x128xf32>, vector<128x128xf32>, vector<108x128xf32> -> vector<108x128xf32>
    %62 = arith.addf %56, %61 : vector<108x128xf32>
    %63 = vector.extract_strided_slice %27 {offsets = [2, 0, 0], sizes = [6, 18, 128], strides = [1, 1, 1]} : vector<8x20x128xf32> to vector<6x18x128xf32>
    %64 = vector.shape_cast %63 : vector<6x18x128xf32> to vector<108x128xf32>
    %c2_42 = arith.constant 2 : index
    %c0_43 = arith.constant 0 : index
    %c0_44 = arith.constant 0 : index
    %c0_45 = arith.constant 0 : index
    %65 = vector.load %arg3[%c2_42, %c0_43, %c0_44, %c0_45] : memref<3x3x128x128xf32, #tpu.memory_space<vmem>>, vector<1x1x128x128xf32>
    %66 = vector.shape_cast %65 : vector<1x1x128x128xf32> to vector<128x128xf32>
    %cst_46 = arith.constant dense<0.000000e+00> : vector<108x128xf32>
    %67 = tpu.matmul %64, %66, %cst_46 {dimension_numbers = #tpu.dot_dimension_numbers<[1], [0], [0], [1], [0, 0, 1, 1], [], []>} : vector<108x128xf32>, vector<128x128xf32>, vector<108x128xf32> -> vector<108x128xf32>
    %68 = arith.addf %62, %67 : vector<108x128xf32>
    %69 = vector.extract_strided_slice %27 {offsets = [2, 1, 0], sizes = [6, 18, 128], strides = [1, 1, 1]} : vector<8x20x128xf32> to vector<6x18x128xf32>
    %70 = vector.shape_cast %69 : vector<6x18x128xf32> to vector<108x128xf32>
    %c2_47 = arith.constant 2 : index
    %c1_48 = arith.constant 1 : index
    %c0_49 = arith.constant 0 : index
    %c0_50 = arith.constant 0 : index
    %71 = vector.load %arg3[%c2_47, %c1_48, %c0_49, %c0_50] : memref<3x3x128x128xf32, #tpu.memory_space<vmem>>, vector<1x1x128x128xf32>
    %72 = vector.shape_cast %71 : vector<1x1x128x128xf32> to vector<128x128xf32>
    %cst_51 = arith.constant dense<0.000000e+00> : vector<108x128xf32>
    %73 = tpu.matmul %70, %72, %cst_51 {dimension_numbers = #tpu.dot_dimension_numbers<[1], [0], [0], [1], [0, 0, 1, 1], [], []>} : vector<108x128xf32>, vector<128x128xf32>, vector<108x128xf32> -> vector<108x128xf32>
    %74 = arith.addf %68, %73 : vector<108x128xf32>
    %75 = vector.extract_strided_slice %27 {offsets = [2, 2, 0], sizes = [6, 18, 128], strides = [1, 1, 1]} : vector<8x20x128xf32> to vector<6x18x128xf32>
    %76 = vector.shape_cast %75 : vector<6x18x128xf32> to vector<108x128xf32>
    %c2_52 = arith.constant 2 : index
    %c2_53 = arith.constant 2 : index
    %c0_54 = arith.constant 0 : index
    %c0_55 = arith.constant 0 : index
    %77 = vector.load %arg3[%c2_52, %c2_53, %c0_54, %c0_55] : memref<3x3x128x128xf32, #tpu.memory_space<vmem>>, vector<1x1x128x128xf32>
    %78 = vector.shape_cast %77 : vector<1x1x128x128xf32> to vector<128x128xf32>
    %cst_56 = arith.constant dense<0.000000e+00> : vector<108x128xf32>
    %79 = tpu.matmul %76, %78, %cst_56 {dimension_numbers = #tpu.dot_dimension_numbers<[1], [0], [0], [1], [0, 0, 1, 1], [], []>} : vector<108x128xf32>, vector<128x128xf32>, vector<108x128xf32> -> vector<108x128xf32>
    %80 = arith.addf %74, %79 : vector<108x128xf32>
    %c0_57 = arith.constant 0 : index
    %c0_58 = arith.constant 0 : index
    %81 = vector.load %arg4[%c0_57, %c0_58] : memref<1x128xf32, #tpu.memory_space<vmem>>, vector<1x128xf32>
    %82 = vector.shape_cast %81 : vector<1x128xf32> to vector<128xf32>
    %83 = vector.shape_cast %82 : vector<128xf32> to vector<1x128xf32>
    %84 = vector.broadcast %83 : vector<1x128xf32> to vector<108x128xf32>
    %85 = arith.addf %80, %84 : vector<108x128xf32>
    %cst_59 = arith.constant 0.000000e+00 : f32
    %86 = vector.broadcast %cst_59 : f32 to vector<108x128xf32>
    %87 = arith.cmpf oge, %85, %86 : vector<108x128xf32>
    %cst_60 = arith.constant 1.250000e-01 : f32
    %88 = vector.broadcast %cst_60 : f32 to vector<108x128xf32>
    %89 = arith.mulf %88, %85 : vector<108x128xf32>
    %90 = arith.select %87, %85, %89 : vector<108x128xi1>, vector<108x128xf32>
    %91 = vector.shape_cast %90 : vector<108x128xf32> to vector<6x18x128xf32>
    %c4_i32_61 = arith.constant 4 : i32
    %92 = arith.muli %arg1, %c4_i32_61 : i32
    %c1_i32_62 = arith.constant 1 : i32
    %93 = arith.subi %92, %c1_i32_62 : i32
    %94 = tpu.iota {dimensions = array<i32: 0>} : vector<6x18x1xi32>
    %95 = vector.broadcast %93 : i32 to vector<6x18x1xi32>
    %96 = arith.addi %95, %94 : vector<6x18x1xi32>
    %97 = tpu.iota {dimensions = array<i32: 1>} : vector<6x18x1xi32>
    %c1_i32_63 = arith.constant 1 : i32
    %98 = vector.broadcast %c1_i32_63 : i32 to vector<6x18x1xi32>
    %99 = arith.subi %97, %98 : vector<6x18x1xi32>
    %c0_i32_64 = arith.constant 0 : i32
    %100 = vector.broadcast %c0_i32_64 : i32 to vector<6x18x1xi32>
    %101 = arith.cmpi sge, %96, %100 : vector<6x18x1xi32>
    %c16_i32 = arith.constant 16 : i32
    %102 = vector.broadcast %c16_i32 : i32 to vector<6x18x1xi32>
    %103 = arith.cmpi slt, %96, %102 : vector<6x18x1xi32>
    %104 = arith.andi %101, %103 : vector<6x18x1xi1>
    %c0_i32_65 = arith.constant 0 : i32
    %105 = vector.broadcast %c0_i32_65 : i32 to vector<6x18x1xi32>
    %106 = arith.cmpi sge, %99, %105 : vector<6x18x1xi32>
    %107 = arith.andi %104, %106 : vector<6x18x1xi1>
    %c16_i32_66 = arith.constant 16 : i32
    %108 = vector.broadcast %c16_i32_66 : i32 to vector<6x18x1xi32>
    %109 = arith.cmpi slt, %99, %108 : vector<6x18x1xi32>
    %110 = arith.andi %107, %109 : vector<6x18x1xi1>
    %cst_67 = arith.constant 0.000000e+00 : f32
    %111 = vector.shape_cast %110 : vector<6x18x1xi1> to vector<6x18x1xi1>
    %112 = vector.broadcast %111 : vector<6x18x1xi1> to vector<6x18x128xi1>
    %113 = vector.broadcast %cst_67 : f32 to vector<6x18x128xf32>
    %114 = arith.select %112, %91, %113 : vector<6x18x128xi1>, vector<6x18x128xf32>
    %c0_68 = arith.constant 0 : index
    %c0_69 = arith.constant 0 : index
    %c0_70 = arith.constant 0 : index
    %115 = vector.load %arg9[%c0_68, %c0_69, %c0_70] : memref<6x18x128xf32, #tpu.memory_space<vmem>>, vector<6x18x128xf32>
    tpu.vector_store %arg9[%c0_68, %c0_69, %c0_70], %114 {strides = array<i32>} : memref<6x18x128xf32, #tpu.memory_space<vmem>>, vector<6x18x128xf32>,
    %c0_71 = arith.constant 0 : index
    %c0_72 = arith.constant 0 : index
    %c0_73 = arith.constant 0 : index
    %116 = vector.load %arg9[%c0_71, %c0_72, %c0_73] : memref<6x18x128xf32, #tpu.memory_space<vmem>>, vector<4x16x128xf32>
    %117 = vector.shape_cast %116 : vector<4x16x128xf32> to vector<64x128xf32>
    %c0_74 = arith.constant 0 : index
    %c0_75 = arith.constant 0 : index
    %c0_76 = arith.constant 0 : index
    %c0_77 = arith.constant 0 : index
    %118 = vector.load %arg5[%c0_74, %c0_75, %c0_76, %c0_77] : memref<3x3x128x128xf32, #tpu.memory_space<vmem>>, vector<1x1x128x128xf32>
    %119 = vector.shape_cast %118 : vector<1x1x128x128xf32> to vector<128x128xf32>
    %cst_78 = arith.constant dense<0.000000e+00> : vector<64x128xf32>
    %120 = tpu.matmul %117, %119, %cst_78 {dimension_numbers = #tpu.dot_dimension_numbers<[1], [0], [0], [1], [0, 0, 1, 1], [], []>} : vector<64x128xf32>, vector<128x128xf32>, vector<64x128xf32> -> vector<64x128xf32>
    %c0_79 = arith.constant 0 : index
    %c1_80 = arith.constant 1 : index
    %c0_81 = arith.constant 0 : index
    %121 = vector.load %arg9[%c0_79, %c1_80, %c0_81] : memref<6x18x128xf32, #tpu.memory_space<vmem>>, vector<4x16x128xf32>
    %122 = vector.shape_cast %121 : vector<4x16x128xf32> to vector<64x128xf32>
    %c0_82 = arith.constant 0 : index
    %c1_83 = arith.constant 1 : index
    %c0_84 = arith.constant 0 : index
    %c0_85 = arith.constant 0 : index
    %123 = vector.load %arg5[%c0_82, %c1_83, %c0_84, %c0_85] : memref<3x3x128x128xf32, #tpu.memory_space<vmem>>, vector<1x1x128x128xf32>
    %124 = vector.shape_cast %123 : vector<1x1x128x128xf32> to vector<128x128xf32>
    %cst_86 = arith.constant dense<0.000000e+00> : vector<64x128xf32>
    %125 = tpu.matmul %122, %124, %cst_86 {dimension_numbers = #tpu.dot_dimension_numbers<[1], [0], [0], [1], [0, 0, 1, 1], [], []>} : vector<64x128xf32>, vector<128x128xf32>, vector<64x128xf32> -> vector<64x128xf32>
    %126 = arith.addf %120, %125 : vector<64x128xf32>
    %c0_87 = arith.constant 0 : index
    %c2_88 = arith.constant 2 : index
    %c0_89 = arith.constant 0 : index
    %127 = vector.load %arg9[%c0_87, %c2_88, %c0_89] : memref<6x18x128xf32, #tpu.memory_space<vmem>>, vector<4x16x128xf32>
    %128 = vector.shape_cast %127 : vector<4x16x128xf32> to vector<64x128xf32>
    %c0_90 = arith.constant 0 : index
    %c2_91 = arith.constant 2 : index
    %c0_92 = arith.constant 0 : index
    %c0_93 = arith.constant 0 : index
    %129 = vector.load %arg5[%c0_90, %c2_91, %c0_92, %c0_93] : memref<3x3x128x128xf32, #tpu.memory_space<vmem>>, vector<1x1x128x128xf32>
    %130 = vector.shape_cast %129 : vector<1x1x128x128xf32> to vector<128x128xf32>
    %cst_94 = arith.constant dense<0.000000e+00> : vector<64x128xf32>
    %131 = tpu.matmul %128, %130, %cst_94 {dimension_numbers = #tpu.dot_dimension_numbers<[1], [0], [0], [1], [0, 0, 1, 1], [], []>} : vector<64x128xf32>, vector<128x128xf32>, vector<64x128xf32> -> vector<64x128xf32>
    %132 = arith.addf %126, %131 : vector<64x128xf32>
    %c1_95 = arith.constant 1 : index
    %c0_96 = arith.constant 0 : index
    %c0_97 = arith.constant 0 : index
    %133 = vector.load %arg9[%c1_95, %c0_96, %c0_97] : memref<6x18x128xf32, #tpu.memory_space<vmem>>, vector<4x16x128xf32>
    %134 = vector.shape_cast %133 : vector<4x16x128xf32> to vector<64x128xf32>
    %c1_98 = arith.constant 1 : index
    %c0_99 = arith.constant 0 : index
    %c0_100 = arith.constant 0 : index
    %c0_101 = arith.constant 0 : index
    %135 = vector.load %arg5[%c1_98, %c0_99, %c0_100, %c0_101] : memref<3x3x128x128xf32, #tpu.memory_space<vmem>>, vector<1x1x128x128xf32>
    %136 = vector.shape_cast %135 : vector<1x1x128x128xf32> to vector<128x128xf32>
    %cst_102 = arith.constant dense<0.000000e+00> : vector<64x128xf32>
    %137 = tpu.matmul %134, %136, %cst_102 {dimension_numbers = #tpu.dot_dimension_numbers<[1], [0], [0], [1], [0, 0, 1, 1], [], []>} : vector<64x128xf32>, vector<128x128xf32>, vector<64x128xf32> -> vector<64x128xf32>
    %138 = arith.addf %132, %137 : vector<64x128xf32>
    %c1_103 = arith.constant 1 : index
    %c1_104 = arith.constant 1 : index
    %c0_105 = arith.constant 0 : index
    %139 = vector.load %arg9[%c1_103, %c1_104, %c0_105] : memref<6x18x128xf32, #tpu.memory_space<vmem>>, vector<4x16x128xf32>
    %140 = vector.shape_cast %139 : vector<4x16x128xf32> to vector<64x128xf32>
    %c1_106 = arith.constant 1 : index
    %c1_107 = arith.constant 1 : index
    %c0_108 = arith.constant 0 : index
    %c0_109 = arith.constant 0 : index
    %141 = vector.load %arg5[%c1_106, %c1_107, %c0_108, %c0_109] : memref<3x3x128x128xf32, #tpu.memory_space<vmem>>, vector<1x1x128x128xf32>
    %142 = vector.shape_cast %141 : vector<1x1x128x128xf32> to vector<128x128xf32>
    %cst_110 = arith.constant dense<0.000000e+00> : vector<64x128xf32>
    %143 = tpu.matmul %140, %142, %cst_110 {dimension_numbers = #tpu.dot_dimension_numbers<[1], [0], [0], [1], [0, 0, 1, 1], [], []>} : vector<64x128xf32>, vector<128x128xf32>, vector<64x128xf32> -> vector<64x128xf32>
    %144 = arith.addf %138, %143 : vector<64x128xf32>
    %c1_111 = arith.constant 1 : index
    %c2_112 = arith.constant 2 : index
    %c0_113 = arith.constant 0 : index
    %145 = vector.load %arg9[%c1_111, %c2_112, %c0_113] : memref<6x18x128xf32, #tpu.memory_space<vmem>>, vector<4x16x128xf32>
    %146 = vector.shape_cast %145 : vector<4x16x128xf32> to vector<64x128xf32>
    %c1_114 = arith.constant 1 : index
    %c2_115 = arith.constant 2 : index
    %c0_116 = arith.constant 0 : index
    %c0_117 = arith.constant 0 : index
    %147 = vector.load %arg5[%c1_114, %c2_115, %c0_116, %c0_117] : memref<3x3x128x128xf32, #tpu.memory_space<vmem>>, vector<1x1x128x128xf32>
    %148 = vector.shape_cast %147 : vector<1x1x128x128xf32> to vector<128x128xf32>
    %cst_118 = arith.constant dense<0.000000e+00> : vector<64x128xf32>
    %149 = tpu.matmul %146, %148, %cst_118 {dimension_numbers = #tpu.dot_dimension_numbers<[1], [0], [0], [1], [0, 0, 1, 1], [], []>} : vector<64x128xf32>, vector<128x128xf32>, vector<64x128xf32> -> vector<64x128xf32>
    %150 = arith.addf %144, %149 : vector<64x128xf32>
    %c2_119 = arith.constant 2 : index
    %c0_120 = arith.constant 0 : index
    %c0_121 = arith.constant 0 : index
    %151 = vector.load %arg9[%c2_119, %c0_120, %c0_121] : memref<6x18x128xf32, #tpu.memory_space<vmem>>, vector<4x16x128xf32>
    %152 = vector.shape_cast %151 : vector<4x16x128xf32> to vector<64x128xf32>
    %c2_122 = arith.constant 2 : index
    %c0_123 = arith.constant 0 : index
    %c0_124 = arith.constant 0 : index
    %c0_125 = arith.constant 0 : index
    %153 = vector.load %arg5[%c2_122, %c0_123, %c0_124, %c0_125] : memref<3x3x128x128xf32, #tpu.memory_space<vmem>>, vector<1x1x128x128xf32>
    %154 = vector.shape_cast %153 : vector<1x1x128x128xf32> to vector<128x128xf32>
    %cst_126 = arith.constant dense<0.000000e+00> : vector<64x128xf32>
    %155 = tpu.matmul %152, %154, %cst_126 {dimension_numbers = #tpu.dot_dimension_numbers<[1], [0], [0], [1], [0, 0, 1, 1], [], []>} : vector<64x128xf32>, vector<128x128xf32>, vector<64x128xf32> -> vector<64x128xf32>
    %156 = arith.addf %150, %155 : vector<64x128xf32>
    %c2_127 = arith.constant 2 : index
    %c1_128 = arith.constant 1 : index
    %c0_129 = arith.constant 0 : index
    %157 = vector.load %arg9[%c2_127, %c1_128, %c0_129] : memref<6x18x128xf32, #tpu.memory_space<vmem>>, vector<4x16x128xf32>
    %158 = vector.shape_cast %157 : vector<4x16x128xf32> to vector<64x128xf32>
    %c2_130 = arith.constant 2 : index
    %c1_131 = arith.constant 1 : index
    %c0_132 = arith.constant 0 : index
    %c0_133 = arith.constant 0 : index
    %159 = vector.load %arg5[%c2_130, %c1_131, %c0_132, %c0_133] : memref<3x3x128x128xf32, #tpu.memory_space<vmem>>, vector<1x1x128x128xf32>
    %160 = vector.shape_cast %159 : vector<1x1x128x128xf32> to vector<128x128xf32>
    %cst_134 = arith.constant dense<0.000000e+00> : vector<64x128xf32>
    %161 = tpu.matmul %158, %160, %cst_134 {dimension_numbers = #tpu.dot_dimension_numbers<[1], [0], [0], [1], [0, 0, 1, 1], [], []>} : vector<64x128xf32>, vector<128x128xf32>, vector<64x128xf32> -> vector<64x128xf32>
    %162 = arith.addf %156, %161 : vector<64x128xf32>
    %c2_135 = arith.constant 2 : index
    %c2_136 = arith.constant 2 : index
    %c0_137 = arith.constant 0 : index
    %163 = vector.load %arg9[%c2_135, %c2_136, %c0_137] : memref<6x18x128xf32, #tpu.memory_space<vmem>>, vector<4x16x128xf32>
    %164 = vector.shape_cast %163 : vector<4x16x128xf32> to vector<64x128xf32>
    %c2_138 = arith.constant 2 : index
    %c2_139 = arith.constant 2 : index
    %c0_140 = arith.constant 0 : index
    %c0_141 = arith.constant 0 : index
    %165 = vector.load %arg5[%c2_138, %c2_139, %c0_140, %c0_141] : memref<3x3x128x128xf32, #tpu.memory_space<vmem>>, vector<1x1x128x128xf32>
    %166 = vector.shape_cast %165 : vector<1x1x128x128xf32> to vector<128x128xf32>
    %cst_142 = arith.constant dense<0.000000e+00> : vector<64x128xf32>
    %167 = tpu.matmul %164, %166, %cst_142 {dimension_numbers = #tpu.dot_dimension_numbers<[1], [0], [0], [1], [0, 0, 1, 1], [], []>} : vector<64x128xf32>, vector<128x128xf32>, vector<64x128xf32> -> vector<64x128xf32>
    %168 = arith.addf %162, %167 : vector<64x128xf32>
    %c0_143 = arith.constant 0 : index
    %c0_144 = arith.constant 0 : index
    %169 = vector.load %arg6[%c0_143, %c0_144] : memref<1x128xf32, #tpu.memory_space<vmem>>, vector<1x128xf32>
    %170 = vector.shape_cast %169 : vector<1x128xf32> to vector<128xf32>
    %171 = vector.shape_cast %170 : vector<128xf32> to vector<1x128xf32>
    %172 = vector.broadcast %171 : vector<1x128xf32> to vector<64x128xf32>
    %173 = arith.addf %168, %172 : vector<64x128xf32>
    %cst_145 = arith.constant 0.000000e+00 : f32
    %174 = vector.broadcast %cst_145 : f32 to vector<64x128xf32>
    %175 = arith.cmpf oge, %173, %174 : vector<64x128xf32>
    %cst_146 = arith.constant 1.250000e-01 : f32
    %176 = vector.broadcast %cst_146 : f32 to vector<64x128xf32>
    %177 = arith.mulf %176, %173 : vector<64x128xf32>
    %178 = arith.select %175, %173, %177 : vector<64x128xi1>, vector<64x128xf32>
    %179 = vector.shape_cast %178 : vector<64x128xf32> to vector<4x16x128xf32>
    %c0_147 = arith.constant 0 : index
    %c0_148 = arith.constant 0 : index
    %c0_149 = arith.constant 0 : index
    %c0_150 = arith.constant 0 : index
    %180 = vector.load %arg7[%c0_147, %c0_148, %c0_149, %c0_150] : memref<1x4x16x128xf32, #tpu.memory_space<vmem>>, vector<1x4x16x128xf32>
    %181 = vector.shape_cast %180 : vector<1x4x16x128xf32> to vector<4x16x128xf32>
    %182 = vector.shape_cast %179 : vector<4x16x128xf32> to vector<1x4x16x128xf32>
    tpu.vector_store %arg7[%c0_147, %c0_148, %c0_149, %c0_150], %182 {strides = array<i32>} : memref<1x4x16x128xf32, #tpu.memory_space<vmem>>, vector<1x4x16x128xf32>,
    return
  }
  func.func @transform_1(%arg0: i32, %arg1: i32) -> (i32, i32, i32, i32) {
    %c0_i32 = arith.constant 0 : i32
    %c0_i32_0 = arith.constant 0 : i32
    %c0_i32_1 = arith.constant 0 : i32
    %c0_i32_2 = arith.constant 0 : i32
    %c0_i32_3 = arith.constant 0 : i32
    return %c0_i32, %c0_i32_0, %c0_i32_1, %c0_i32_2 : i32, i32, i32, i32
  }
  func.func @transform_2(%arg0: i32, %arg1: i32) -> (i32, i32) {
    %c0_i32 = arith.constant 0 : i32
    %c0_i32_0 = arith.constant 0 : i32
    %c0_i32_1 = arith.constant 0 : i32
    return %c0_i32, %c0_i32_0 : i32, i32
  }
  func.func @transform_3(%arg0: i32, %arg1: i32) -> (i32, i32, i32, i32) {
    %c0_i32 = arith.constant 0 : i32
    %c0_i32_0 = arith.constant 0 : i32
    %c0_i32_1 = arith.constant 0 : i32
    %c0_i32_2 = arith.constant 0 : i32
    %c0_i32_3 = arith.constant 0 : i32
    return %c0_i32, %c0_i32_0, %c0_i32_1, %c0_i32_2 : i32, i32, i32, i32
  }
  func.func @transform_4(%arg0: i32, %arg1: i32) -> (i32, i32) {
    %c0_i32 = arith.constant 0 : i32
    %c0_i32_0 = arith.constant 0 : i32
    %c0_i32_1 = arith.constant 0 : i32
    return %c0_i32, %c0_i32_0 : i32, i32
  }
  func.func @transform_5(%arg0: i32, %arg1: i32) -> (i32, i32, i32, i32) {
    %c0_i32 = arith.constant 0 : i32
    %c0_i32_0 = arith.constant 0 : i32
    %c0_i32_1 = arith.constant 0 : i32
    return %arg0, %arg1, %c0_i32, %c0_i32_0 : i32, i32, i32, i32
  }
}

</mosaic_0001>

<bundles_post_ra>
// kernel: unet_conv2_forward.1
= control target key start
LH: loop header
LB: loop body
LE: loop exit
PB: predicated region body
PF: predicated region fallthrough
CT: control target
= control target key end

     0   :  { %s8689_s18 = smov 0   ;;  %s8691_s19 = smov 0   ;;  %s11742_s0 = inlined_call_operand.vmem [shape: f32[2,20,20,128], index: 0, kind: input, shape index: {}]   ;;  %s11743_s1 = inlined_call_operand.vmem [shape: f32[3,3,128,128], index: 1, kind: input, shape index: {}]   ;;  %s11744_s2 = inlined_call_operand.vmem [shape: f32[1,128], index: 2, kind: input, shape index: {}]   ;;  %s11745_s3 = inlined_call_operand.vmem [shape: f32[3,3,128,128], index: 3, kind: input, shape index: {}]   ;;  %s11746_s4 = inlined_call_operand.vmem [shape: f32[1,128], index: 4, kind: input, shape index: {}]   ;;  %s11747_s5 = inlined_call_operand.vmem [shape: f32[2,16,16,128], index: 5, kind: output, shape index: {}]  }
   0x1   :  { %s8693_s20 = smov 0   ;;  %s8695_s21 = smov 0  }
   0x2   :  { %s8697_s22 = smov 0  }
   0x3 LB: > { %s24_s23 = sadd.s32 1, %s8648_s20  ;;  %s27_s24 = sadd.s32 1, %s8652_s21  ;;  %s8656_s22 = sphi %s8697_s22, %s15_s22   ;;  %s8652_s21 = sphi %s8695_s21, %s12177_s21   ;;  %s8648_s20 = sphi %s8693_s20, %s12176_s20   ;;  %s8644_s19 = sphi %s8691_s19, %s12175_s19   ;;  %s8640_s18 = sphi %s8689_s18, %s12174_s18  }
   0x4   : > { %p25_p0 = scmp.ge.s32.totalorder %s24_s23, 4  ;;  %p6071_p1 = scmp.ge.s32.totalorder %s8656_s22, 1 }
   0x5   : > { %p167_p2 = scmp.lt.s32.totalorder %s8656_s22, 9 }
   0x6   : > { %s12179_s23 = smov (%p25_p0, %s24_s23), 0  ;;  %s12181_s24 = smov (!%p25_p0, %s27_s24), %s8652_s21 }
   0x7   : > { %p168_p3 = pnand %p6071_p1, %p167_p2  ;;  %p29_p4 = scmp.ge.s32.totalorder %s12181_s24, 2 }
   0x9   : > { %s12183_s24 = smov (%p29_p4, %s12181_s24), 0  ;;  %171 = sbr.rel (%p168_p3) target bundleno = 1120 (0x460), region = 36 }
  0x10   : > { %s8724_s25 = sshll.u32 %s8640_s18, 2  ;;  %p194_p5 = scmp.lt.s32.totalorder %s8644_s19, 1 }
  0x11   : > { %p196_p6 = scmp.lt.s32.totalorder %s8724_s25, 15  ;;  %p204_p7 = scmp.lt.s32.totalorder %s8640_s18, 0 }
  0x12   : > { %s195_s26 = scalar_select %p194_p5, %s8644_s19, 1 }
  0x13   : > { %s197_s27 = scalar_select %p196_p6, %s8724_s25, 15 }
  0x14   : > { %s6074_s28 = sshll.u32 %s195_s26, 5  ;;  %s205_s29 = ssub.s32 0, %s8640_s18 }
  0x15   : > { %s6073_s30 = sshll.u32 %s197_s27, 1  ;;  %s6076_s6 = smin.u32 %s8640_s18, %s205_s29 }
  0x16   : > { %s200_s7 = sadd.s32 %s6074_s28, %s6073_s30  ;;  %s207_s8 = sand.u32 1, %s6076_s6  }
  0x17   : > { %s6075_s9 = sshll.u32 %s200_s7, 3  ;;  %s208_s10 = ssub.s32 0, %s207_s8 }
  0x18   : > { %s8736_s13 = scalar_lea.vmem %s11747_s5, %s6075_s9  ;;  %s12185_s10 = smov (!%p204_p7, %s208_s10), %s207_s8 }
  0x19   : > { %p6078_p8 = scmp.lt.s32.totalorder %s12185_s10, 0  ;;  %s214_s14 = sadd.s32 2, %s12185_s10 }
  0x1a   : > { %p6079_p9 = scmp.ne.s32.totalorder %s8640_s18, 0 }
  0x1b   : > { %s12187_s14 = smov (!%p6078_p8, %s214_s14), %s12185_s10  ;;  %s221_s15 = smul.u32 (!%p6079_p9), 480, %s8644_s19 }
  0x1c   : > { %219 = sbr.rel (%p6079_p9) target bundleno = 45 (0x2d), region = 40 }
  0x1d   : > { %s8745_s26 = scalar_lea.vmem (!%p6079_p9), %s11742_s0, %s221_s15 }
  0x1e   : > { %v275_v0 = vld [vmem:[%s8745_s26] sm:$0xff] (!%p6079_p9)  ;;  %v277_v1 = vld [vmem:[%s8745_s26 + $0x8] sm:$0xff] (!%p6079_p9)  ;;  %v279_v2 = vld [vmem:[%s8745_s26 + $0x18] sm:$0xff] (!%p6079_p9) }
  0x1f   : > { %276 = vst [vmem:[#allocation2] sm:$0xff] (!%p6079_p9), %v275_v0  ;;  %278 = vst [vmem:[#allocation2 + $0x8] sm:$0xff] (!%p6079_p9), %v277_v1  ;;  %v281_v3 = vld [vmem:[%s8745_s26 + $0x20] sm:$0xff] (!%p6079_p9)  ;;  %v283_v4 = vld [vmem:[%s8745_s26 + $0x30] sm:$0xff] (!%p6079_p9) }
  0x20   : > { %280 = vst [vmem:[#allocation2 + $0x18] sm:$0xff] (!%p6079_p9), %v279_v2  ;;  %v285_v5 = vld [vmem:[%s8745_s26 + $0x38] sm:$0xff] (!%p6079_p9)  ;;  %282 = vst [vmem:[#allocation2 + $0x20] sm:$0xff] (!%p6079_p9), %v281_v3  ;;  %v287_v6 = vld [vmem:[%s8745_s26 + $0x48] sm:$0xff] (!%p6079_p9) }
  0x21   : > { %284 = vst [vmem:[#allocation2 + $0x30] sm:$0xff] (!%p6079_p9), %v283_v4  ;;  %286 = vst [vmem:[#allocation2 + $0x38] sm:$0xff] (!%p6079_p9), %v285_v5  ;;  %v289_v7 = vld [vmem:[%s8745_s26 + $0x50] sm:$0xff] (!%p6079_p9)  ;;  %v291_v8 = vld [vmem:[%s8745_s26 + $0x60] sm:$0xff] (!%p6079_p9) }
  0x22   : > { %288 = vst [vmem:[#allocation2 + $0x48] sm:$0xff] (!%p6079_p9), %v287_v6  ;;  %290 = vst [vmem:[#allocation2 + $0x50] sm:$0xff] (!%p6079_p9), %v289_v7  ;;  %v293_v9 = vld [vmem:[%s8745_s26 + $0x68] sm:$0xff] (!%p6079_p9)  ;;  %v295_v10 = vld [vmem:[%s8745_s26 + $0x78] sm:$0xff] (!%p6079_p9) }
  0x23   : > { %292 = vst [vmem:[#allocation2 + $0x60] sm:$0xff] %v291_v8  ;;  %v297_v11 = vld [vmem:[%s8745_s26 + $0x80] sm:$0xff]  ;;  %294 = vst [vmem:[#allocation2 + $0x68] sm:$0xff] %v293_v9  ;;  %v299_v12 = vld [vmem:[%s8745_s26 + $0x90] sm:$0xff] }
  0x24   : > { %296 = vst [vmem:[#allocation2 + $0x78] sm:$0xff] %v295_v10  ;;  %298 = vst [vmem:[#allocation2 + $0x80] sm:$0xff] %v297_v11  ;;  %v301_v13 = vld [vmem:[%s8745_s26 + $0x98] sm:$0xff]  ;;  %v303_v14 = vld [vmem:[%s8745_s26 + $0xa8] sm:$0xff] }
  0x25   : > { %300 = vst [vmem:[#allocation2 + $0x90] sm:$0xff] %v299_v12  ;;  %302 = vst [vmem:[#allocation2 + $0x98] sm:$0xff] %v301_v13  ;;  %v305_v15 = vld [vmem:[%s8745_s26 + $0xb0] sm:$0xff]  ;;  %v6081_v17 = vld [vmem:[%s8745_s26 + $0x28] sm:$0xf] }
  0x26   : > { %304 = vst [vmem:[#allocation2 + $0xa8] sm:$0xff] %v303_v14  ;;  %v6080_v16 = vld [vmem:[%s8745_s26 + $0x10] sm:$0xf]  ;;  %306 = vst [vmem:[#allocation2 + $0xb0] sm:$0xff] %v305_v15  ;;  %v6082_v18 = vld [vmem:[%s8745_s26 + $0x40] sm:$0xf] }
  0x27   : > { %317 = vst [vmem:[#allocation2 + $0x10] sm:$0xf] %v6080_v16  ;;  %319 = vst [vmem:[#allocation2 + $0x28] sm:$0xf] %v6081_v17  ;;  %v6083_v19 = vld [vmem:[%s8745_s26 + $0x58] sm:$0xf] }
  0x28   : > { %v6084_v20 = vld [vmem:[%s8745_s26 + $0x70] sm:$0xf]  ;;  %321 = vst [vmem:[#allocation2 + $0x40] sm:$0xf] %v6082_v18  ;;  %323 = vst [vmem:[#allocation2 + $0x58] sm:$0xf] %v6083_v19 }
  0x29   : > { %325 = vst [vmem:[#allocation2 + $0x70] sm:$0xf] %v6084_v20  ;;  %v6085_v21 = vld [vmem:[%s8745_s26 + $0x88] sm:$0xf]  ;;  %v6086_v22 = vld [vmem:[%s8745_s26 + $0xa0] sm:$0xf] }
  0x2a   : > { %v6087_v23 = vld [vmem:[%s8745_s26 + $0xb8] sm:$0xf]  ;;  %327 = vst [vmem:[#allocation2 + $0x88] sm:$0xf] %v6085_v21  ;;  %329 = vst [vmem:[#allocation2 + $0xa0] sm:$0xf] %v6086_v22 }
  0x2b   : > { %331 = vst [vmem:[#allocation2 + $0xb8] sm:$0xf] %v6087_v23 }
  0x2c   : > { %335 = vsyncadd [#allocation4], 2560 }
  0x2d PF: > { %s337_s27 = smul.u32 192, %s12187_s14  ;;  %s339_s29 = scalar_lea.sflag [#allocation4], %s12187_s14 }
  0x2f   : > { %s8772_s28 = scalar_lea.vmem [#allocation2], %s337_s27 }
  0x30   : > { %8636 = dma.done.wait %s339_s29, 2560 }
  0x31   : > { %8637 = vsyncadd %s339_s29, 4294964736  ;;  %s344_s30 = sadd.s32 1, %s8640_s18 }
  0x32   : > { %p6089_p10 = scmp.ge.s32.totalorder %s344_s30, 4 }
  0x33   : > { %s349_s6 = ssub.s32 (!%p6089_p10), 1, %s12187_s14  ;;  %s5997_s7 = smul.u32 (!%p6089_p10), 96, %s8640_s18 }
  0x34   : > { %348 = sbr.rel (%p6089_p10) target bundleno = 72 (0x48), region = 81 }
  0x35   : > { %s5998_s8 = smul.u32 (!%p6089_p10), 480, %s8644_s19  ;;  %s357_s19 = scalar_lea.sflag (!%p6089_p10), [#allocation4], %s349_s6 }
  0x36   : > { %s355_s9 = smul.u32 (!%p6089_p10), 192, %s349_s6 }
  0x37   : > { %s5999_s10 = sadd.s32 (!%p6089_p10), %s5998_s8, %s5997_s7 }
  0x38   : > { %s8784_s15 = scalar_lea.vmem (!%p6089_p10), %s11742_s0, %s5999_s10  ;;  %s8789_s18 = scalar_lea.vmem (!%p6089_p10), [#allocation2], %s355_s9 }
  0x39   : > { %v6091_v24 = vld [vmem:[%s8784_s15 + $0x60] sm:$0xff] (!%p6089_p10)  ;;  %v6092_v25 = vld [vmem:[%s8784_s15 + $0x68] sm:$0xff] (!%p6089_p10)  ;;  %v6093_v26 = vld [vmem:[%s8784_s15 + $0x78] sm:$0xff] (!%p6089_p10) }
  0x3a   : > { %410 = vst [vmem:[%s8789_s18] sm:$0xff] (!%p6089_p10), %v6091_v24  ;;  %412 = vst [vmem:[%s8789_s18 + $0x8] sm:$0xff] (!%p6089_p10), %v6092_v25  ;;  %v6094_v27 = vld [vmem:[%s8784_s15 + $0x80] sm:$0xff] (!%p6089_p10)  ;;  %v6095_v28 = vld [vmem:[%s8784_s15 + $0x90] sm:$0xff] (!%p6089_p10) }
  0x3b   : > { %414 = vst [vmem:[%s8789_s18 + $0x18] sm:$0xff] %v6093_v26  ;;  %v6096_v29 = vld [vmem:[%s8784_s15 + $0x98] sm:$0xff]  ;;  %416 = vst [vmem:[%s8789_s18 + $0x20] sm:$0xff] %v6094_v27  ;;  %v6097_v30 = vld [vmem:[%s8784_s15 + $0xa8] sm:$0xff] }
  0x3c   : > { %418 = vst [vmem:[%s8789_s18 + $0x30] sm:$0xff] %v6095_v28  ;;  %420 = vst [vmem:[%s8789_s18 + $0x38] sm:$0xff] %v6096_v29  ;;  %v6098_v31 = vld [vmem:[%s8784_s15 + $0xb0] sm:$0xff]  ;;  %v6099_v32 = vld [vmem:[%s8784_s15 + $0xc0] sm:$0xff] }
  0x3d   : > { %422 = vst [vmem:[%s8789_s18 + $0x48] sm:$0xff] %v6097_v30  ;;  %424 = vst [vmem:[%s8789_s18 + $0x50] sm:$0xff] %v6098_v31  ;;  %v6100_v33 = vld [vmem:[%s8784_s15 + $0xc8] sm:$0xff]  ;;  %v6101_v34 = vld [vmem:[%s8784_s15 + $0xd8] sm:$0xff] }
  0x3e   : > { %426 = vst [vmem:[%s8789_s18 + $0x60] sm:$0xff] %v6099_v32  ;;  %v6102_v35 = vld [vmem:[%s8784_s15 + $0xe0] sm:$0xff]  ;;  %428 = vst [vmem:[%s8789_s18 + $0x68] sm:$0xff] %v6100_v33  ;;  %v6103_v36 = vld [vmem:[%s8784_s15 + $0xf0] sm:$0xff] }
  0x3f   : > { %430 = vst [vmem:[%s8789_s18 + $0x78] sm:$0xff] %v6101_v34  ;;  %432 = vst [vmem:[%s8789_s18 + $0x80] sm:$0xff] %v6102_v35  ;;  %v6104_v37 = vld [vmem:[%s8784_s15 + $0xf8] sm:$0xff]  ;;  %v6105_v38 = vld [vmem:[%s8784_s15 + $0x108] sm:$0xff] }
  0x40   : > { %434 = vst [vmem:[%s8789_s18 + $0x90] sm:$0xff] %v6103_v36  ;;  %436 = vst [vmem:[%s8789_s18 + $0x98] sm:$0xff] %v6104_v37  ;;  %v6106_v39 = vld [vmem:[%s8784_s15 + $0x110] sm:$0xff]  ;;  %v6109_v41 = vld [vmem:[%s8784_s15 + $0x88] sm:$0xf] }
  0x41   : > { %438 = vst [vmem:[%s8789_s18 + $0xa8] sm:$0xff] %v6105_v38  ;;  %v6107_v40 = vld [vmem:[%s8784_s15 + $0x70] sm:$0xf]  ;;  %440 = vst [vmem:[%s8789_s18 + $0xb0] sm:$0xff] %v6106_v39  ;;  %v6111_v42 = vld [vmem:[%s8784_s15 + $0xa0] sm:$0xf] }
  0x42   : > { %6108 = vst [vmem:[%s8789_s18 + $0x10] sm:$0xf] %v6107_v40  ;;  %6110 = vst [vmem:[%s8789_s18 + $0x28] sm:$0xf] %v6109_v41  ;;  %v6113_v43 = vld [vmem:[%s8784_s15 + $0xb8] sm:$0xf] }
  0x43   : > { %v6115_v44 = vld [vmem:[%s8784_s15 + $0xd0] sm:$0xf]  ;;  %6112 = vst [vmem:[%s8789_s18 + $0x40] sm:$0xf] %v6111_v42  ;;  %6114 = vst [vmem:[%s8789_s18 + $0x58] sm:$0xf] %v6113_v43 }
  0x44   : > { %6116 = vst [vmem:[%s8789_s18 + $0x70] sm:$0xf] %v6115_v44  ;;  %v6117_v45 = vld [vmem:[%s8784_s15 + $0xe8] sm:$0xf]  ;;  %v6119_v46 = vld [vmem:[%s8784_s15 + $0x100] sm:$0xf] }
  0x45   : > { %v6121_v47 = vld [vmem:[%s8784_s15 + $0x118] sm:$0xf]  ;;  %6118 = vst [vmem:[%s8789_s18 + $0x88] sm:$0xf] %v6117_v45  ;;  %6120 = vst [vmem:[%s8789_s18 + $0xa0] sm:$0xf] %v6119_v46 }
  0x46   : > { %6122 = vst [vmem:[%s8789_s18 + $0xb8] sm:$0xf] %v6121_v47 }
  0x47   : > { %469 = vsyncadd %s357_s19, 2560 }
  0x48 PF: > { %v6143_v48 = vld [vmem:[%s11743_s1 + $0x80] sm:$0xff]  ;;  %v6144_v49 = vld [vmem:[%s11743_s1 + $0x88] sm:$0xff]  ;;  %v6145_v50 = vld [vmem:[%s11743_s1 + $0x90] sm:$0xff]  ;;  %v516_v51 = vlaneseq  ;;  %v8658_v56 = vmov 1983009808   ;;  %vm780_vm0 = vcmask 1040384  }
  0x49   : > { %v7779_v52 = vpack.c.bf16 %v6144_v49, %v6143_v48  ;;  %v6146_v53 = vld [vmem:[%s11743_s1 + $0x98] sm:$0xff]  ;;  %v6147_v54 = vld [vmem:[%s11743_s1 + $0xa0] sm:$0xff]  ;;  %v6148_v55 = vld [vmem:[%s11743_s1 + $0xa8] sm:$0xff]  ;;  %v514_v57 = vunpack.c.l.s4 %v8658_v56  ;;  %vm781_vm1 = vcmask 1042434   ;;  %vm783_vm2 = vcmask 1044484   ;;  %s6283_s15 = sadd.s32 4294967295, %s8724_s25 }
  0x4a   : > { %v7783_v58 = vpack.c.bf16 %v6146_v53, %v6145_v50  ;;  %v6149_v59 = vld [vmem:[%s11743_s1 + $0xb0] sm:$0xff]  ;;  %v6150_v60 = vld [vmem:[%s11743_s1 + $0xb8] sm:$0xff]  ;;  %v6151_v61 = vld [vmem:[%s11743_s1 + $0xc0] sm:$0xff]  ;;  %v8865_v62 = vshrl.u32 %v516_v51, 7  ;;  %v7787_v6 = vpack.c.bf16 %v6148_v55, %v6147_v54  ;;  %vm785_vm3 = vcmask 1046534  }
  0x4b   : > { %7780 = vmatprep.subr.bf16.mxu0 %v7779_v52  ;;  %v6152_v63 = vld [vmem:[%s11743_s1 + $0xc8] sm:$0xff]  ;;  %v6153_v0 = vld [vmem:[%s11743_s1 + $0xd0] sm:$0xff]  ;;  %v6154_v1 = vld [vmem:[%s11743_s1 + $0xd8] sm:$0xff]  ;;  %v515_v2 = vunpack.c.0.s8 %v514_v57  ;;  %v7791_v11 = vpack.c.bf16 %v6150_v60, %v6149_v59  ;;  %v11886_v29 = vmov 0 }
  0x4c   : > { %11885 = vst [vmem:[#allocation8_spill] sm:$0xff] %v8865_v62  ;;  %7782 = vmatpush3.bf16.msra.mxu0 %v7779_v52  ;;  %v6155_v3 = vld [vmem:[%s11743_s1 + $0xe0] sm:$0xff]  ;;  %v6156_v4 = vld [vmem:[%s11743_s1 + $0xe8] sm:$0xff]  ;;  %v6157_v5 = vld [vmem:[%s11743_s1 + $0xf0] sm:$0xff]  ;;  %v8893_v12 = vpack.c.bf16 %v6152_v63, %v6151_v61  ;;  %v8897_v15 = vpack.c.bf16 %v6154_v1, %v6153_v0 }
  0x4d   : > { %7784 = vmatprep.subr.bf16.mxu0 %v7783_v58  ;;  %v6158_v7 = vld [vmem:[%s11743_s1 + $0xf8] sm:$0xff]  ;;  %v8891_v10 = vsub.s32 %v515_v2, %v8865_v62  ;;  %vm782_vm4 = vmor %vm780_vm0, %vm781_vm1  ;;  %v8899_v16 = vpack.c.bf16 %v6156_v4, %v6155_v3  ;;  %v758_v59 = vld [vmem:[%s11743_s1] sm:$0xff] }
  0x4e   : > { %vm784_vm5 = vmor %vm782_vm4, %vm783_vm2  ;;  %v8911_v20 = vpack.c.bf16 %v6158_v7, %v6157_v5  ;;  %v473_v41 = vld [vmem:[%s8772_s28 + $0x18] sm:$0xff]  ;;  %v759_v60 = vld [vmem:[%s11743_s1 + $0x8] sm:$0xff] }
  0x4f   : > { %v470_v8 = vld [vmem:[%s8772_s28] sm:$0xff]  ;;  %v471_v9 = vld [vmem:[%s8772_s28 + $0x8] sm:$0xff]  ;;  %v8909_v19 = vld.sshfl [vmem:[%s8772_s28 + $0x10] sm:$0x33 pattern:$0x76325410]  ;;  %v553_v52 = vcombine.high %v473_v41, %v473_v41  ;;  %v8965_v53 = vrot.slane %v473_v41, %v8891_v10 }
  0x50   : > { %v512_v13 = vcombine.high %v470_v8, %v470_v8  ;;  %v529_v14 = vcombine.high %v471_v9, %v471_v9  ;;  %v8902_v17 = vrot.slane %v470_v8, %v8891_v10  ;;  %v8905_v18 = vrot.slane %v471_v9, %v8891_v10  ;;  %7786 = vmatpush3.bf16.msra.mxu0 %v7783_v58  ;;  %vm8935_vm6 = vmor %vm784_vm5, %vm785_vm3  ;;  %v760_v3 = vld [vmem:[%s11743_s1 + $0x10] sm:$0xff]  ;;  %v761_v4 = vld [vmem:[%s11743_s1 + $0x18] sm:$0xff] }
  0x51   : > { %v810_v23 = vrot.slane %v8909_v19, 7  ;;  %7788 = vmatprep.subr.bf16.mxu0 %v7787_v6  ;;  %v11887_v29 = vsel %vm8935_vm6, 4294967295, %v11886_v29  ;;  %v774_v36 = vcombine.high %v8909_v19, %v8909_v19  ;;  %v8979_v63 = vrot.slane %v553_v52, %v8891_v10  ;;  %v474_v7 = vld [vmem:[%s8772_s28 + $0x20] sm:$0xff] }
  0x52   : > { %v8914_v21 = vrot.slane %v512_v13, %v8891_v10  ;;  %v8917_v22 = vrot.slane %v529_v14, %v8891_v10  ;;  %v8922_v24 = vcombine.high %v8902_v17, %v8902_v17  ;;  %v6137_v25 = vrot.slane %v8902_v17, 9  ;;  %11888 = vst [vmem:[#allocation9_spill] sm:$0xff] %v11887_v29 }
  0x53   : > { %v798_v26 = vrot.slane %v8905_v18, 7  ;;  %v8928_v27 = vcombine.high %v8905_v18, %v8905_v18  ;;  %v8983_v0 = vcombine.high %v8965_v53, %v8965_v53  ;;  %v812_v5 = vrot.slane %v810_v23, 2 }
  0x54   : > { %v8932_v28 = vcombine.high %v8914_v21, %v8914_v21  ;;  %v792_v30 = vrot.slane %v8914_v21, 7  ;;  %v8942_v31 = vcombine.high %v8917_v22, %v8917_v22  ;;  %v804_v32 = vrot.slane %v8917_v22, 7  ;;  %7790 = vmatpush3.bf16.msra.mxu0 %v7787_v6 }
  0x55   : > { %v789_v33 = vrot.slane %v8922_v24, 7  ;;  %v800_v34 = vrot.slane %v798_v26, 2  ;;  %v801_v35 = vrot.slane %v8928_v27, 7  ;;  %7792 = vmatprep.subr.bf16.mxu0 %v7791_v11  ;;  %11889 = vst [vmem:[#allocation10_spill] sm:$0xff] %v8983_v0  ;;  %v813_v6 = vrot.slane %v774_v36, 7 }
  0x56   : > { %v794_v37 = vrot.slane %v792_v30, 2  ;;  %v795_v38 = vrot.slane %v8932_v28, 7  ;;  %v806_v39 = vrot.slane %v804_v32, 2  ;;  %v807_v40 = vrot.slane %v8942_v31, 7 }
  0x57   : > { %v790_v42 = vsel %vm8935_vm6, %v6137_v25, %v789_v33  ;;  %v791_v43 = vrot.slane %v789_v33, 2  ;;  %v802_v44 = vsel %vm8935_vm6, %v800_v34, %v801_v35  ;;  %v803_v45 = vrot.slane %v801_v35, 2 }
  0x58   : > { %v796_v46 = vsel %vm8935_vm6, %v794_v37, %v795_v38  ;;  %v797_v47 = vrot.slane %v795_v38, 2  ;;  %v808_v48 = vsel %vm8935_vm6, %v806_v39, %v807_v40  ;;  %v809_v49 = vrot.slane %v807_v40, 2  ;;  %7794 = vmatpush3.bf16.msra.mxu0 %v7791_v11  ;;  %v476_v38 = vld [vmem:[%s8772_s28 + $0x30] sm:$0xff] }
  0x59   : > { %v793_v50 = vsel %vm8935_vm6, %v791_v43, %v792_v30  ;;  %v805_v51 = vsel %vm8935_vm6, %v803_v45, %v804_v32  ;;  %7796 = vmatprep.subr.bf16.mxu0 %v8893_v12  ;;  %v9002_v11 = vcombine.high %v8979_v63, %v8979_v63  ;;  %v6138_v13 = vrot.slane %v8965_v53, 9 }
  0x5a   : > { %v799_v54 = vsel %vm8935_vm6, %v797_v47, %v798_v26  ;;  %v972_v55 = vcombine.low %v790_v42, %v793_v50  ;;  %v811_v56 = vsel %vm8935_vm6, %v809_v49, %v810_v23  ;;  %v989_v57 = vcombine.low %v802_v44, %v805_v51  ;;  %v9053_v49 = vld.sshfl [vmem:[%s8772_s28 + $0x28] sm:$0x33 pattern:$0x76325410] }
  0x5b   : > { %v973_v58 = vcombine.low %v796_v46, %v799_v54  ;;  %v990_v61 = vcombine.low %v808_v48, %v811_v56  ;;  %v9006_v14 = vpack.c.bf16 %v759_v60, %v758_v59  ;;  %v814_v23 = vsel %vm8935_vm6, %v812_v5, %v813_v6  ;;  %v762_v6 = vld [vmem:[%s11743_s1 + $0x20] sm:$0xff] }
  0x5c   : > { %v980_v1 = vrot.slane %v972_v55, %v8891_v10  ;;  %v8987_v2 = vrot.slane %v989_v57, %v8891_v10  ;;  %7798 = vmatpush3.bf16.msra.mxu0 %v8893_v12  ;;  %v817_v25 = vrot.slane %v8983_v0, 7  ;;  %v820_v26 = vrot.slane %v8979_v63, 7 }
  0x5d   : > { %v987_v8 = vrot.slane %v973_v58, %v8891_v10  ;;  %v8998_v9 = vrot.slane %v990_v61, %v8891_v10  ;;  %7800 = vmatprep.subr.bf16.mxu0 %v8897_v15  ;;  %v9013_v32 = vpack.c.bf16 %v761_v4, %v760_v3  ;;  %v823_v33 = vrot.slane %v9002_v11, 7 }
  0x5e   : > { %v570_v34 = vcombine.high %v474_v7, %v474_v7  ;;  %v9018_v12 = vsel %vm8935_vm6, %v6138_v13, %v817_v25  ;;  %v819_v35 = vrot.slane %v817_v25, 2  ;;  %v822_v36 = vrot.slane %v820_v26, 2 }
  0x5f   : > { %v988_v30 = vcombine.low %v980_v1, %v987_v8  ;;  %11890 = vst [vmem:[#allocation11_spill] sm:$0xff] %v9018_v12  ;;  %v9021_v37 = vrot.slane %v474_v7, %v8891_v10  ;;  %v1005_v39 = vcombine.low %v8987_v2, %v8998_v9  ;;  %v1006_v40 = vcombine.low %v814_v23, %v9018_v12  ;;  %v763_v7 = vld [vmem:[%s11743_s1 + $0x28] sm:$0xff] }
  0x60   : > { %v9028_v41 = vrot.slane %v570_v34, %v8891_v10  ;;  %v825_v42 = vrot.slane %v823_v33, 2  ;;  %7802 = vmatpush3.bf16.msra.mxu0 %v8897_v15  ;;  %v9033_v43 = vsel %vm8935_vm6, %v819_v35, %v820_v26  ;;  %v9037_v44 = vsel %vm8935_vm6, %v822_v36, %v823_v33  ;;  %v477_v34 = vld [vmem:[%s8772_s28 + $0x38] sm:$0xff] }
  0x61   : > { %6938 = vmatprep.mubr.f32.mxu0 %v988_v30  ;;  %11891 = vst [vmem:[#allocation12_spill] sm:$0xff] %v9033_v43  ;;  %11892 = vst [vmem:[#allocation13_spill] sm:$0xff] %v9037_v44  ;;  %v9041_v45 = vcombine.high %v9021_v37, %v9021_v37  ;;  %v826_v46 = vrot.slane %v9021_v37, 7  ;;  %7804 = vmatprep.subr.bf16.mxu0 %v8899_v16  ;;  %v1007_v47 = vcombine.low %v9033_v43, %v9037_v44  ;;  %v480_v30 = vld [vmem:[%s8772_s28 + $0x50] sm:$0xff] }
  0x62   : > { %v9049_v15 = vcombine.high %v9028_v41, %v9028_v41  ;;  %v832_v48 = vrot.slane %v9028_v41, 7  ;;  %v594_v50 = vcombine.high %v476_v38, %v476_v38  ;;  %v9061_v55 = vrot.slane %v476_v38, %v8891_v10 }
  0x63   : > { %v9057_v51 = vsel %vm8935_vm6, %v825_v42, %v826_v46  ;;  %v828_v52 = vrot.slane %v826_v46, 2  ;;  %v829_v54 = vrot.slane %v9041_v45, 7  ;;  %v1014_v56 = vrot.slane %v1006_v40, %v8891_v10 }
  0x64   : > { %11893 = vst [vmem:[#allocation14_spill] sm:$0xff] %v9057_v51  ;;  %11894 = vst [vmem:[#allocation15_spill] sm:$0xff] %v9061_v55  ;;  %v1021_v57 = vrot.slane %v1007_v47, %v8891_v10  ;;  %v834_v58 = vrot.slane %v832_v48, 2  ;;  %v835_v59 = vrot.slane %v9049_v15, 7  ;;  %7806 = vmatpush3.bf16.msra.mxu0 %v8899_v16  ;;  %v9073_v1 = vcombine.high %v9061_v55, %v9061_v55 }
  0x65   : > { %v9069_v60 = vsel %vm8935_vm6, %v828_v52, %v829_v54  ;;  %v831_v61 = vrot.slane %v829_v54, 2  ;;  %v9077_v2 = vcombine.high %v9053_v49, %v9053_v49  ;;  %7808 = vmatprep.subr.bf16.mxu0 %v8911_v20  ;;  %v9087_v4 = vrot.slane %v594_v50, %v8891_v10  ;;  %v765_v50 = vld [vmem:[%s11743_s1 + $0x38] sm:$0xff]  ;;  %v767_v54 = vld [vmem:[%s11743_s1 + $0x48] sm:$0xff] }
  0x66   : > { %11895 = vst [vmem:[#allocation16_spill] sm:$0xff] %v9069_v60  ;;  %v9082_v3 = vsel %vm8935_vm6, %v834_v58, %v835_v59  ;;  %v1023_v16 = vcombine.low %v9057_v51, %v9069_v60  ;;  %v837_v5 = vrot.slane %v835_v59, 2  ;;  %v838_v9 = vrot.slane %v9053_v49, 7 }
  0x67   : > { %11896 = vst [vmem:[#allocation17_spill] sm:$0xff] %v9077_v2  ;;  %11897 = vst [vmem:[#allocation18_spill] sm:$0xff] %v9082_v3  ;;  %v9097_v8 = vsel %vm8935_vm6, %v831_v61, %v832_v48  ;;  %v841_v13 = vrot.slane %v9077_v2, 7  ;;  %v6139_v23 = vrot.slane %v9061_v55, 9  ;;  %v845_v33 = vrot.slane %v9073_v1, 7 }
  0x68   : > { %11898 = vst [vmem:[#allocation19_spill] sm:$0xff] %v9097_v8  ;;  %v1024_v25 = vcombine.low %v9097_v8, %v9082_v3  ;;  %v1031_v26 = vrot.slane %v1023_v16, %v8891_v10  ;;  %7810 = vmatpush3.bf16.msra.mxu0 %v8911_v20  ;;  %v1022_v35 = vcombine.low %v1014_v56, %v1021_v57  ;;  %v840_v38 = vrot.slane %v838_v9, 2  ;;  %v764_v20 = vld [vmem:[%s11743_s1 + $0x30] sm:$0xff] }
  0x69   : > { %v9112_v36 = vsel %vm8935_vm6, %v837_v5, %v838_v9  ;;  %v848_v40 = vrot.slane %v9087_v4, 7  ;;  %7812 = vmatprep.subr.bf16.mxu0 %v9006_v14  ;;  %v7819_v42 = vpack.c.bf16 %v763_v7, %v762_v6  ;;  %v9119_v47 = vsel %vm8935_vm6, %v6139_v23, %v845_v33  ;;  %v479_v9 = vld [vmem:[%s8772_s28 + $0x48] sm:$0xff]  ;;  %v9327_v8 = vld.sshfl [vmem:[%s8772_s28 + $0x70] sm:$0x33 pattern:$0x76325410] }
  0x6a   : > { %11899 = vst [vmem:[#allocation20_spill] sm:$0xff] %v9112_v36  ;;  %v1038_v46 = vrot.slane %v1024_v25, %v8891_v10  ;;  %11900 = vst [vmem:[#allocation21_spill] sm:$0xff] %v9119_v47  ;;  %v847_v48 = vrot.slane %v845_v33, 2  ;;  %v9129_v52 = vsel %vm8935_vm6, %v840_v38, %v841_v13  ;;  %v9135_v56 = vcombine.high %v9087_v4, %v9087_v4 }
  0x6b   : > { %11901 = vst [vmem:[#allocation22_spill] sm:$0xff] %v9129_v52  ;;  %v611_v57 = vcombine.high %v477_v34, %v477_v34  ;;  %6939 = vmatmul.mubr.f32.vlgmr.msra.gmra.mrb[0].mxu0 %v1005_v39  ;;  %v1040_v61 = vcombine.low %v9112_v36, %v9129_v52  ;;  %v9144_v16 = vrot.slane %v477_v34, %v8891_v10  ;;  %v850_v7 = vrot.slane %v848_v40, 2  ;;  %v483_v36 = vld [vmem:[%s8772_s28 + $0x68] sm:$0xff] }
  0x6c   : > { %v1039_v58 = vcombine.low %v1031_v26, %v1038_v46  ;;  %v9139_v59 = vsel %vm8935_vm6, %v847_v48, %v848_v40  ;;  %7814 = vmatpush3.bf16.msra.mxu0 %v9006_v14  ;;  %6941 = vmatprep.mubr.f32.mxu0 %v1022_v35  ;;  %v7823_v6 = vpack.c.bf16 %v765_v50, %v764_v20  ;;  %v851_v14 = vrot.slane %v9135_v56, 7  ;;  %v9162_v26 = vld.sshfl [vmem:[%s8772_s28 + $0x40] sm:$0x33 pattern:$0x76325410] }
  0x6d   : > { %11902 = vst [vmem:[#allocation23_spill] sm:$0xff] %v9139_v59  ;;  %v1041_v5 = vcombine.low %v9119_v47, %v9139_v59  ;;  %v9150_v39 = vrot.slane %v611_v57, %v8891_v10  ;;  %7816 = vmatprep.subr.bf16.mxu0 %v9013_v32  ;;  %v1048_v13 = vrot.slane %v1040_v61, %v8891_v10  ;;  %v854_v25 = vrot.slane %v9144_v16, 7 }
  0x6e   : > { %v9157_v23 = vcombine.high %v9144_v16, %v9144_v16  ;;  %v9173_v38 = vrot.slane %v479_v9, %v8891_v10  ;;  %v9177_v40 = vsel %vm8935_vm6, %v850_v7, %v851_v14  ;;  %v853_v46 = vrot.slane %v851_v14, 2  ;;  %v766_v14 = vld [vmem:[%s11743_s1 + $0x40] sm:$0xff]  ;;  %11927 = vst [vmem:[#allocation48_spill] sm:$0xff] %v9327_v8 }
  0x6f   : > { %v9165_v33 = vrot.slane %v1041_v5, %v8891_v10  ;;  %v860_v34 = vrot.slane %v9150_v39, 7  ;;  %v9170_v35 = vcombine.high %v9150_v39, %v9150_v39  ;;  %6942 = vmatmul.mubr.f32.gmra.mrb[2].mxu0 %v1039_v58  ;;  %11904 = vst [vmem:[#allocation25_spill] sm:$0xff] %v9177_v40  ;;  %v856_v48 = vrot.slane %v854_v25, 2 }
  0x70   : > { %v857_v20 = vrot.slane %v9157_v23, 7  ;;  %7818 = vmatpush3.bf16.msra.mxu0 %v9013_v32  ;;  %v9184_v57 = vcombine.high %v9173_v38, %v9173_v38  ;;  %v9188_v58 = vcombine.high %v9162_v26, %v9162_v26  ;;  %v9192_v5 = vsel %vm8935_vm6, %v853_v46, %v854_v25 }
  0x71   : > { %11903 = vst [vmem:[#allocation24_spill] sm:$0xff] %v9165_v33  ;;  %v1056_v50 = vcombine.low %v1048_v13, %v9165_v33  ;;  %v862_v61 = vrot.slane %v860_v34, 2  ;;  %7820 = vmatprep.subr.bf16.mxu0 %v7819_v42  ;;  %11907 = vst [vmem:[#allocation28_spill] sm:$0xff] %v9192_v5  ;;  %v863_v13 = vrot.slane %v9170_v35, 7  ;;  %v1057_v25 = vcombine.low %v9177_v40, %v9192_v5 }
  0x72   : > { %11905 = vst [vmem:[#allocation26_spill] sm:$0xff] %v9184_v57  ;;  %11906 = vst [vmem:[#allocation27_spill] sm:$0xff] %v9188_v58  ;;  %v9196_v32 = vsel %vm8935_vm6, %v856_v48, %v857_v20  ;;  %v859_v7 = vrot.slane %v857_v20, 2  ;;  %v866_v46 = vrot.slane %v9162_v26, 7  ;;  %v869_v48 = vrot.slane %v9188_v58, 7 }
  0x73   : > { %11908 = vst [vmem:[#allocation29_spill] sm:$0xff] %v9196_v32  ;;  %6944 = vmatprep.mubr.f32.mxu0 %v1056_v50  ;;  %v6140_v20 = vrot.slane %v9173_v38, 9  ;;  %v9217_v33 = vsel %vm8935_vm6, %v862_v61, %v863_v13  ;;  %v865_v50 = vrot.slane %v863_v13, 2  ;;  %v873_v59 = vrot.slane %v9184_v57, 7 }
  0x74   : > { %v9213_v62 = vsel %vm8935_vm6, %v859_v7, %v860_v34  ;;  %11910 = vst [vmem:[#allocation31_spill] sm:$0xff] %v9217_v33  ;;  %7822 = vmatpush3.bf16.msra.mxu0 %v7819_v42  ;;  %v9223_v58 = vrot.slane %v1057_v25, %v8891_v10  ;;  %v868_v40 = vrot.slane %v866_v46, 2  ;;  %v7827_v52 = vpack.c.bf16 %v767_v54, %v766_v14  ;;  %v9237_v13 = vld.sshfl [vmem:[%s8772_s28 + $0x58] sm:$0x33 pattern:$0x76325410] }
  0x75   : > { %11909 = vst [vmem:[#allocation30_spill] sm:$0xff] %v9213_v62  ;;  %v1058_v5 = vcombine.low %v9196_v32, %v9213_v62  ;;  %7824 = vmatprep.subr.bf16.mxu0 %v7823_v6  ;;  %v9227_v34 = vsel %vm8935_vm6, %v865_v50, %v866_v46  ;;  %v9231_v61 = vsel %vm8935_vm6, %v6140_v20, %v873_v59  ;;  %11915 = vst [vmem:[#allocation36_spill] sm:$0xff] %v9237_v13 }
  0x76   : > { %11911 = vst [vmem:[#allocation32_spill] sm:$0xff] %v9223_v58  ;;  %11912 = vst [vmem:[#allocation33_spill] sm:$0xff] %v9227_v34  ;;  %v635_v7 = vcombine.high %v479_v9, %v479_v9  ;;  %v9234_v42 = vrot.slane %v480_v30, %v8891_v10  ;;  %v9244_v54 = vsel %vm8935_vm6, %v868_v40, %v869_v48  ;;  %v875_v46 = vrot.slane %v873_v59, 2 }
  0x77   : > { %11913 = vst [vmem:[#allocation34_spill] sm:$0xff] %v9231_v61  ;;  %v9240_v25 = vrot.slane %v1058_v5, %v8891_v10  ;;  %11917 = vst [vmem:[#allocation38_spill] sm:$0xff] %v9244_v54  ;;  %v1074_v14 = vcombine.low %v9217_v33, %v9227_v34  ;;  %v1075_v20 = vcombine.low %v9244_v54, %v9231_v61 }
  0x78   : > { %11914 = vst [vmem:[#allocation35_spill] sm:$0xff] %v9234_v42  ;;  %v9251_v9 = vrot.slane %v635_v7, %v8891_v10  ;;  %v9255_v50 = vcombine.high %v9234_v42, %v9234_v42  ;;  %v882_v5 = vrot.slane %v9234_v42, 7  ;;  %7826 = vmatpush3.bf16.msra.mxu0 %v7823_v6  ;;  %v652_v59 = vcombine.high %v480_v30, %v480_v30 }
  0x79   : > { %11916 = vst [vmem:[#allocation37_spill] sm:$0xff] %v9240_v25  ;;  %v1073_v40 = vcombine.low %v9223_v58, %v9240_v25  ;;  %v9261_v48 = vrot.slane %v1074_v14, %v8891_v10  ;;  %v9265_v61 = vcombine.high %v9237_v13, %v9237_v13  ;;  %v9268_v7 = vrot.slane %v1075_v20, %v8891_v10 }
  0x7a   : > { %7828 = vmatprep.subr.bf16.mxu0 %v7827_v52  ;;  %v9272_v34 = vcombine.high %v9251_v9, %v9251_v9  ;;  %v876_v54 = vrot.slane %v9251_v9, 7  ;;  %v884_v58 = vrot.slane %v882_v5, 2  ;;  %v885_v6 = vrot.slane %v9255_v50, 7 }
  0x7b   : > { %11918 = vst [vmem:[#allocation39_spill] sm:$0xff] %v9261_v48  ;;  %11919 = vst [vmem:[#allocation40_spill] sm:$0xff] %v9265_v61  ;;  %6945 = vmatmul.mubr.f32.gmra.mrb[4].mxu0 %v1073_v40  ;;  %v9279_v14 = vrot.slane %v652_v59, %v8891_v10  ;;  %v894_v20 = vrot.slane %v9237_v13, 7  ;;  %v1090_v62 = vcombine.low %v9261_v48, %v9268_v7 }
  0x7c   : > { %11920 = vst [vmem:[#allocation41_spill] sm:$0xff] %v9268_v7  ;;  %v9286_v33 = vsel %vm8935_vm6, %v875_v46, %v876_v54  ;;  %v878_v32 = vrot.slane %v876_v54, 2  ;;  %v879_v40 = vrot.slane %v9272_v34, 7  ;;  %v9291_v30 = vsel %vm8935_vm6, %v884_v58, %v885_v6  ;;  %7830 = vmatpush3.bf16.msra.mxu0 %v7827_v52  ;;  %v768_v46 = vld [vmem:[%s11743_s1 + $0x50] sm:$0xff]  ;;  %v769_v54 = vld [vmem:[%s11743_s1 + $0x58] sm:$0xff]  ;;  %v482_v58 = vld [vmem:[%s8772_s28 + $0x60] sm:$0xff] }
  0x7d   : > { %11921 = vst [vmem:[#allocation42_spill] sm:$0xff] %v9286_v33  ;;  %11922 = vst [vmem:[#allocation43_spill] sm:$0xff] %v9291_v30  ;;  %v9295_v59 = vcombine.high %v9279_v14, %v9279_v14  ;;  %v887_v25 = vrot.slane %v885_v6, 2  ;;  %v888_v47 = vrot.slane %v9279_v14, 7  ;;  %6947 = vmatprep.mubr.f32.mxu0 %v1090_v62  ;;  %v896_v6 = vrot.slane %v894_v20, 2 }
  0x7e   : > { %v9307_v52 = vsel %vm8935_vm6, %v878_v32, %v879_v40  ;;  %v881_v48 = vrot.slane %v879_v40, 2  ;;  %v897_v7 = vrot.slane %v9265_v61, 7  ;;  %v7831_v40 = vpack.c.bf16 %v769_v54, %v768_v46  ;;  %v485_v61 = vld [vmem:[%s8772_s28 + $0x78] sm:$0xff] }
  0x7f   : > { %11923 = vst [vmem:[#allocation44_spill] sm:$0xff] %v9307_v52  ;;  %v1091_v44 = vcombine.low %v9286_v33, %v9307_v52  ;;  %v9314_v51 = vsel %vm8935_vm6, %v887_v25, %v888_v47  ;;  %v890_v12 = vrot.slane %v888_v47, 2  ;;  %v891_v43 = vrot.slane %v9295_v59, 7 }
  0x80   : > { %11924 = vst [vmem:[#allocation45_spill] sm:$0xff] %v9314_v51  ;;  %v9319_v62 = vsel %vm8935_vm6, %v881_v48, %v882_v5  ;;  %v9323_v32 = vsel %vm8935_vm6, %v896_v6, %v897_v7  ;;  %v676_v3 = vcombine.high %v482_v58, %v482_v58  ;;  %7832 = vmatprep.subr.bf16.mxu0 %v7831_v40  ;;  %v922_v6 = vrot.slane %v9327_v8, 7 }
  0x81   : > { %11925 = vst [vmem:[#allocation46_spill] sm:$0xff] %v9319_v62  ;;  %11926 = vst [vmem:[#allocation47_spill] sm:$0xff] %v9323_v32  ;;  %v1092_v25 = vcombine.low %v9319_v62, %v9291_v30  ;;  %v9332_v47 = vrot.slane %v1091_v44, %v8891_v10  ;;  %v9336_v52 = vsel %vm8935_vm6, %v890_v12, %v891_v43  ;;  %v893_v5 = vrot.slane %v891_v43, 2 }
  0x82   : > { %11929 = vst [vmem:[#allocation50_spill] sm:$0xff] %v9336_v52  ;;  %v1108_v48 = vcombine.low %v9314_v51, %v9336_v52  ;;  %v9341_v7 = vrot.slane %v482_v58, %v8891_v10  ;;  %v9344_v46 = vrot.slane %v676_v3, %v8891_v10  ;;  %v9347_v54 = vrot.slane %v483_v36, %v8891_v10 }
  0x83   : > { %11928 = vst [vmem:[#allocation49_spill] sm:$0xff] %v9332_v47  ;;  %v9350_v44 = vrot.slane %v1092_v25, %v8891_v10  ;;  %v9354_v12 = vsel %vm8935_vm6, %v893_v5, %v894_v20  ;;  %7834 = vmatpush3.bf16.msra.mxu0 %v7831_v40  ;;  %v693_v43 = vcombine.high %v483_v36, %v483_v36  ;;  %v770_v36 = vld [vmem:[%s11743_s1 + $0x60] sm:$0xff]  ;;  %v771_v20 = vld [vmem:[%s11743_s1 + $0x68] sm:$0xff] }
  0x84   : > { %11930 = vst [vmem:[#allocation51_spill] sm:$0xff] %v9341_v7  ;;  %11931 = vst [vmem:[#allocation52_spill] sm:$0xff] %v9344_v46  ;;  %v1109_v58 = vcombine.low %v9354_v12, %v9323_v32  ;;  %v9360_v3 = vrot.slane %v1108_v48, %v8891_v10  ;;  %v9364_v52 = vcombine.high %v9341_v7, %v9341_v7  ;;  %v6141_v5 = vrot.slane %v9341_v7, 9 }
  0x85   : > { %11932 = vst [vmem:[#allocation53_spill] sm:$0xff] %v9350_v44  ;;  %11933 = vst [vmem:[#allocation54_spill] sm:$0xff] %v9354_v12  ;;  %v9368_v25 = vcombine.high %v9344_v46, %v9344_v46  ;;  %v1107_v40 = vcombine.low %v9332_v47, %v9350_v44  ;;  %v904_v48 = vrot.slane %v9344_v46, 7  ;;  %v910_v32 = vrot.slane %v9347_v54, 7 }
  0x86   : > { %11934 = vst [vmem:[#allocation55_spill] sm:$0xff] %v9360_v3  ;;  %v9382_v12 = vrot.slane %v1109_v58, %v8891_v10  ;;  %v901_v30 = vrot.slane %v9364_v52, 7  ;;  %v9387_v62 = vrot.slane %v693_v43, %v8891_v10  ;;  %v9391_v44 = vcombine.high %v9347_v54, %v9347_v54 }
  0x87   : > { %11935 = vst [vmem:[#allocation56_spill] sm:$0xff] %v9368_v25  ;;  %v907_v51 = vrot.slane %v9368_v25, 7  ;;  %6948 = vmatmul.mubr.f32.gmra.mrb[6].mxu0 %v1107_v40  ;;  %v906_v33 = vrot.slane %v904_v48, 2  ;;  %v912_v47 = vrot.slane %v910_v32, 2  ;;  %v7835_v60 = vpack.c.bf16 %v771_v20, %v770_v36 }
  0x88   : > { %11936 = vst [vmem:[#allocation57_spill] sm:$0xff] %v9382_v12  ;;  %v1124_v58 = vcombine.low %v9360_v3, %v9382_v12  ;;  %v9398_v2 = vsel %vm8935_vm6, %v6141_v5, %v901_v30  ;;  %v903_v46 = vrot.slane %v901_v30, 2  ;;  %v9406_v40 = vcombine.high %v9387_v62, %v9387_v62 }
  0x89   : > { %11937 = vst [vmem:[#allocation58_spill] sm:$0xff] %v9398_v2  ;;  %v909_v25 = vrot.slane %v907_v51, 2  ;;  %v9402_v43 = vsel %vm8935_vm6, %v906_v33, %v907_v51  ;;  %v913_v36 = vrot.slane %v9391_v44, 7  ;;  %v916_v20 = vrot.slane %v9387_v62, 7  ;;  %7836 = vmatprep.subr.bf16.mxu0 %v7835_v60 }
  0x8a   : > { %11938 = vst [vmem:[#allocation59_spill] sm:$0xff] %v9402_v43  ;;  %11939 = vst [vmem:[#allocation60_spill] sm:$0xff] %v9406_v40  ;;  %6950 = vmatprep.mubr.f32.mxu0 %v1124_v58  ;;  %v9412_v5 = vsel %vm8935_vm6, %v903_v46, %v904_v48  ;;  %v717_v51 = vcombine.high %v485_v61, %v485_v61  ;;  %v9419_v33 = vrot.slane %v485_v61, %v8891_v10 }
  0x8b   : > { %11940 = vst [vmem:[#allocation61_spill] sm:$0xff] %v9412_v5  ;;  %v9416_v30 = vsel %vm8935_vm6, %v909_v25, %v910_v32  ;;  %v1125_v12 = vcombine.low %v9398_v2, %v9412_v5  ;;  %v9427_v58 = vsel %vm8935_vm6, %v912_v47, %v913_v36  ;;  %v915_v46 = vrot.slane %v913_v36, 2  ;;  %7838 = vmatpush3.bf16.msra.mxu0 %v7835_v60 }
  0x8c   : > { %11941 = vst [vmem:[#allocation62_spill] sm:$0xff] %v9416_v30  ;;  %11942 = vst [vmem:[#allocation63_spill] sm:$0xff] %v9419_v33  ;;  %v1126_v3 = vcombine.low %v9402_v43, %v9416_v30  ;;  %v918_v48 = vrot.slane %v916_v20, 2  ;;  %v919_v32 = vrot.slane %v9406_v40, 7  ;;  %v9431_v25 = vrot.slane %v717_v51, %v8891_v10  ;;  %v486_v43 = vld [vmem:[%s8772_s28 + $0x80] sm:$0xff] }
  0x8d   : > { %11943 = vst [vmem:[#allocation64_spill] sm:$0xff] %v9427_v58  ;;  %v9435_v61 = vcombine.high %v9419_v33, %v9419_v33  ;;  %v9438_v5 = vrot.slane %v1125_v12, %v8891_v10  ;;  %v9445_v47 = vsel %vm8935_vm6, %v915_v46, %v916_v20  ;;  %v9449_v60 = vcombine.high %v9327_v8, %v9327_v8 }
  0x8e   : > { %11944 = vst [vmem:[#allocation65_spill] sm:$0xff] %v9431_v25  ;;  %v9441_v30 = vrot.slane %v1126_v3, %v8891_v10  ;;  %11948 = vst [vmem:[#allocation69_spill] sm:$0xff] %v9445_v47  ;;  %v9453_v36 = vsel %vm8935_vm6, %v918_v48, %v919_v32  ;;  %v921_v51 = vrot.slane %v919_v32, 2  ;;  %v1142_v12 = vcombine.low %v9427_v58, %v9445_v47 }
  0x8f   : > { %11945 = vst [vmem:[#allocation66_spill] sm:$0xff] %v9435_v61  ;;  %11946 = vst [vmem:[#allocation67_spill] sm:$0xff] %v9438_v5  ;;  %v9459_v3 = vcombine.high %v9431_v25, %v9431_v25  ;;  %v924_v46 = vrot.slane %v922_v6, 2  ;;  %v925_v2 = vrot.slane %v9449_v60, 7  ;;  %v6142_v8 = vrot.slane %v9419_v33, 9 }
  0x90   : > { %11947 = vst [vmem:[#allocation68_spill] sm:$0xff] %v9441_v30  ;;  %11949 = vst [vmem:[#allocation70_spill] sm:$0xff] %v9449_v60  ;;  %v1141_v20 = vcombine.low %v9438_v5, %v9441_v30  ;;  %v9468_v48 = vsel %vm8935_vm6, %v921_v51, %v922_v6  ;;  %v9471_v32 = vrot.slane %v1142_v12, %v8891_v10  ;;  %v929_v47 = vrot.slane %v9435_v61, 7 }
  0x91   : > { %11950 = vst [vmem:[#allocation71_spill] sm:$0xff] %v9453_v36  ;;  %11951 = vst [vmem:[#allocation72_spill] sm:$0xff] %v9459_v3  ;;  %v932_v58 = vrot.slane %v9431_v25, 7  ;;  %v1143_v30 = vcombine.low %v9453_v36, %v9468_v48  ;;  %v9479_v5 = vsel %vm8935_vm6, %v924_v46, %v925_v2  ;;  %v935_v60 = vrot.slane %v9459_v3, 7 }
  0x92   : > { %11952 = vst [vmem:[#allocation73_spill] sm:$0xff] %v9468_v48  ;;  %11953 = vst [vmem:[#allocation74_spill] sm:$0xff] %v9471_v32  ;;  %6951 = vmatmul.mubr.f32.gmra.mrb[8].mxu0 %v1141_v20  ;;  %v734_v6 = vcombine.high %v486_v43, %v486_v43  ;;  %v9484_v51 = vsel %vm8935_vm6, %v6142_v8, %v929_v47  ;;  %v931_v12 = vrot.slane %v929_v47, 2  ;;  %v772_v8 = vld [vmem:[%s11743_s1 + $0x70] sm:$0xff] }
  0x93   : > { %11954 = vst [vmem:[#allocation75_spill] sm:$0xff] %v9479_v5  ;;  %11955 = vst [vmem:[#allocation76_spill] sm:$0xff] %v9484_v51  ;;  %v934_v61 = vrot.slane %v932_v58, 2  ;;  %v9487_v25 = vrot.slane %v486_v43, %v8891_v10  ;;  %v9490_v20 = vrot.slane %v1143_v30, %v8891_v10  ;;  %v1159_v2 = vcombine.low %v9479_v5, %v9484_v51  ;;  %v773_v51 = vld [vmem:[%s11743_s1 + $0x78] sm:$0xff] }
  0x94   : > { %v9495_v46 = vrot.slane %v734_v6, %v8891_v10  ;;  %v937_v48 = vrot.slane %v935_v60, 2  ;;  %v9502_v47 = vsel %vm8935_vm6, %v931_v12, %v932_v58  ;;  %v9517_v5 = vld.sshfl [vmem:[%s8772_s28 + $0x88] sm:$0x33 pattern:$0x76325410] }
  0x95   : > { %11956 = vst [vmem:[#allocation77_spill] sm:$0xff] %v9487_v25  ;;  %11957 = vst [vmem:[#allocation78_spill] sm:$0xff] %v9490_v20  ;;  %v9506_v43 = vsel %vm8935_vm6, %v934_v61, %v935_v60  ;;  %v9510_v30 = vcombine.high %v9487_v25, %v9487_v25  ;;  %v938_v6 = vrot.slane %v9487_v25, 7  ;;  %v1158_v58 = vcombine.low %v9471_v32, %v9490_v20 }
  0x96   : > { %11958 = vst [vmem:[#allocation79_spill] sm:$0xff] %v9502_v47  ;;  %11959 = vst [vmem:[#allocation80_spill] sm:$0xff] %v9506_v43  ;;  %v1160_v12 = vcombine.low %v9502_v47, %v9506_v43  ;;  %v9524_v61 = vrot.slane %v1159_v2, %v8891_v10  ;;  %v9528_v60 = vcombine.high %v9495_v46, %v9495_v46  ;;  %v944_v33 = vrot.slane %v9495_v46, 7 }
  0x97   : > { %11960 = vst [vmem:[#allocation81_spill] sm:$0xff] %v9510_v30  ;;  %v9532_v36 = vsel %vm8935_vm6, %v937_v48, %v938_v6  ;;  %v940_v3 = vrot.slane %v938_v6, 2  ;;  %v941_v25 = vrot.slane %v9510_v30, 7  ;;  %6953 = vmatprep.mubr.f32.mxu0 %v1158_v58  ;;  %v7839_v32 = vpack.c.bf16 %v773_v51, %v772_v8 }
  0x98   : > { %11961 = vst [vmem:[#allocation82_spill] sm:$0xff] %v9524_v61  ;;  %11962 = vst [vmem:[#allocation83_spill] sm:$0xff] %v9528_v60  ;;  %v9537_v20 = vrot.slane %v1160_v12, %v8891_v10  ;;  %v947_v2 = vrot.slane %v9528_v60, 7  ;;  %v9542_v43 = vcombine.high %v9517_v5, %v9517_v5  ;;  %v946_v47 = vrot.slane %v944_v33, 2  ;;  %v6159_v60 = vld [vmem:[%s11743_s1 + $0x100] sm:$0xff] }
  0x99   : > { %11963 = vst [vmem:[#allocation84_spill] sm:$0xff] %v9532_v36  ;;  %v9546_v48 = vsel %vm8935_vm6, %v940_v3, %v941_v25  ;;  %v943_v6 = vrot.slane %v941_v25, 2  ;;  %v950_v30 = vrot.slane %v9517_v5, 7  ;;  %7840 = vmatprep.subr.bf16.mxu0 %v7839_v32  ;;  %v6160_v25 = vld [vmem:[%s11743_s1 + $0x108] sm:$0xff] }
  0x9a   : > { %11964 = vst [vmem:[#allocation85_spill] sm:$0xff] %v9537_v20  ;;  %11965 = vst [vmem:[#allocation86_spill] sm:$0xff] %v9542_v43  ;;  %v1175_v58 = vcombine.low %v9524_v61, %v9537_v20  ;;  %v1176_v12 = vcombine.low %v9532_v36, %v9546_v48  ;;  %v949_v51 = vrot.slane %v947_v2, 2  ;;  %v953_v8 = vrot.slane %v9542_v43, 7  ;;  %7842 = vmatpush3.bf16.msra.mxu0 %v7839_v32 }
  0x9b   : > { %11966 = vst [vmem:[#allocation87_spill] sm:$0xff] %v9546_v48  ;;  %v9562_v3 = vsel %vm8935_vm6, %v943_v6, %v944_v33  ;;  %v9566_v20 = vsel %vm8935_vm6, %v946_v47, %v947_v2  ;;  %v952_v61 = vrot.slane %v950_v30, 2  ;;  %v1350_v48 = vcombine.low %v8902_v17, %v8922_v24 }
  0x9c   : > { %11967 = vst [vmem:[#allocation88_spill] sm:$0xff] %v9562_v3  ;;  %11968 = vst [vmem:[#allocation89_spill] sm:$0xff] %v9566_v20  ;;  %6954 = vmatmul.mubr.f32.gmra.mrb[10].mxu0 %v1175_v58  ;;  %v1177_v36 = vcombine.low %v9562_v3, %v9566_v20  ;;  %v9573_v43 = vrot.slane %v1176_v12, %v8891_v10  ;;  %v9577_v33 = vsel %vm8935_vm6, %v949_v51, %v950_v30 }
  0x9d   : > { %11970 = vst [vmem:[#allocation91_spill] sm:$0xff] %v9577_v33  ;;  %v1351_v47 = vcombine.low %v8914_v21, %v8932_v28  ;;  %v9583_v32 = vsel %vm8935_vm6, %v952_v61, %v953_v8  ;;  %v1358_v17 = vrot.slane %v1350_v48, %v8891_v10  ;;  %v7843_v2 = vpack.c.bf16 %v6160_v25, %v6159_v60 }
  0x9e   : > { %11969 = vst [vmem:[#allocation90_spill] sm:$0xff] %v9573_v43  ;;  %11971 = vst [vmem:[#allocation92_spill] sm:$0xff] %v9583_v32  ;;  %v1367_v6 = vcombine.low %v8905_v18, %v8928_v27  ;;  %v9589_v58 = vrot.slane %v1177_v36, %v8891_v10  ;;  %v1193_v30 = vcombine.low %v9577_v33, %v9583_v32  ;;  %v6161_v33 = vld [vmem:[%s11743_s1 + $0x110] sm:$0xff] }
  0x9f   : > { %v1365_v12 = vrot.slane %v1351_v47, %v8891_v10  ;;  %v1368_v51 = vcombine.low %v8917_v22, %v8942_v31  ;;  %7844 = vmatprep.subr.bf16.mxu0 %v7843_v2  ;;  %v1384_v60 = vcombine.low %v8909_v19, %v8965_v53  ;;  %v1385_v48 = vcombine.low %v8983_v0, %v8979_v63 }
  0xa0   : > { %11972 = vst [vmem:[#allocation93_spill] sm:$0xff] %v9589_v58  ;;  %v1375_v61 = vrot.slane %v1367_v6, %v8891_v10  ;;  %v1192_v36 = vcombine.low %v9573_v43, %v9589_v58  ;;  %v9604_v8 = vrot.slane %v1193_v30, %v8891_v10  ;;  %v1401_v6 = vcombine.low %v9002_v11, %v9021_v37  ;;  %v6162_v30 = vld [vmem:[%s11743_s1 + $0x118] sm:$0xff] }
  0xa1   : > { %v1366_v25 = vcombine.low %v1358_v17, %v1365_v12  ;;  %v1382_v47 = vrot.slane %v1368_v51, %v8891_v10  ;;  %v1392_v32 = vrot.slane %v1384_v60, %v8891_v10  ;;  %v9609_v20 = vrot.slane %v1385_v48, %v8891_v10 }
  0xa2   : > { %11973 = vst [vmem:[#allocation94_spill] sm:$0xff] %v9604_v8  ;;  %6956 = vmatprep.mubr.f32.mxu0 %v1192_v36  ;;  %v1402_v17 = vcombine.low %v9041_v45, %v9028_v41  ;;  %v1418_v12 = vcombine.low %v9049_v15, %v9053_v49  ;;  %v1419_v51 = vcombine.low %v9061_v55, %v9073_v1 }
  0xa3   : > { %11974 = vst [vmem:[#allocation95_spill] sm:$0xff] %v9609_v20  ;;  %6957 = vmatmul.mubr.f32.gmra.mrb[12].mxu0 %v9604_v8  ;;  %v1383_v60 = vcombine.low %v1375_v61, %v1382_v47  ;;  %v1400_v48 = vcombine.low %v1392_v32, %v9609_v20  ;;  %v9628_v36 = vrot.slane %v1401_v6, %v8891_v10 }
  0xa4   : > { %v1435_v58 = vcombine.low %v9087_v4, %v9135_v56  ;;  %6991 = vmatprep.mubr.f32.mxu0 %v1366_v25  ;;  %v9633_v43 = vrot.slane %v1402_v17, %v8891_v10  ;;  %v9636_v3 = vrot.slane %v1418_v12, %v8891_v10  ;;  %v9639_v29 = vrot.slane %v1419_v51, %v8891_v10  ;;  %v6163_v25 = vld [vmem:[%s11743_s1 + $0x120] sm:$0xff]  ;;  %v6164_v17 = vld [vmem:[%s11743_s1 + $0x128] sm:$0xff] }
  0xa5   : > { %11975 = vst [vmem:[#allocation96_spill] sm:$0xff] %v9628_v36  ;;  %v1436_v61 = vcombine.low %v9144_v16, %v9157_v23  ;;  %v7847_v32 = vpack.c.bf16 %v6162_v30, %v6161_v33  ;;  %v1452_v47 = vcombine.low %v9150_v39, %v9170_v35  ;;  %v1453_v6 = vcombine.low %v9162_v26, %v9173_v38 }
  0xa6   : > { %11976 = vst [vmem:[#allocation97_spill] sm:$0xff] %v9633_v43  ;;  %11977 = vst [vmem:[#allocation98_spill] sm:$0xff] %v9636_v3  ;;  %v1417_v12 = vcombine.low %v9628_v36, %v9633_v43  ;;  %v1434_v33 = vcombine.low %v9636_v3, %v9639_v29  ;;  %v9660_v51 = vrot.slane %v1435_v58, %v8891_v10  ;;  %v11985_v3 = vld [vmem:[#allocation56_spill] sm:$0xff] }
  0xa7   : > { %11978 = vst [vmem:[#allocation99_spill] sm:$0xff] %v9639_v29  ;;  %6992 = vmatmul.mubr.f32.vlgmr.msra.gmra.mrb[0].mxu0 %v1383_v60  ;;  %v9663_v8 = vrot.slane %v1436_v61, %v8891_v10  ;;  %v9666_v20 = vrot.slane %v1452_v47, %v8891_v10  ;;  %v1469_v55 = vcombine.low %v9184_v57, %v9251_v9  ;;  %v6165_v47 = vld [vmem:[%s11743_s1 + $0x130] sm:$0xff] }
  0xa8   : > { %11979 = vst [vmem:[#allocation100_spill] sm:$0xff] %v9660_v51  ;;  %v1470_v36 = vcombine.low %v9272_v34, %v9234_v42  ;;  %7846 = vmatpush3.bf16.msra.mxu0 %v7843_v2  ;;  %6994 = vmatprep.mubr.f32.mxu0 %v1400_v48  ;;  %v9673_v30 = vrot.slane %v1453_v6, %v8891_v10  ;;  %v6166_v2 = vld [vmem:[%s11743_s1 + $0x138] sm:$0xff]  ;;  %v11986_v43 = vld [vmem:[#allocation52_spill] sm:$0xff] }
  0xa9   : > { %11980 = vst [vmem:[#allocation101_spill] sm:$0xff] %v9663_v8  ;;  %11981 = vst [vmem:[#allocation102_spill] sm:$0xff] %v9666_v20  ;;  %v1486_v58 = vcombine.low %v9255_v50, %v9279_v14  ;;  %v1487_v60 = vcombine.low %v9295_v59, %v9237_v13  ;;  %7848 = vmatprep.subr.bf16.mxu0 %v7847_v32  ;;  %v7851_v61 = vpack.c.bf16 %v6164_v17, %v6163_v25  ;;  %v11993_v13 = vld [vmem:[#allocation66_spill] sm:$0xff] }
  0xaa   : > { %11982 = vst [vmem:[#allocation103_spill] sm:$0xff] %v9673_v30  ;;  %v9686_v48 = vrot.slane %v1469_v55, %v8891_v10  ;;  %v9689_v6 = vrot.slane %v1470_v36, %v8891_v10  ;;  %v1503_v29 = vcombine.low %v9341_v7, %v9364_v52  ;;  %v1504_v25 = vcombine.low %v11986_v43, %v11985_v3 }
  0xab   : > { %6995 = vmatmul.mubr.f32.gmra.mrb[2].mxu0 %v1417_v12  ;;  %v1451_v17 = vcombine.low %v9660_v51, %v9663_v8  ;;  %v1520_v57 = vcombine.low %v9347_v54, %v9391_v44  ;;  %v1521_v55 = vcombine.low %v9387_v62, %v9406_v40  ;;  %v1468_v36 = vcombine.low %v9666_v20, %v9673_v30  ;;  %v6167_v8 = vld [vmem:[%s11743_s1 + $0x140] sm:$0xff]  ;;  %v11991_v20 = vld [vmem:[#allocation48_spill] sm:$0xff]  ;;  %v11992_v40 = vld [vmem:[#allocation65_spill] sm:$0xff] }
  0xac   : > { %11983 = vst [vmem:[#allocation104_spill] sm:$0xff] %v9686_v48  ;;  %11984 = vst [vmem:[#allocation105_spill] sm:$0xff] %v9689_v6  ;;  %7850 = vmatpush3.bf16.msra.mxu0 %v7847_v32  ;;  %6997 = vmatprep.mubr.f32.mxu0 %v1434_v33  ;;  %v9704_v7 = vrot.slane %v1486_v58, %v8891_v10  ;;  %v9707_v0 = vrot.slane %v1487_v60, %v8891_v10  ;;  %v6168_v32 = vld [vmem:[%s11743_s1 + $0x148] sm:$0xff] }
  0xad   : > { %7852 = vmatprep.subr.bf16.mxu0 %v7851_v61  ;;  %v7855_v12 = vpack.c.bf16 %v6166_v2, %v6165_v47  ;;  %v1485_v33 = vcombine.low %v9686_v48, %v9689_v6  ;;  %v9718_v30 = vrot.slane %v1503_v29, %v8891_v10  ;;  %v9721_v58 = vrot.slane %v1504_v25, %v8891_v10  ;;  %v11990_v2 = vld [vmem:[#allocation63_spill] sm:$0xff]  ;;  %v11994_v48 = vld [vmem:[#allocation77_spill] sm:$0xff]  ;;  %v11995_v6 = vld [vmem:[#allocation72_spill] sm:$0xff] }
  0xae   : > { %11987 = vst [vmem:[#allocation56_spill] sm:$0xff] %v9704_v7  ;;  %11988 = vst [vmem:[#allocation52_spill] sm:$0xff] %v9707_v0  ;;  %v9724_v60 = vrot.slane %v1520_v57, %v8891_v10  ;;  %v9727_v47 = vrot.slane %v1521_v55, %v8891_v10  ;;  %v1537_v51 = vcombine.low %v11991_v20, %v11990_v2  ;;  %v11996_v57 = vld [vmem:[#allocation81_spill] sm:$0xff]  ;;  %v6169_v20 = vld [vmem:[%s11743_s1 + $0x150] sm:$0xff] }
  0xaf   : > { %11989 = vst [vmem:[#allocation106_spill] sm:$0xff] %v9718_v30  ;;  %6998 = vmatmul.mubr.f32.gmra.mrb[4].mxu0 %v1451_v17  ;;  %v1538_v42 = vcombine.low %v11993_v13, %v11992_v40  ;;  %v1554_v29 = vcombine.low %v11995_v6, %v11994_v48  ;;  %v1502_v25 = vcombine.low %v9704_v7, %v9707_v0  ;;  %v6170_v2 = vld [vmem:[%s11743_s1 + $0x158] sm:$0xff] }
  0xb0   : > { %7854 = vmatpush3.bf16.msra.mxu0 %v7851_v61  ;;  %7000 = vmatprep.mubr.f32.mxu0 %v1468_v36  ;;  %v1555_v17 = vcombine.low %v11996_v57, %v9495_v46  ;;  %v7859_v55 = vpack.c.bf16 %v6168_v32, %v6167_v8  ;;  %v1519_v61 = vcombine.low %v9718_v30, %v9721_v58 }
  0xb1   : > { %7856 = vmatprep.subr.bf16.mxu0 %v7855_v12  ;;  %v1536_v36 = vcombine.low %v9724_v60, %v9727_v47  ;;  %v9750_v0 = vrot.slane %v1537_v51, %v8891_v10  ;;  %v9753_v8 = vrot.slane %v1538_v42, %v8891_v10  ;;  %v9756_v32 = vrot.slane %v1554_v29, %v8891_v10  ;;  %v6171_v42 = vld [vmem:[%s11743_s1 + $0x160] sm:$0xff] }
  0xb2   : > { %v9759_v7 = vrot.slane %v1555_v17, %v8891_v10  ;;  %v1746_v30 = vcombine.low %v8932_v28, %v8905_v18  ;;  %v7863_v51 = vpack.c.bf16 %v6170_v2, %v6169_v20  ;;  %v1831_v2 = vcombine.low %v9157_v23, %v9150_v39 }
  0xb3   : > { %7001 = vmatmul.mubr.f32.gmra.mrb[6].mxu0 %v1485_v33  ;;  %v1745_v33 = vcombine.low %v8922_v24, %v8914_v21  ;;  %v1553_v29 = vcombine.low %v9750_v0, %v9753_v8  ;;  %v1847_v17 = vcombine.low %v9170_v35, %v9162_v26  ;;  %v6175_v39 = vcombine.high %v8909_v19, %v8965_v53 }
  0xb4   : > { %7858 = vmatpush3.bf16.msra.mxu0 %v7855_v12  ;;  %7003 = vmatprep.mubr.f32.mxu0 %v1502_v25  ;;  %v6172_v12 = vld [vmem:[%s11743_s1 + $0x168] sm:$0xff]  ;;  %v1570_v18 = vcombine.low %v9756_v32, %v9759_v7  ;;  %v1760_v28 = vrot.slane %v1746_v30, %v8891_v10  ;;  %v1763_v30 = vcombine.low %v8942_v31, %v8909_v19 }
  0xb5   : > { %7860 = vmatprep.subr.bf16.mxu0 %v7859_v55  ;;  %v11997_v25 = vld [vmem:[#allocation83_spill] sm:$0xff]  ;;  %v1753_v24 = vrot.slane %v1745_v33, %v8891_v10  ;;  %v7867_v20 = vpack.c.bf16 %v6172_v12, %v6171_v42  ;;  %v1864_v23 = vcombine.low %v9251_v9, %v9272_v34  ;;  %v9801_v33 = vrot.slane %v1831_v2, %v8891_v10  ;;  %v6179_v9 = vld [vmem:[%s11743_s1 + $0x180] sm:$0xff] }
  0xb6   : > { %v1571_v21 = vcombine.low %v11997_v25, %v9517_v5  ;;  %v9804_v42 = vrot.slane %v1847_v17, %v8891_v10  ;;  %v1881_v19 = vcombine.low %v9279_v14, %v9295_v59  ;;  %v1898_v14 = vcombine.low %v9364_v52, %v11986_v43  ;;  %v11999_v52 = vld [vmem:[#allocation17_spill] sm:$0xff] }
  0xb7   : > { %7004 = vmatmul.mubr.f32.gmra.mrb[8].mxu0 %v1519_v61  ;;  %v6174_v61 = vld [vmem:[%s11743_s1 + $0x178] sm:$0xff]  ;;  %v1796_v59 = vcombine.low %v9021_v37, %v9041_v45  ;;  %v1813_v43 = vcombine.low %v9053_v49, %v11999_v52  ;;  %v1814_v37 = vcombine.low %v9073_v1, %v9087_v4  ;;  %v1830_v4 = vcombine.low %v9135_v56, %v9144_v16  ;;  %v6184_v56 = vld [vmem:[%s11743_s1 + $0x1a8] sm:$0xff]  ;;  %v12005_v52 = vld [vmem:[#allocation48_spill] sm:$0xff] }
  0xb8   : > { %7862 = vmatpush3.bf16.msra.mxu0 %v7859_v55  ;;  %7006 = vmatprep.mubr.f32.mxu0 %v1536_v36  ;;  %v6173_v55 = vld [vmem:[%s11743_s1 + $0x170] sm:$0xff]  ;;  %v1762_v36 = vcombine.low %v8928_v27, %v8917_v22  ;;  %v9798_v35 = vrot.slane %v1571_v21, %v8891_v10  ;;  %11998 = vst [vmem:[#allocation65_spill] sm:$0xff] %v9804_v42  ;;  %v12000_v16 = vld [vmem:[#allocation35_spill] sm:$0xff] }
  0xb9   : > { %7864 = vmatprep.subr.bf16.mxu0 %v7863_v51  ;;  %v1761_v22 = vcombine.low %v1753_v24, %v1760_v28  ;;  %v1780_v27 = vcombine.low %v8979_v63, %v9002_v11  ;;  %v7871_v31 = vpack.c.bf16 %v6174_v61, %v6173_v55  ;;  %v1777_v63 = vrot.slane %v1763_v30, %v8891_v10  ;;  %v6183_v55 = vld [vmem:[%s11743_s1 + $0x1a0] sm:$0xff] }
  0xba   : > { %v1770_v12 = vrot.slane %v1762_v36, %v8891_v10  ;;  %v1787_v11 = vrot.slane %v6175_v39, %v8891_v10  ;;  %v1899_v21 = vcombine.low %v11985_v3, %v9347_v54  ;;  %v1949_v54 = vcombine.low %v11994_v48, %v11996_v57  ;;  %v12024_v57 = vld [vmem:[#allocation86_spill] sm:$0xff] }
  0xbb   : > { %7007 = vmatmul.mubr.f32.gmra.mrb[10].mxu0 %v1553_v29  ;;  %v1797_v29 = vcombine.low %v9028_v41, %v9049_v15  ;;  %v9833_v24 = vrot.slane %v1780_v27, %v8891_v10  ;;  %v6181_v41 = vld [vmem:[%s11743_s1 + $0x190] sm:$0xff]  ;;  %v6182_v15 = vld [vmem:[%s11743_s1 + $0x198] sm:$0xff]  ;;  %v1821_v28 = vrot.slane %v1813_v43, %v8891_v10  ;;  %v6176_v2 = vcombine.high %v9162_v26, %v9173_v38 }
  0xbc   : > { %7866 = vmatpush3.bf16.msra.mxu0 %v7863_v51  ;;  %7009 = vmatprep.mubr.f32.mxu0 %v1570_v18  ;;  %v6180_v51 = vld [vmem:[%s11743_s1 + $0x188] sm:$0xff]  ;;  %v1915_v18 = vcombine.low %v9391_v44, %v9387_v62  ;;  %v1933_v62 = vcombine.low %v11992_v40, %v11995_v6  ;;  %v1778_v49 = vcombine.low %v1770_v12, %v1777_v63  ;;  %v12002_v27 = vld [vmem:[#allocation36_spill] sm:$0xff]  ;;  %v6186_v63 = vld [vmem:[%s11743_s1 + $0x1b8] sm:$0xff] }
  0xbd   : > { %7868 = vmatprep.subr.bf16.mxu0 %v7867_v20  ;;  %v7875_v45 = vpack.c.bf16 %v6180_v51, %v6179_v9  ;;  %v1804_v44 = vrot.slane %v1796_v59, %v8891_v10  ;;  %v1811_v1 = vrot.slane %v1797_v29, %v8891_v10  ;;  %v1795_v3 = vcombine.low %v1787_v11, %v9833_v24  ;;  %v6185_v12 = vld [vmem:[%s11743_s1 + $0x1b0] sm:$0xff]  ;;  %v6191_v40 = vld [vmem:[%s11743_s1 + $0x1e0] sm:$0xff]  ;;  %v6192_v6 = vld [vmem:[%s11743_s1 + $0x1e8] sm:$0xff] }
  0xbe   : > { %v7879_v17 = vpack.c.bf16 %v6182_v15, %v6181_v41  ;;  %v1865_v61 = vcombine.low %v12000_v16, %v9255_v50  ;;  %v9871_v30 = vrot.slane %v1830_v4, %v8891_v10  ;;  %v9875_v39 = vrot.slane %v6176_v2, %v8891_v10  ;;  %v12003_v50 = vld [vmem:[#allocation63_spill] sm:$0xff]  ;;  %v12006_v43 = vld [vmem:[#allocation60_spill] sm:$0xff]  ;;  %v12012_v4 = vld [vmem:[#allocation18_spill] sm:$0xff] }
  0xbf   : > { %7010 = vmatmul.mubr.f32.gmra.mrb[12].mxu0 %v9798_v35  ;;  %v9868_v36 = vcombine.low %v1804_v44, %v1811_v1  ;;  %v7883_v9 = vpack.c.bf16 %v6184_v56, %v6183_v55  ;;  %v2234_v51 = vcombine.low %v12003_v50, %v11993_v13  ;;  %v9888_v11 = vrot.slane %v1864_v23, %v8891_v10  ;;  %v12009_v15 = vld [vmem:[#allocation16_spill] sm:$0xff]  ;;  %v6188_v55 = vld [vmem:[%s11743_s1 + $0x1c8] sm:$0xff] }
  0xc0   : > { %7870 = vmatpush3.bf16.msra.mxu0 %v7867_v20  ;;  %7044 = vmatprep.mubr.f32.mxu0 %v1761_v22  ;;  %v9856_v20 = vrot.slane %v1814_v37, %v8891_v10  ;;  %v12001_v22 = vld [vmem:[#allocation40_spill] sm:$0xff]  ;;  %v9891_v59 = vrot.slane %v1865_v61, %v8891_v10  ;;  %v9896_v29 = vcombine.low %v9871_v30, %v9801_v33 }
  0xc1   : > { %7872 = vmatprep.subr.bf16.mxu0 %v7871_v31  ;;  %v1916_v37 = vcombine.low %v12006_v43, %v12005_v52  ;;  %v9903_v23 = vrot.slane %v1881_v19, %v8891_v10  ;;  %v6187_v19 = vld [vmem:[%s11743_s1 + $0x1c0] sm:$0xff]  ;;  %v9931_v16 = vrot.slane %v1898_v14, %v8891_v10  ;;  %v9935_v61 = vrot.slane %v1899_v21, %v8891_v10 }
  0xc2   : > { %v1829_v26 = vcombine.low %v1821_v28, %v9856_v20  ;;  %12004 = vst [vmem:[#allocation66_spill] sm:$0xff] %v9891_v59  ;;  %v9928_v56 = vcombine.low %v9888_v11, %v9891_v59  ;;  %v7891_v21 = vpack.c.bf16 %v6188_v55, %v6187_v19  ;;  %v9973_v43 = vrot.slane %v1933_v62, %v8891_v10  ;;  %v10015_v55 = vld.sshfl [vmem:[%s8772_s28 + $0x28] sm:$0x33 pattern:$0x76325410]  ;;  %v12071_v59 = vld [vmem:[#allocation76_spill] sm:$0xff] }
  0xc3   : > { %12007 = vst [vmem:[#allocation77_spill] sm:$0xff] %v9903_v23  ;;  %12015 = vst [vmem:[#allocation81_spill] sm:$0xff] %v9931_v16  ;;  %v1966_v62 = vcombine.low %v9517_v5, %v12024_v57  ;;  %v489_v57 = vld [vmem:[%s8772_s28 + $0x98] sm:$0xff]  ;;  %v10108_v13 = vcombine.low %v9753_v8, %v9756_v32 }
  0xc4   : > { %7874 = vmatpush3.bf16.msra.mxu0 %v7871_v31  ;;  %v1882_v31 = vcombine.low %v12002_v27, %v12001_v22  ;;  %12016 = vst [vmem:[#allocation83_spill] sm:$0xff] %v9935_v61  ;;  %v9941_v22 = vrot.slane %v1916_v37, %v8891_v10  ;;  %12020 = vst [vmem:[#allocation36_spill] sm:$0xff] %v9973_v43  ;;  %v9979_v37 = vrot.slane %v1949_v54, %v8891_v10 }
  0xc5   : > { %7876 = vmatprep.subr.bf16.mxu0 %v7875_v45 }
  0xc6   : > { %v9906_v41 = vrot.slane %v1882_v31, %v8891_v10  ;;  %12018 = vst [vmem:[#allocation35_spill] sm:$0xff] %v9941_v22  ;;  %v6177_v31 = vcombine.high %v12005_v52, %v12003_v50  ;;  %v9960_v52 = vcombine.low %v9931_v16, %v9935_v61  ;;  %12021 = vst [vmem:[#allocation63_spill] sm:$0xff] %v9979_v37  ;;  %v12052_v61 = vld [vmem:[#allocation44_spill] sm:$0xff] }
  0xc7   : > { %7045 = vmatmul.mubr.f32.vlgmr.msra.gmra.mrb[0].mxu0 %v1778_v49  ;;  %v12010_v49 = vld [vmem:[#allocation19_spill] sm:$0xff] }
  0xc8   : > { %7878 = vmatpush3.bf16.msra.mxu0 %v7875_v45  ;;  %7047 = vmatprep.mubr.f32.mxu0 %v1795_v3  ;;  %v1863_v45 = vcombine.low %v9804_v42, %v9875_v39  ;;  %12008 = vst [vmem:[#allocation72_spill] sm:$0xff] %v9906_v41  ;;  %v12011_v44 = vcombine.low %v12009_v15, %v12010_v49  ;;  %v12013_v3 = vld [vmem:[#allocation20_spill] sm:$0xff]  ;;  %v12023_v15 = vld [vmem:[#allocation10_spill] sm:$0xff] }
  0xc9   : > { %7880 = vmatprep.subr.bf16.mxu0 %v7879_v17  ;;  %v12014_v28 = vcombine.low %v12012_v4, %v12013_v3  ;;  %v1897_v14 = vcombine.low %v9903_v23, %v9906_v41  ;;  %v2198_v49 = vcombine.low %v8965_v53, %v12023_v15  ;;  %v7899_v4 = vpack.c.bf16 %v6192_v6, %v6191_v40  ;;  %v6193_v3 = vld [vmem:[%s11743_s1 + $0x1f0] sm:$0xff]  ;;  %v6199_v6 = vld [vmem:[%s11743_s1 + $0x218] sm:$0xff]  ;;  %v12054_v41 = vld [vmem:[#allocation43_spill] sm:$0xff] }
  0xca   : > { %v9912_v1 = vrot.slane %v12011_v44, %v8891_v10  ;;  %v6198_v40 = vld [vmem:[%s11743_s1 + $0x210] sm:$0xff] }
  0xcb   : > { %7048 = vmatmul.mubr.f32.gmra.mrb[2].mxu0 %v9868_v36  ;;  %v9918_v2 = vrot.slane %v12014_v28, %v8891_v10  ;;  %v2205_v54 = vrot.slane %v2198_v49, %v8891_v10  ;;  %v6194_v28 = vld [vmem:[%s11743_s1 + $0x1f8] sm:$0xff]  ;;  %v488_v49 = vld [vmem:[%s8772_s28 + $0x90] sm:$0xff] }
  0xcc   : > { %7882 = vmatpush3.bf16.msra.mxu0 %v7879_v17  ;;  %7050 = vmatprep.mubr.f32.mxu0 %v1829_v26  ;;  %v7887_v17 = vpack.c.bf16 %v6186_v63, %v6185_v12  ;;  %v9938_v26 = vrot.slane %v1915_v18, %v8891_v10  ;;  %v1950_v12 = vcombine.low %v9495_v46, %v11997_v25  ;;  %v6189_v63 = vld [vmem:[%s11743_s1 + $0x1d0] sm:$0xff] }
  0xcd   : > { %7884 = vmatprep.subr.bf16.mxu0 %v7883_v9  ;;  %v9967_v25 = vrot.slane %v6177_v31, %v8891_v10  ;;  %v2206_v19 = vcombine.low %v2205_v54, %v9833_v24  ;;  %v12026_v31 = vld [vmem:[#allocation15_spill] sm:$0xff] }
  0xce   : > { %12017 = vst [vmem:[#allocation17_spill] sm:$0xff] %v9938_v26  ;;  %v9964_v46 = vcombine.low %v9938_v26, %v9941_v22  ;;  %v12050_v22 = vld [vmem:[#allocation34_spill] sm:$0xff] }
  0xcf   : > { %7051 = vmatmul.mubr.f32.gmra.mrb[4].mxu0 %v9896_v29  ;;  %12019 = vst [vmem:[#allocation40_spill] sm:$0xff] %v9967_v25  ;;  %v1948_v48 = vcombine.low %v9967_v25, %v9973_v43  ;;  %v12051_v25 = vld [vmem:[#allocation46_spill] sm:$0xff] }
  0xd0   : > { %7886 = vmatpush3.bf16.msra.mxu0 %v7883_v9  ;;  %7053 = vmatprep.mubr.f32.mxu0 %v1863_v45  ;;  %v6190_v9 = vld [vmem:[%s11743_s1 + $0x1d8] sm:$0xff]  ;;  %v9982_v45 = vrot.slane %v1950_v12, %v8891_v10  ;;  %v7903_v12 = vpack.c.bf16 %v6194_v28, %v6193_v3  ;;  %v7911_v3 = vpack.c.bf16 %v6199_v6, %v6198_v40  ;;  %v6200_v28 = vld [vmem:[%s11743_s1 + $0x220] sm:$0xff] }
  0xd1   : > { %7888 = vmatprep.subr.bf16.mxu0 %v7887_v17  ;;  %v7895_v44 = vpack.c.bf16 %v6190_v9, %v6189_v63  ;;  %v6197_v63 = vld [vmem:[%s11743_s1 + $0x208] sm:$0xff]  ;;  %v12027_v9 = vld [vmem:[#allocation26_spill] sm:$0xff]  ;;  %v2573_v26 = vcombine.low %v12052_v61, %v12051_v25 }
  0xd2   : > { %12022 = vst [vmem:[#allocation48_spill] sm:$0xff] %v9982_v45  ;;  %v10000_v53 = vcombine.low %v9979_v37, %v9982_v45  ;;  %v2216_v15 = vcombine.low %v9173_v38, %v12027_v9 }
  0xd3   : > { %7054 = vmatmul.mubr.f32.gmra.mrb[6].mxu0 %v9928_v56 }
  0xd4   : > { %7890 = vmatpush3.bf16.msra.mxu0 %v7887_v17  ;;  %7056 = vmatprep.mubr.f32.mxu0 %v1897_v14  ;;  %v10010_v17 = vrot.slane %v1966_v62, %v8891_v10  ;;  %v2207_v14 = vcombine.low %v10015_v55, %v12026_v31  ;;  %v2223_v54 = vrot.slane %v2216_v15, %v8891_v10  ;;  %v6203_v15 = vld [vmem:[%s11743_s1 + $0x238] sm:$0xff] }
  0xd5   : > { %7892 = vmatprep.subr.bf16.mxu0 %v7891_v21 }
  0xd6   : > { %12025 = vst [vmem:[#allocation60_spill] sm:$0xff] %v10010_v17  ;;  %v2214_v24 = vrot.slane %v2207_v14, %v8891_v10  ;;  %v2157_v14 = vcombine.high %v489_v57, %v489_v57 }
  0xd7   : > { %7057 = vmatmul.mubr.f32.gmra.mrb[8].mxu0 %v9960_v52 }
  0xd8   : > { %7894 = vmatpush3.bf16.msra.mxu0 %v7891_v21  ;;  %7059 = vmatprep.mubr.f32.mxu0 %v9964_v46  ;;  %v6196_v21 = vld [vmem:[%s11743_s1 + $0x200] sm:$0xff]  ;;  %v2215_v62 = vcombine.low %v2214_v24, %v9856_v20 }
  0xd9   : > { %7896 = vmatprep.subr.bf16.mxu0 %v7895_v44 }
  0xdb   : > { %7060 = vmatmul.mubr.f32.gmra.mrb[10].mxu0 %v1948_v48  ;;  %v2140_v48 = vcombine.high %v488_v49, %v488_v49 }
  0xdc   : > { %7898 = vmatpush3.bf16.msra.mxu0 %v7895_v44  ;;  %7062 = vmatprep.mubr.f32.mxu0 %v10000_v53  ;;  %v7907_v44 = vpack.c.bf16 %v6197_v63, %v6196_v21  ;;  %v2224_v63 = vcombine.low %v9804_v42, %v2223_v54  ;;  %v492_v42 = vld [vmem:[%s8772_s28 + $0xb0] sm:$0xff] }
  0xdd   : > { %7900 = vmatprep.subr.bf16.mxu0 %v7899_v4  ;;  %v10052_v21 = vrot.slane %v2140_v48, %v8891_v10  ;;  %v12029_v48 = vld [vmem:[#allocation56_spill] sm:$0xff] }
  0xdf   : > { %7063 = vmatmul.mubr.f32.gmra.mrb[12].mxu0 %v10010_v17  ;;  %v10075_v40 = vcombine.high %v10052_v21, %v10052_v21 }
  0xe0   : > { %7902 = vmatpush3.bf16.msra.mxu0 %v7899_v4  ;;  %7097 = vmatprep.mubr.f32.mxu0 %v2206_v19  ;;  %v12028_v4 = vld [vmem:[#allocation51_spill] sm:$0xff] }
  0xe1   : > { %7904 = vmatprep.subr.bf16.mxu0 %v7903_v12  ;;  %v2225_v38 = vcombine.low %v12002_v27, %v12028_v4  ;;  %v6201_v19 = vld [vmem:[%s11743_s1 + $0x228] sm:$0xff]  ;;  %v10055_v27 = vrot.slane %v489_v57, %v8891_v10  ;;  %v12030_v57 = vld [vmem:[#allocation105_spill] sm:$0xff] }
  0xe2   : > { %v7915_v9 = vpack.c.bf16 %v6201_v19, %v6200_v28  ;;  %v10092_v28 = vcombine.low %v9721_v58, %v9724_v60  ;;  %v6204_v19 = vld [vmem:[%s11743_s1 + $0x240] sm:$0xff]  ;;  %v10112_v58 = vcombine.low %v9759_v7, %v9798_v35  ;;  %v2941_v7 = vcombine.low %v10052_v21, %v10075_v40 }
  0xe3   : > { %v2232_v24 = vrot.slane %v2225_v38, %v8891_v10  ;;  %v10079_v6 = vcombine.high %v10055_v27, %v10055_v27  ;;  %v2241_v38 = vrot.slane %v2234_v51, %v8891_v10  ;;  %v2260_v50 = vcombine.low %v10075_v40, %v10055_v27 }
  0xe4   : > { %7906 = vmatpush3.bf16.msra.mxu0 %v7903_v12  ;;  %v10049_v12 = vrot.slane %v488_v49, %v8891_v10  ;;  %v10066_v49 = vrot.slane %v2157_v14, %v8891_v10 }
  0xe5   : > { %7908 = vmatprep.subr.bf16.mxu0 %v7907_v44  ;;  %v2957_v8 = vcombine.low %v10055_v27, %v10079_v6  ;;  %v10160_v17 = vrot.slane %v2260_v50, %v8891_v10 }
  0xe6   : > { %v2243_v14 = vcombine.low %v9517_v5, %v10049_v12  ;;  %v2261_v51 = vcombine.low %v10079_v6, %v10066_v49 }
  0xe7   : > { %7098 = vmatmul.mubr.f32.vlgmr.msra.gmra.mrb[0].mxu0 %v9868_v36  ;;  %v6202_v36 = vld [vmem:[%s11743_s1 + $0x230] sm:$0xff]  ;;  %12036 = vst [vmem:[#allocation19_spill] sm:$0xff] %v10160_v17 }
  0xe8   : > { %7910 = vmatpush3.bf16.msra.mxu0 %v7907_v44  ;;  %7100 = vmatprep.mubr.f32.mxu0 %v2215_v62  ;;  %v10071_v44 = vcombine.high %v10049_v12, %v10049_v12  ;;  %v10083_v62 = vcombine.low %v12030_v57, %v12029_v48  ;;  %v7919_v54 = vpack.c.bf16 %v6203_v15, %v6202_v36  ;;  %v12032_v36 = vld [vmem:[#allocation11_spill] sm:$0xff]  ;;  %v6207_v57 = vld [vmem:[%s11743_s1 + $0x258] sm:$0xff] }
  0xe9   : > { %7912 = vmatprep.subr.bf16.mxu0 %v7911_v3  ;;  %v2251_v18 = vrot.slane %v2243_v14, %v8891_v10 }
  0xea   : > { %v2244_v60 = vcombine.low %v10071_v44, %v10052_v21 }
  0xeb   : > { %7101 = vmatmul.mubr.f32.gmra.mrb[2].mxu0 %v9896_v29  ;;  %v2233_v29 = vcombine.low %v9903_v23, %v2232_v24  ;;  %v6230_v24 = vcombine.high %v9517_v5, %v10049_v12  ;;  %v2242_v5 = vcombine.low %v2241_v38, %v9973_v43  ;;  %v12034_v38 = vld [vmem:[#allocation13_spill] sm:$0xff]  ;;  %v10163_v43 = vrot.slane %v2261_v51, %v8891_v10  ;;  %v6210_v51 = vld [vmem:[%s11743_s1 + $0x270] sm:$0xff] }
  0xec   : > { %7914 = vmatpush3.bf16.msra.mxu0 %v7911_v3  ;;  %7103 = vmatprep.mubr.f32.mxu0 %v2224_v63  ;;  %v6205_v3 = vld [vmem:[%s11743_s1 + $0x248] sm:$0xff]  ;;  %v10104_v63 = vcombine.high %v10066_v49, %v10066_v49  ;;  %v10157_v45 = vrot.slane %v2244_v60, %v8891_v10 }
  0xed   : > { %7916 = vmatprep.subr.bf16.mxu0 %v7915_v9  ;;  %v7923_v35 = vpack.c.bf16 %v6205_v3, %v6204_v19  ;;  %v10136_v48 = vrot.slane %v6230_v24, %v8891_v10  ;;  %v6209_v19 = vld [vmem:[%s11743_s1 + $0x268] sm:$0xff]  ;;  %v12033_v3 = vld [vmem:[#allocation14_spill] sm:$0xff]  ;;  %v2965_v24 = vrot.slane %v2957_v8, %v8891_v10  ;;  %12037 = vst [vmem:[#allocation18_spill] sm:$0xff] %v10163_v43 }
  0xee   : > { %v2958_v32 = vcombine.low %v10066_v49, %v10104_v63  ;;  %v2489_v34 = vcombine.low %v12034_v38, %v12033_v3  ;;  %12035 = vst [vmem:[#allocation16_spill] sm:$0xff] %v10157_v45  ;;  %v10166_v3 = vld.sshfl [vmem:[%s8772_s28 + $0xa0] sm:$0x33 pattern:$0x76325410]  ;;  %v3210_v38 = vcombine.low %v10049_v12, %v10071_v44 }
  0xef   : > { %7104 = vmatmul.mubr.f32.gmra.mrb[4].mxu0 %v9928_v56  ;;  %v6206_v56 = vld [vmem:[%s11743_s1 + $0x250] sm:$0xff] }
  0xf0   : > { %7918 = vmatpush3.bf16.msra.mxu0 %v7915_v9  ;;  %7106 = vmatprep.mubr.f32.mxu0 %v2233_v29  ;;  %v12031_v9 = vld [vmem:[#allocation12_spill] sm:$0xff]  ;;  %v6208_v29 = vld [vmem:[%s11743_s1 + $0x260] sm:$0xff]  ;;  %v7927_v14 = vpack.c.bf16 %v6207_v57, %v6206_v56  ;;  %v2259_v56 = vcombine.low %v2251_v18, %v10157_v45  ;;  %v6211_v57 = vld [vmem:[%s11743_s1 + $0x278] sm:$0xff]  ;;  %v2448_v18 = vrot.slane %v10052_v21, 7  ;;  %v10204_v50 = vrot.slane %v3210_v38, %v8891_v10 }
  0xf1   : > { %7920 = vmatprep.subr.bf16.mxu0 %v7919_v54  ;;  %v2488_v15 = vcombine.low %v12032_v36, %v12031_v9  ;;  %v10150_v9 = vrot.slane %v2941_v7, %v8891_v10  ;;  %v2972_v36 = vrot.slane %v2958_v32, %v8891_v10  ;;  %v7931_v60 = vpack.c.bf16 %v6209_v19, %v6208_v29  ;;  %v6212_v29 = vld [vmem:[%s11743_s1 + $0x280] sm:$0xff]  ;;  %v12038_v19 = vld [vmem:[#allocation21_spill] sm:$0xff]  ;;  %v12041_v45 = vld [vmem:[#allocation23_spill] sm:$0xff] }
  0xf2   : > { %v2445_v32 = vrot.slane %v10071_v44, 7  ;;  %v12039_v44 = vld [vmem:[#allocation22_spill] sm:$0xff]  ;;  %v2457_v7 = vrot.slane %v10079_v6, 7  ;;  %v2460_v21 = vrot.slane %v10066_v49, 7 }
  0xf3   : > { %7107 = vmatmul.mubr.f32.gmra.mrb[6].mxu0 %v9960_v52  ;;  %v10171_v52 = vcombine.low %v2965_v24, %v2972_v36  ;;  %v2496_v8 = vrot.slane %v2488_v15, %v8891_v10  ;;  %v2276_v15 = vcombine.low %v10160_v17, %v10163_v43  ;;  %v2451_v24 = vrot.slane %v10075_v40, 7  ;;  %v12040_v43 = vld [vmem:[#allocation25_spill] sm:$0xff] }
  0xf4   : > { %7922 = vmatpush3.bf16.msra.mxu0 %v7919_v54  ;;  %7109 = vmatprep.mubr.f32.mxu0 %v9964_v46  ;;  %v2277_v54 = vcombine.low %v10104_v63, %v10166_v3  ;;  %v2503_v46 = vrot.slane %v2489_v34, %v8891_v10  ;;  %v6213_v34 = vld [vmem:[%s11743_s1 + $0x288] sm:$0xff]  ;;  %v2454_v36 = vrot.slane %v10055_v27, 7  ;;  %v2523_v17 = vcombine.low %v12041_v45, %v12040_v43  ;;  %v12042_v40 = vld [vmem:[#allocation29_spill] sm:$0xff]  ;;  %v12043_v27 = vld [vmem:[#allocation28_spill] sm:$0xff] }
  0xf5   : > { %7924 = vmatprep.subr.bf16.mxu0 %v7923_v35  ;;  %v2539_v37 = vcombine.low %v12043_v27, %v12042_v40  ;;  %v2447_v45 = vrot.slane %v2445_v32, 2  ;;  %v12046_v40 = vld [vmem:[#allocation30_spill] sm:$0xff] }
  0xf6   : > { %v10218_v38 = vrot.slane %v2277_v54, %v8891_v10  ;;  %v2504_v43 = vcombine.low %v2496_v8, %v2503_v46  ;;  %v12047_v8 = vld [vmem:[#allocation38_spill] sm:$0xff]  ;;  %v12048_v46 = vld [vmem:[#allocation33_spill] sm:$0xff] }
  0xf7   : > { %7110 = vmatmul.mubr.f32.gmra.mrb[8].mxu0 %v2242_v5  ;;  %v2522_v5 = vcombine.low %v12039_v44, %v12038_v19  ;;  %v6195_v19 = vrot.slane %v10049_v12, 9  ;;  %v10211_v44 = vpack.c.bf16 %v6213_v34, %v6212_v29  ;;  %v2450_v12 = vrot.slane %v2448_v18, 2  ;;  %v12045_v34 = vld [vmem:[#allocation31_spill] sm:$0xff] }
  0xf8   : > { %7926 = vmatpush3.bf16.msra.mxu0 %v7923_v35  ;;  %7112 = vmatprep.mubr.f32.mxu0 %v10000_v53  ;;  %v2463_v35 = vrot.slane %v10104_v63, 7  ;;  %v7935_v53 = vpack.c.bf16 %v6211_v57, %v6210_v51  ;;  %12044 = vst [vmem:[#allocation20_spill] sm:$0xff] %v10218_v38  ;;  %v2453_v63 = vrot.slane %v2451_v24, 2  ;;  %v2456_v51 = vrot.slane %v2454_v36, 2 }
  0xf9   : > { %7928 = vmatprep.subr.bf16.mxu0 %v7927_v14  ;;  %v2530_v49 = vrot.slane %v2522_v5, %v8891_v10  ;;  %v2459_v57 = vrot.slane %v2457_v7, 2  ;;  %v2537_v29 = vrot.slane %v2523_v17, %v8891_v10  ;;  %v2540_v27 = vcombine.low %v12046_v40, %v12045_v34  ;;  %v12053_v17 = vld [vmem:[#allocation45_spill] sm:$0xff] }
  0xfa   : > { %v2465_v6 = vrot.slane %v2463_v35, 2  ;;  %v10225_v54 = vrot.slane %v2539_v37, %v8891_v10  ;;  %v2574_v16 = vcombine.low %v12054_v41, %v12053_v17  ;;  %v10238_v40 = vsel %vm8935_vm6, %v6195_v19, %v2445_v32 }
  0xfb   : > { %7113 = vmatmul.mubr.f32.gmra.mrb[10].mxu0 %v2259_v56  ;;  %v2462_v56 = vrot.slane %v2460_v21, 2  ;;  %v10242_v37 = vsel %vm8935_vm6, %v2447_v45, %v2448_v18  ;;  %v10250_v61 = vsel %vm8935_vm6, %v2453_v63, %v2454_v36  ;;  %v10254_v41 = vsel %vm8935_vm6, %v2456_v51, %v2457_v7  ;;  %v6215_v36 = vld [vmem:[%s11743_s1 + $0x298] sm:$0xff]  ;;  %v12058_v45 = vld [vmem:[#allocation50_spill] sm:$0xff]  ;;  %v12060_v51 = vld [vmem:[#allocation47_spill] sm:$0xff] }
  0xfc   : > { %7930 = vmatpush3.bf16.msra.mxu0 %v7927_v14  ;;  %7115 = vmatprep.mubr.f32.mxu0 %v2276_v15  ;;  %v2556_v14 = vcombine.low %v12048_v46, %v12047_v8  ;;  %v12049_v15 = vld [vmem:[#allocation42_spill] sm:$0xff]  ;;  %v10246_v8 = vsel %vm8935_vm6, %v2450_v12, %v2451_v24  ;;  %v3473_v18 = vcombine.low %v10238_v40, %v10242_v37  ;;  %v6214_v24 = vld [vmem:[%s11743_s1 + $0x290] sm:$0xff] }
  0xfd   : > { %7932 = vmatprep.subr.bf16.mxu0 %v7931_v60  ;;  %v2557_v5 = vcombine.low %v12050_v22, %v12049_v15  ;;  %v10258_v22 = vsel %vm8935_vm6, %v2459_v57, %v2460_v21  ;;  %v10262_v25 = vsel %vm8935_vm6, %v2462_v56, %v2463_v35  ;;  %v3474_v7 = vcombine.low %v10246_v8, %v10250_v61  ;;  %v12059_v63 = vld [vmem:[#allocation58_spill] sm:$0xff] }
  0xfe   : > { %v2538_v19 = vcombine.low %v2530_v49, %v2537_v29  ;;  %v2554_v21 = vrot.slane %v2540_v27, %v8891_v10  ;;  %v3490_v35 = vcombine.low %v10254_v41, %v10258_v22  ;;  %v2591_v57 = vcombine.low %v12060_v51, %v12059_v63  ;;  %v12064_v51 = vld [vmem:[#allocation64_spill] sm:$0xff] }
  0xff   : > { %7116 = vmatmul.mubr.f32.gmra.mrb[12].mxu0 %v10218_v38  ;;  %v10290_v56 = vrot.slane %v3473_v18, %v8891_v10  ;;  %v10293_v46 = vrot.slane %v3474_v7, %v8891_v10  ;;  %v2564_v49 = vrot.slane %v2556_v14, %v8891_v10  ;;  %v2571_v29 = vrot.slane %v2557_v5, %v8891_v10  ;;  %v6217_v14 = vld [vmem:[%s11743_s1 + $0x2a8] sm:$0xff] }
 0x100   : > { %7934 = vmatpush3.bf16.msra.mxu0 %v7931_v60  ;;  %7150 = vmatprep.mubr.f32.mxu0 %v2504_v43  ;;  %v12056_v60 = vrot.slane %v10166_v3, 7  ;;  %v12057_v43 = vld [vmem:[#allocation54_spill] sm:$0xff]  ;;  %v10298_v27 = vrot.slane %v3490_v35, %v8891_v10  ;;  %v7943_v17 = vpack.c.bf16 %v6215_v36, %v6214_v24  ;;  %v2555_v5 = vcombine.low %v10225_v54, %v2554_v21  ;;  %v12067_v24 = vld [vmem:[#allocation69_spill] sm:$0xff]  ;;  %v12068_v38 = vld [vmem:[#allocation75_spill] sm:$0xff] }
 0x101   : > { %7936 = vmatprep.subr.bf16.mxu0 %v7935_v53  ;;  %v2590_v12 = vcombine.low %v12058_v45, %v12057_v43  ;;  %v2581_v18 = vrot.slane %v2573_v26, %v8891_v10  ;;  %v2588_v7 = vrot.slane %v2574_v16, %v8891_v10  ;;  %v12061_v36 = vcombine.low %v9912_v1, %v9918_v2  ;;  %v12062_v43 = vld [vmem:[#allocation59_spill] sm:$0xff]  ;;  %v12063_v45 = vld [vmem:[#allocation61_spill] sm:$0xff]  ;;  %v12065_v54 = vld [vmem:[#allocation62_spill] sm:$0xff] }
 0x102   : > { %v10268_v32 = vsel %vm8935_vm6, %v2465_v6, %v12056_v60  ;;  %v2607_v63 = vcombine.low %v12063_v45, %v12062_v43  ;;  %v2608_v21 = vcombine.low %v12065_v54, %v12064_v51  ;;  %v2572_v16 = vcombine.low %v2564_v49, %v2571_v29  ;;  %v12066_v26 = vld [vmem:[#allocation71_spill] sm:$0xff]  ;;  %v12069_v1 = vld [vmem:[#allocation73_spill] sm:$0xff]  ;;  %v6218_v45 = vld [vmem:[%s11743_s1 + $0x2b0] sm:$0xff] }
 0x103   : > { %v3491_v6 = vcombine.low %v10262_v25, %v10268_v32  ;;  %v2598_v35 = vrot.slane %v2590_v12, %v8891_v10  ;;  %v2624_v60 = vcombine.low %v12067_v24, %v12066_v26  ;;  %v2625_v2 = vcombine.low %v12069_v1, %v12068_v38  ;;  %v491_v12 = vld [vmem:[%s8772_s28 + $0xa8] sm:$0xff]  ;;  %v12072_v49 = vld [vmem:[#allocation84_spill] sm:$0xff] }
 0x104   : > { %7938 = vmatpush3.bf16.msra.mxu0 %v7935_v53  ;;  %v6216_v53 = vld [vmem:[%s11743_s1 + $0x2a0] sm:$0xff]  ;;  %v12073_v29 = vld [vmem:[#allocation80_spill] sm:$0xff]  ;;  %v12075_v51 = vld [vmem:[#allocation87_spill] sm:$0xff]  ;;  %v2615_v1 = vrot.slane %v2607_v63, %v8891_v10  ;;  %v3148_v23 = vcombine.high %v491_v12, %v491_v12 }
 0x105   : > { %v10301_v15 = vrot.slane %v3491_v6, %v8891_v10  ;;  %7940 = vmatprep.subr.bf16.mxu0 %v10211_v44  ;;  %v2605_v6 = vrot.slane %v2591_v57, %v8891_v10  ;;  %v7947_v57 = vpack.c.bf16 %v6217_v14, %v6216_v53  ;;  %v2642_v24 = vcombine.low %v12073_v29, %v12072_v49  ;;  %v12074_v38 = vld [vmem:[#allocation88_spill] sm:$0xff]  ;;  %v12076_v26 = vld [vmem:[#allocation91_spill] sm:$0xff]  ;;  %v12077_v53 = vld [vmem:[#allocation89_spill] sm:$0xff] }
 0x106   : > { %v2658_v54 = vcombine.low %v12075_v51, %v12074_v38  ;;  %v2659_v14 = vcombine.low %v12077_v53, %v12076_v26  ;;  %v10353_v49 = vcombine.high %v10166_v3, %v10166_v3  ;;  %v2676_v38 = vcombine.low %v10242_v37, %v10246_v8 }
 0x107   : > { %7151 = vmatmul.mubr.f32.vlgmr.msra.gmra.mrb[0].mxu0 %v12061_v36  ;;  %v12070_v36 = vld [vmem:[#allocation79_spill] sm:$0xff]  ;;  %v2656_v63 = vrot.slane %v2642_v24, %v8891_v10  ;;  %v10372_v51 = vrot.slane %v3148_v23, %v8891_v10  ;;  %v2692_v24 = vcombine.low %v10250_v61, %v10254_v41  ;;  %v6223_v23 = vld [vmem:[%s11743_s1 + $0x2d8] sm:$0xff]  ;;  %v12117_v34 = vcombine.low %v10298_v27, %v10301_v15 }
 0x108   : > { %7942 = vmatpush3.bf16.msra.mxu0 %v10211_v44  ;;  %7153 = vmatprep.mubr.f32.mxu0 %v2538_v19  ;;  %v2641_v43 = vcombine.low %v12071_v59, %v12070_v36  ;;  %v6219_v44 = vld [vmem:[%s11743_s1 + $0x2b8] sm:$0xff]  ;;  %v2589_v19 = vcombine.low %v2581_v18, %v2588_v7  ;;  %v2606_v59 = vcombine.low %v2598_v35, %v2605_v6  ;;  %v12078_v35 = vrot.slane %v10166_v3, 7 }
 0x109   : > { %7944 = vmatprep.subr.bf16.mxu0 %v7943_v17  ;;  %v2622_v36 = vrot.slane %v2608_v21, %v8891_v10  ;;  %v2632_v18 = vrot.slane %v2624_v60, %v8891_v10  ;;  %v2639_v7 = vrot.slane %v2625_v2, %v8891_v10  ;;  %v7951_v29 = vpack.c.bf16 %v6219_v44, %v6218_v45  ;;  %v6221_v60 = vld [vmem:[%s11743_s1 + $0x2c8] sm:$0xff]  ;;  %v12079_v45 = vld [vmem:[#allocation92_spill] sm:$0xff] }
 0x10a   : > { %v2468_v6 = vrot.slane %v12078_v35, 2  ;;  %v2666_v21 = vrot.slane %v2658_v54, %v8891_v10  ;;  %v3165_v2 = vcombine.high %v492_v42, %v492_v42  ;;  %v2675_v44 = vcombine.low %v12079_v45, %v10238_v40  ;;  %v6222_v40 = vld [vmem:[%s11743_s1 + $0x2d0] sm:$0xff] }
 0x10b   : > { %7154 = vmatmul.mubr.f32.gmra.mrb[2].mxu0 %v2555_v5  ;;  %v2649_v5 = vrot.slane %v2641_v43, %v8891_v10  ;;  %v2623_v43 = vcombine.low %v2615_v1, %v2622_v36  ;;  %v2640_v26 = vcombine.low %v2632_v18, %v2639_v7  ;;  %v2693_v54 = vcombine.low %v10258_v22, %v10262_v25  ;;  %v6224_v7 = vld [vmem:[%s11743_s1 + $0x2e0] sm:$0xff]  ;;  %v6226_v45 = vld [vmem:[%s11743_s1 + $0x2f0] sm:$0xff] }
 0x10c   : > { %7946 = vmatpush3.bf16.msra.mxu0 %v7943_v17  ;;  %7156 = vmatprep.mubr.f32.mxu0 %v2572_v16  ;;  %v6220_v17 = vld [vmem:[%s11743_s1 + $0x2c0] sm:$0xff]  ;;  %v2673_v16 = vrot.slane %v2659_v14, %v8891_v10  ;;  %v10389_v61 = vrot.slane %v3165_v2, %v8891_v10  ;;  %v2683_v41 = vrot.slane %v2675_v44, %v8891_v10  ;;  %v6227_v44 = vld [vmem:[%s11743_s1 + $0x2f8] sm:$0xff] }
 0x10d   : > { %7948 = vmatprep.subr.bf16.mxu0 %v7947_v57  ;;  %v7955_v53 = vpack.c.bf16 %v6221_v60, %v6220_v17  ;;  %v2657_v37 = vcombine.low %v2649_v5, %v2656_v63  ;;  %v2690_v22 = vrot.slane %v2676_v38, %v8891_v10  ;;  %v10394_v25 = vrot.slane %v491_v12, %v8891_v10 }
 0x10e   : > { %v2674_v8 = vcombine.low %v2666_v21, %v2673_v16  ;;  %v10398_v14 = vcombine.high %v10372_v51, %v10372_v51  ;;  %v7959_v36 = vpack.c.bf16 %v6223_v23, %v6222_v40  ;;  %v10422_v35 = vcombine.high %v10389_v61, %v10389_v61 }
 0x10f   : > { %7157 = vmatmul.mubr.f32.gmra.mrb[4].mxu0 %v2589_v19  ;;  %v2469_v19 = vrot.slane %v10353_v49, 7  ;;  %v6281_v12 = vcombine.high %v10166_v3, %v10394_v25  ;;  %v6228_v40 = vcombine.high %v10015_v55, %v12026_v31  ;;  %v6288_v55 = vld [vmem:[%s11745_s3 + $0x88] sm:$0xff]  ;;  %v3731_v15 = vcombine.low %v9875_v39, %v9888_v11  ;;  %v12129_v11 = vld [vmem:[#allocation36_spill] sm:$0xff] }
 0x110   : > { %7950 = vmatpush3.bf16.msra.mxu0 %v7947_v57  ;;  %7159 = vmatprep.mubr.f32.mxu0 %v2606_v59  ;;  %v10386_v57 = vrot.slane %v492_v42, %v8891_v10  ;;  %v2700_v42 = vrot.slane %v2692_v24, %v8891_v10  ;;  %v2707_v59 = vrot.slane %v2693_v54, %v8891_v10  ;;  %v12080_v54 = vld [vmem:[#allocation96_spill] sm:$0xff]  ;;  %v12128_v39 = vld [vmem:[#allocation63_spill] sm:$0xff] }
 0x111   : > { %7952 = vmatprep.subr.bf16.mxu0 %v7951_v29  ;;  %v10404_v1 = vsel %vm8935_vm6, %v2468_v6, %v2469_v19  ;;  %v3741_v18 = vcombine.low %v10372_v51, %v10398_v14  ;;  %v2691_v6 = vcombine.low %v2683_v41, %v2690_v22  ;;  %v10427_v60 = vrot.slane %v6281_v12, %v8891_v10  ;;  %v12081_v19 = vld [vmem:[#allocation95_spill] sm:$0xff]  ;;  %v6287_v22 = vld [vmem:[%s11745_s3 + $0x80] sm:$0xff] }
 0x112   : > { %v10418_v5 = vcombine.high %v10386_v57, %v10386_v57  ;;  %v2709_v17 = vcombine.low %v10268_v32, %v10404_v1  ;;  %v2708_v21 = vcombine.low %v2700_v42, %v2707_v59  ;;  %v3758_v2 = vcombine.low %v10389_v61, %v10422_v35  ;;  %v6233_v41 = vld [vmem:[%s11743_s1 + $0x308] sm:$0xff]  ;;  %v8589_v42 = vld.sshfl [vmem:[%s8772_s28 + $0x40] sm:$0x33 pattern:$0x76325410] }
 0x113   : > { %7160 = vmatmul.mubr.f32.gmra.mrb[6].mxu0 %v2623_v43  ;;  %v10430_v63 = vrot.slane %v3741_v18, %v8891_v10  ;;  %v2906_v31 = vrot.slane %v6228_v40, %v8891_v10  ;;  %v12082_v59 = vld [vmem:[#allocation27_spill] sm:$0xff]  ;;  %v8067_v12 = vpack.c.bf16 %v6288_v55, %v6287_v22  ;;  %v12088_v40 = vld [vmem:[#allocation101_spill] sm:$0xff]  ;;  %v8591_v22 = vld.sshfl [vmem:[%s8772_s28 + $0x70] sm:$0x33 pattern:$0x76325410] }
 0x114   : > { %7954 = vmatpush3.bf16.msra.mxu0 %v7951_v29  ;;  %7162 = vmatprep.mubr.f32.mxu0 %v2640_v26  ;;  %v6225_v29 = vld [vmem:[%s11743_s1 + $0x2e8] sm:$0xff]  ;;  %v3757_v16 = vcombine.low %v10386_v57, %v10418_v5  ;;  %v10448_v26 = vrot.slane %v3758_v2, %v8891_v10  ;;  %v2716_v24 = vrot.slane %v2709_v17, %v8891_v10  ;;  %v12090_v55 = vld [vmem:[#allocation70_spill] sm:$0xff] }
 0x115   : > { %7956 = vmatprep.subr.bf16.mxu0 %v7955_v53  ;;  %v7963_v43 = vpack.c.bf16 %v6225_v29, %v6224_v7  ;;  %v3756_v32 = vcombine.low %v10427_v60, %v10430_v63  ;;  %v6234_v7 = vld [vmem:[%s11743_s1 + $0x310] sm:$0xff]  ;;  %v6235_v29 = vld [vmem:[%s11743_s1 + $0x318] sm:$0xff]  ;;  %8068 = vmatprep.subr.bf16.mxu1 %v8067_v12  ;;  %v6291_v60 = vld [vmem:[%s11745_s3 + $0xa0] sm:$0xff] }
 0x116   : > { %v10445_v38 = vrot.slane %v3757_v16, %v8891_v10  ;;  %8070 = vmatpush3.bf16.msra.mxu1 %v8067_v12  ;;  %v8590_v16 = vld.sshfl [vmem:[%s8772_s28 + $0x58] sm:$0x33 pattern:$0x76325410]  ;;  %v12091_v12 = vld [vmem:[#allocation52_spill] sm:$0xff]  ;;  %v6292_v63 = vld [vmem:[%s11745_s3 + $0xa8] sm:$0xff] }
 0x117   : > { %7163 = vmatmul.mubr.f32.gmra.mrb[8].mxu0 %v2657_v37  ;;  %v7967_v37 = vpack.c.bf16 %v6227_v44, %v6226_v45  ;;  %v6229_v2 = vcombine.high %v8590_v16, %v12028_v4  ;;  %v6236_v45 = vld [vmem:[%s11743_s1 + $0x320] sm:$0xff]  ;;  %v6237_v44 = vld [vmem:[%s11743_s1 + $0x328] sm:$0xff]  ;;  %v12089_v4 = vld [vmem:[#allocation104_spill] sm:$0xff] }
 0x118   : > { %7958 = vmatpush3.bf16.msra.mxu0 %v7955_v53  ;;  %7165 = vmatprep.mubr.f32.mxu0 %v2674_v8  ;;  %v2897_v53 = vcombine.low %v12081_v19, %v12080_v54  ;;  %v3773_v23 = vcombine.low %v10445_v38, %v10448_v26  ;;  %v6232_v8 = vld [vmem:[%s11743_s1 + $0x300] sm:$0xff]  ;;  %v6293_v38 = vld [vmem:[%s11745_s3 + $0xb0] sm:$0xff]  ;;  %v6294_v26 = vld [vmem:[%s11745_s3 + $0xb8] sm:$0xff] }
 0x119   : > { %7960 = vmatprep.subr.bf16.mxu0 %v7959_v36  ;;  %v7971_v18 = vpack.c.bf16 %v6233_v41, %v6232_v8  ;;  %v12085_v54 = vld [vmem:[#allocation98_spill] sm:$0xff]  ;;  %v2926_v41 = vrot.slane %v6229_v2, %v8891_v10 }
 0x11b   : > { %7166 = vmatmul.mubr.f32.gmra.mrb[10].mxu0 %v2691_v6  ;;  %v12083_v6 = vld [vmem:[#allocation100_spill] sm:$0xff] }
 0x11c   : > { %7962 = vmatpush3.bf16.msra.mxu0 %v7959_v36  ;;  %7168 = vmatprep.mubr.f32.mxu0 %v2708_v21  ;;  %v2909_v36 = vcombine.low %v8589_v42, %v12082_v59  ;;  %v2907_v17 = vcombine.low %v2906_v31, %v12083_v6  ;;  %v2929_v31 = vcombine.low %v8591_v22, %v12090_v55  ;;  %v6238_v59 = vld [vmem:[%s11743_s1 + $0x330] sm:$0xff] }
 0x11d   : > { %7964 = vmatprep.subr.bf16.mxu0 %v7963_v43  ;;  %v7979_v42 = vpack.c.bf16 %v6237_v44, %v6236_v45  ;;  %v6243_v45 = vld [vmem:[%s11743_s1 + $0x358] sm:$0xff] }
 0x11e   : > { %v2916_v21 = vrot.slane %v2909_v36, %v8891_v10  ;;  %v6239_v36 = vld [vmem:[%s11743_s1 + $0x338] sm:$0xff] }
 0x11f   : > { %7169 = vmatmul.mubr.f32.gmra.mrb[12].mxu0 %v2716_v24  ;;  %v12084_v24 = vld [vmem:[#allocation97_spill] sm:$0xff] }
 0x120   : > { %7966 = vmatpush3.bf16.msra.mxu0 %v7963_v43  ;;  %7203 = vmatprep.mubr.f32.mxu0 %v2897_v53  ;;  %v7975_v43 = vpack.c.bf16 %v6235_v29, %v6234_v7  ;;  %v12086_v19 = vcombine.low %v12084_v24, %v12085_v54  ;;  %v12087_v53 = vld [vmem:[#allocation102_spill] sm:$0xff]  ;;  %v2917_v8 = vcombine.low %v2916_v21, %v12089_v4  ;;  %v6241_v21 = vld [vmem:[%s11743_s1 + $0x348] sm:$0xff] }
 0x121   : > { %7968 = vmatprep.subr.bf16.mxu0 %v7967_v37  ;;  %v2936_v7 = vrot.slane %v2929_v31, %v8891_v10  ;;  %v7983_v29 = vpack.c.bf16 %v6239_v36, %v6238_v59  ;;  %v6244_v24 = vld [vmem:[%s11743_s1 + $0x360] sm:$0xff]  ;;  %v6245_v54 = vld [vmem:[%s11743_s1 + $0x368] sm:$0xff]  ;;  %v6251_v36 = vld [vmem:[%s11743_s1 + $0x390] sm:$0xff] }
 0x122   : > { %v6250_v59 = vld [vmem:[%s11743_s1 + $0x388] sm:$0xff] }
 0x123   : > { %v2937_v16 = vcombine.low %v9727_v47, %v2936_v7 }
 0x124   : > { %7970 = vmatpush3.bf16.msra.mxu0 %v7967_v37  ;;  %v10493_v37 = vcombine.low %v12088_v40, %v12087_v53  ;;  %v7995_v53 = vpack.c.bf16 %v6245_v54, %v6244_v24  ;;  %v6246_v40 = vld [vmem:[%s11743_s1 + $0x370] sm:$0xff]  ;;  %v6257_v24 = vld [vmem:[%s11743_s1 + $0x3c0] sm:$0xff]  ;;  %v6258_v54 = vld [vmem:[%s11743_s1 + $0x3c8] sm:$0xff] }
 0x125   : > { %7972 = vmatprep.subr.bf16.mxu0 %v7971_v18 }
 0x127   : > { %7204 = vmatmul.mubr.f32.vlgmr.msra.gmra.mrb[0].mxu0 %v12086_v19  ;;  %v2974_v19 = vcombine.low %v10166_v3, %v10353_v49  ;;  %v12093_v49 = vld [vmem:[#allocation99_spill] sm:$0xff] }
 0x128   : > { %7974 = vmatpush3.bf16.msra.mxu0 %v7971_v18  ;;  %7206 = vmatprep.mubr.f32.mxu0 %v2907_v17  ;;  %v2927_v18 = vcombine.low %v12091_v12, %v2926_v41  ;;  %v6240_v17 = vld [vmem:[%s11743_s1 + $0x340] sm:$0xff]  ;;  %v12092_v41 = vcombine.low %v10136_v48, %v10150_v9  ;;  %v3206_v55 = vcombine.low %v12093_v49, %v12083_v6  ;;  %v6252_v6 = vld [vmem:[%s11743_s1 + $0x398] sm:$0xff] }
 0x129   : > { %7976 = vmatprep.subr.bf16.mxu0 %v7975_v43  ;;  %v7987_v2 = vpack.c.bf16 %v6241_v21, %v6240_v17  ;;  %v2981_v22 = vrot.slane %v2974_v19, %v8891_v10  ;;  %v6253_v17 = vld [vmem:[%s11743_s1 + $0x3a0] sm:$0xff]  ;;  %v6254_v21 = vld [vmem:[%s11743_s1 + $0x3a8] sm:$0xff]  ;;  %v10610_v49 = vld.sshfl [vmem:[%s8772_s28 + $0xb8] sm:$0x33 pattern:$0x76325410] }
 0x12b   : > { %7207 = vmatmul.mubr.f32.gmra.mrb[2].mxu0 %v10493_v37 }
 0x12c   : > { %7978 = vmatpush3.bf16.msra.mxu0 %v7975_v43  ;;  %7209 = vmatprep.mubr.f32.mxu0 %v2917_v8  ;;  %v6242_v43 = vld [vmem:[%s11743_s1 + $0x350] sm:$0xff]  ;;  %v6247_v8 = vld [vmem:[%s11743_s1 + $0x378] sm:$0xff] }
 0x12d   : > { %7980 = vmatprep.subr.bf16.mxu0 %v7979_v42  ;;  %v7991_v44 = vpack.c.bf16 %v6243_v45, %v6242_v43  ;;  %v7999_v31 = vpack.c.bf16 %v6247_v8, %v6246_v40  ;;  %v8011_v43 = vpack.c.bf16 %v6254_v21, %v6253_v17  ;;  %v6256_v45 = vld [vmem:[%s11743_s1 + $0x3b8] sm:$0xff]  ;;  %v6265_v17 = vld [vmem:[%s11743_s1 + $0x400] sm:$0xff]  ;;  %v6266_v21 = vld [vmem:[%s11743_s1 + $0x408] sm:$0xff] }
 0x12f   : > { %7210 = vmatmul.mubr.f32.gmra.mrb[4].mxu0 %v10083_v62 }
 0x130   : > { %7982 = vmatpush3.bf16.msra.mxu0 %v7979_v42  ;;  %7212 = vmatprep.mubr.f32.mxu0 %v2927_v18  ;;  %v6249_v42 = vld [vmem:[%s11743_s1 + $0x380] sm:$0xff]  ;;  %v12094_v18 = vld [vmem:[#allocation103_spill] sm:$0xff] }
 0x131   : > { %7984 = vmatprep.subr.bf16.mxu0 %v7983_v29  ;;  %v8003_v48 = vpack.c.bf16 %v6250_v59, %v6249_v42  ;;  %v3207_v7 = vcombine.low %v12094_v18, %v12089_v4  ;;  %v6255_v4 = vld [vmem:[%s11743_s1 + $0x3b0] sm:$0xff]  ;;  %v12096_v42 = vcombine.low %v10204_v50, %v10150_v9  ;;  %v3253_v59 = vcombine.low %v10422_v35, %v10610_v49  ;;  %v6264_v18 = vld [vmem:[%s11743_s1 + $0x3f8] sm:$0xff] }
 0x132   : > { %v12097_v50 = vld [vmem:[#allocation32_spill] sm:$0xff] }
 0x133   : > { %7213 = vmatmul.mubr.f32.gmra.mrb[6].mxu0 %v10092_v28  ;;  %v3260_v9 = vrot.slane %v3253_v59, %v8891_v10 }
 0x134   : > { %7986 = vmatpush3.bf16.msra.mxu0 %v7983_v29  ;;  %7215 = vmatprep.mubr.f32.mxu0 %v2937_v16  ;;  %v8007_v29 = vpack.c.bf16 %v6252_v6, %v6251_v36  ;;  %v12095_v16 = vld [vmem:[#allocation106_spill] sm:$0xff]  ;;  %v6263_v6 = vld [vmem:[%s11743_s1 + $0x3f0] sm:$0xff] }
 0x135   : > { %7988 = vmatprep.subr.bf16.mxu0 %v7987_v2 }
 0x137   : > { %7216 = vmatmul.mubr.f32.gmra.mrb[8].mxu0 %v10108_v13 }
 0x138   : > { %7990 = vmatpush3.bf16.msra.mxu0 %v7987_v2  ;;  %7218 = vmatprep.mubr.f32.mxu0 %v10112_v58  ;;  %v3208_v2 = vcombine.low %v12091_v12, %v12095_v16  ;;  %v3209_v12 = vcombine.low %v9727_v47, %v9750_v0  ;;  %v3236_v0 = vcombine.low %v10398_v14, %v10386_v57 }
 0x139   : > { %7992 = vmatprep.subr.bf16.mxu0 %v7991_v44  ;;  %v3237_v47 = vcombine.low %v10418_v5, %v10389_v61  ;;  %v8035_v16 = vpack.c.bf16 %v6266_v21, %v6265_v17 }
 0x13b   : > { %7219 = vmatmul.mubr.f32.gmra.mrb[10].mxu0 %v12092_v41  ;;  %v3244_v41 = vrot.slane %v3236_v0, %v8891_v10 }
 0x13c   : > { %7994 = vmatpush3.bf16.msra.mxu0 %v7991_v44  ;;  %7221 = vmatprep.mubr.f32.mxu0 %v10171_v52  ;;  %v8015_v44 = vpack.c.bf16 %v6256_v45, %v6255_v4  ;;  %v12099_v45 = vld [vmem:[#allocation49_spill] sm:$0xff] }
 0x13d   : > { %7996 = vmatprep.subr.bf16.mxu0 %v7995_v53 }
 0x13f   : > { %7222 = vmatmul.mubr.f32.gmra.mrb[12].mxu0 %v2981_v22  ;;  %v3251_v22 = vrot.slane %v3237_v47, %v8891_v10  ;;  %v3433_v47 = vrot.slane %v10418_v5, 7 }
 0x140   : > { %7998 = vmatpush3.bf16.msra.mxu0 %v7995_v53  ;;  %7256 = vmatprep.mubr.f32.mxu0 %v3206_v55  ;;  %v8019_v53 = vpack.c.bf16 %v6258_v54, %v6257_v24  ;;  %v6269_v24 = vld [vmem:[%s11743_s1 + $0x420] sm:$0xff]  ;;  %v6270_v54 = vld [vmem:[%s11743_s1 + $0x428] sm:$0xff] }
 0x141   : > { %8000 = vmatprep.subr.bf16.mxu0 %v7999_v31 }
 0x144   : > { %8002 = vmatpush3.bf16.msra.mxu0 %v7999_v31  ;;  %v6261_v31 = vld [vmem:[%s11743_s1 + $0x3e0] sm:$0xff] }
 0x145   : > { %8004 = vmatprep.subr.bf16.mxu0 %v8003_v48 }
 0x147   : > { %7257 = vmatmul.mubr.f32.vlgmr.msra.gmra.mrb[0].mxu0 %v10493_v37  ;;  %v10578_v37 = vcombine.high %v10394_v25, %v10394_v25 }
 0x148   : > { %8006 = vmatpush3.bf16.msra.mxu0 %v8003_v48  ;;  %7259 = vmatprep.mubr.f32.mxu0 %v3207_v7  ;;  %v3252_v48 = vcombine.low %v3244_v41, %v3251_v22  ;;  %v12098_v7 = vld [vmem:[#allocation24_spill] sm:$0xff]  ;;  %v12105_v41 = vld [vmem:[#allocation53_spill] sm:$0xff] }
 0x149   : > { %8008 = vmatprep.subr.bf16.mxu0 %v8007_v29  ;;  %v3220_v19 = vcombine.low %v10578_v37, %v10372_v51  ;;  %v3421_v4 = vrot.slane %v10578_v37, 7  ;;  %v3430_v37 = vrot.slane %v10386_v57, 7  ;;  %v6271_v57 = vld [vmem:[%s11743_s1 + $0x430] sm:$0xff] }
 0x14b   : > { %7260 = vmatmul.mubr.f32.gmra.mrb[2].mxu0 %v10083_v62  ;;  %v3219_v62 = vcombine.low %v10166_v3, %v10394_v25  ;;  %v6260_v3 = vld [vmem:[%s11743_s1 + $0x3d8] sm:$0xff]  ;;  %v3234_v8 = vrot.slane %v3220_v19, %v8891_v10  ;;  %v3427_v19 = vrot.slane %v10398_v14, 7  ;;  %v12106_v14 = vld [vmem:[#allocation67_spill] sm:$0xff]  ;;  %v3423_v5 = vrot.slane %v3421_v4, 2 }
 0x14c   : > { %8010 = vmatpush3.bf16.msra.mxu0 %v8007_v29  ;;  %7262 = vmatprep.mubr.f32.mxu0 %v3208_v2  ;;  %v3464_v29 = vcombine.low %v12098_v7, %v12097_v50  ;;  %v6267_v2 = vld [vmem:[%s11743_s1 + $0x410] sm:$0xff]  ;;  %v3432_v59 = vrot.slane %v3430_v37, 2  ;;  %v12110_v7 = vld [vmem:[#allocation82_spill] sm:$0xff] }
 0x14d   : > { %8012 = vmatprep.subr.bf16.mxu0 %v8011_v43  ;;  %v3227_v40 = vrot.slane %v3219_v62, %v8891_v10  ;;  %v3424_v62 = vrot.slane %v10372_v51, 7  ;;  %v6248_v51 = vrot.slane %v10394_v25, 9 }
 0x14f   : > { %7263 = vmatmul.mubr.f32.gmra.mrb[4].mxu0 %v10092_v28  ;;  %v6259_v28 = vld [vmem:[%s11743_s1 + $0x3d0] sm:$0xff]  ;;  %v3422_v17 = vsel %vm8935_vm6, %v6248_v51, %v3421_v4  ;;  %v3425_v21 = vsel %vm8935_vm6, %v3423_v5, %v3424_v62  ;;  %v3434_v4 = vsel %vm8935_vm6, %v3432_v59, %v3433_v47  ;;  %v6278_v59 = vld [vmem:[%s11743_s1 + $0x468] sm:$0xff] }
 0x150   : > { %8014 = vmatpush3.bf16.msra.mxu0 %v8011_v43  ;;  %7265 = vmatprep.mubr.f32.mxu0 %v3209_v12  ;;  %v8023_v55 = vpack.c.bf16 %v6260_v3, %v6259_v28  ;;  %v6268_v43 = vld [vmem:[%s11743_s1 + $0x418] sm:$0xff]  ;;  %v12102_v3 = vld [vmem:[#allocation39_spill] sm:$0xff] }
 0x151   : > { %8016 = vmatprep.subr.bf16.mxu0 %v8015_v44  ;;  %v12100_v12 = vld [vmem:[#allocation41_spill] sm:$0xff]  ;;  %v8039_v0 = vpack.c.bf16 %v6268_v43, %v6267_v2  ;;  %v3442_v2 = vrot.slane %v10610_v49, 7 }
 0x152   : > { %v12101_v28 = vld [vmem:[#allocation37_spill] sm:$0xff] }
 0x153   : > { %7266 = vmatmul.mubr.f32.gmra.mrb[6].mxu0 %v10108_v13  ;;  %v6262_v13 = vld [vmem:[%s11743_s1 + $0x3e8] sm:$0xff] }
 0x154   : > { %8018 = vmatpush3.bf16.msra.mxu0 %v8015_v44  ;;  %7268 = vmatprep.mubr.f32.mxu0 %v10112_v58  ;;  %v3235_v58 = vcombine.low %v3227_v40, %v3234_v8  ;;  %v8027_v36 = vpack.c.bf16 %v6262_v13, %v6261_v31  ;;  %v3466_v44 = vcombine.low %v12100_v12, %v12099_v45  ;;  %v12104_v8 = vld [vmem:[#allocation55_spill] sm:$0xff]  ;;  %v12107_v31 = vld [vmem:[#allocation57_spill] sm:$0xff] }
 0x155   : > { %8020 = vmatprep.subr.bf16.mxu0 %v8019_v53  ;;  %v12103_v40 = vcombine.low %v12101_v28, %v12102_v3  ;;  %v3467_v22 = vcombine.low %v12105_v41, %v12104_v8  ;;  %v3468_v13 = vcombine.low %v12107_v31, %v12106_v14  ;;  %v3444_v41 = vrot.slane %v3442_v2, 2  ;;  %v6275_v14 = vld [vmem:[%s11743_s1 + $0x450] sm:$0xff]  ;;  %v6276_v31 = vld [vmem:[%s11743_s1 + $0x458] sm:$0xff] }
 0x157   : > { %7269 = vmatmul.mubr.f32.gmra.mrb[8].mxu0 %v12096_v42  ;;  %v3426_v42 = vrot.slane %v3424_v62, 2  ;;  %v6273_v62 = vld [vmem:[%s11743_s1 + $0x440] sm:$0xff] }
 0x158   : > { %8022 = vmatpush3.bf16.msra.mxu0 %v8019_v53  ;;  %7271 = vmatprep.mubr.f32.mxu0 %v10171_v52  ;;  %v8031_v52 = vpack.c.bf16 %v6264_v18, %v6263_v6  ;;  %v3436_v53 = vrot.slane %v10389_v61, 7  ;;  %v6272_v61 = vld [vmem:[%s11743_s1 + $0x438] sm:$0xff]  ;;  %v12108_v6 = vld [vmem:[#allocation74_spill] sm:$0xff]  ;;  %v12109_v18 = vld [vmem:[#allocation68_spill] sm:$0xff] }
 0x159   : > { %8024 = vmatprep.subr.bf16.mxu0 %v8023_v55  ;;  %v8047_v50 = vpack.c.bf16 %v6272_v61, %v6271_v57 }
 0x15a   : > { %v3438_v25 = vrot.slane %v3436_v53, 2 }
 0x15b   : > { %7272 = vmatmul.mubr.f32.gmra.mrb[10].mxu0 %v3235_v58  ;;  %v3429_v58 = vrot.slane %v3427_v19, 2 }
 0x15c   : > { %8026 = vmatpush3.bf16.msra.mxu0 %v8023_v55  ;;  %7274 = vmatprep.mubr.f32.mxu0 %v3252_v48  ;;  %v8043_v55 = vpack.c.bf16 %v6270_v54, %v6269_v24  ;;  %v3435_v48 = vrot.slane %v3433_v47, 2  ;;  %v12113_v24 = vld [vmem:[#allocation85_spill] sm:$0xff] }
 0x15d   : > { %8028 = vmatprep.subr.bf16.mxu0 %v8027_v36  ;;  %v3431_v43 = vsel %vm8935_vm6, %v3429_v58, %v3430_v37  ;;  %v12115_v37 = vld [vmem:[#allocation93_spill] sm:$0xff]  ;;  %v6277_v58 = vld [vmem:[%s11743_s1 + $0x460] sm:$0xff] }
 0x15e   : > { %v3437_v45 = vsel %vm8935_vm6, %v3435_v48, %v3436_v53  ;;  %v3507_v53 = vcombine.low %v10404_v1, %v3422_v17  ;;  %v12116_v48 = vcombine.low %v10290_v56, %v10293_v46  ;;  %v3729_v46 = vcombine.low %v9856_v20, %v9871_v30  ;;  %v12121_v17 = vld [vmem:[#allocation66_spill] sm:$0xff]  ;;  %v12123_v20 = vld [vmem:[#allocation72_spill] sm:$0xff] }
 0x15f   : > { %7275 = vmatmul.mubr.f32.gmra.mrb[12].mxu0 %v3260_v9  ;;  %v3469_v9 = vcombine.low %v12109_v18, %v12108_v6  ;;  %v8059_v18 = vpack.c.bf16 %v6278_v59, %v6277_v58  ;;  %v4669_v58 = vld [vmem:[%s11745_s3] sm:$0xff]  ;;  %v4670_v59 = vld [vmem:[%s11745_s3 + $0x8] sm:$0xff] }
 0x160   : > { %8030 = vmatpush3.bf16.msra.mxu0 %v8027_v36  ;;  %7309 = vmatprep.mubr.f32.mxu0 %v3464_v29  ;;  %v3439_v36 = vrot.slane %v10422_v35, 7  ;;  %v12111_v29 = vld [vmem:[#allocation78_spill] sm:$0xff]  ;;  %v10686_v35 = vcombine.high %v10610_v49, %v10610_v49  ;;  %v3515_v1 = vrot.slane %v3507_v53, %v8891_v10 }
 0x161   : > { %8032 = vmatprep.subr.bf16.mxu0 %v8031_v52  ;;  %v12135_v53 = vld [vmem:[#allocation18_spill] sm:$0xff] }
 0x162   : > { %v3440_v12 = vsel %vm8935_vm6, %v3438_v25, %v3439_v36  ;;  %v3441_v3 = vrot.slane %v3439_v36, 2 }
 0x163   : > { %v3525_v8 = vcombine.low %v3437_v45, %v3440_v12  ;;  %v12126_v45 = vld [vmem:[#allocation40_spill] sm:$0xff]  ;;  %v12127_v12 = vld [vmem:[#allocation35_spill] sm:$0xff] }
 0x164   : > { %8034 = vmatpush3.bf16.msra.mxu0 %v8031_v52  ;;  %v3470_v52 = vcombine.low %v12111_v29, %v12110_v7  ;;  %v12118_v7 = vld [vmem:[#allocation65_spill] sm:$0xff] }
 0x165   : > { %8036 = vmatprep.subr.bf16.mxu0 %v8035_v16  ;;  %v3539_v61 = vrot.slane %v3525_v8, %v8891_v10  ;;  %v12119_v29 = vcombine.low %v9801_v33, %v12118_v7  ;;  %v3736_v33 = vcombine.low %v12129_v11, %v12128_v39  ;;  %v6289_v8 = vld [vmem:[%s11745_s3 + $0x90] sm:$0xff]  ;;  %v4673_v7 = vld [vmem:[%s11745_s3 + $0x20] sm:$0xff] }
 0x167   : > { %7310 = vmatmul.mubr.f32.vlgmr.msra.gmra.mrb[0].mxu0 %v12103_v40  ;;  %v3524_v40 = vcombine.low %v3431_v43, %v3434_v4  ;;  %v12125_v43 = vld [vmem:[#allocation83_spill] sm:$0xff] }
 0x168   : > { %8038 = vmatpush3.bf16.msra.mxu0 %v8035_v16  ;;  %7312 = vmatprep.mubr.f32.mxu0 %v3466_v44  ;;  %v3428_v16 = vsel %vm8935_vm6, %v3426_v42, %v3427_v19  ;;  %v12112_v44 = vld [vmem:[#allocation90_spill] sm:$0xff]  ;;  %v6274_v19 = vld [vmem:[%s11743_s1 + $0x448] sm:$0xff]  ;;  %v8055_v42 = vpack.c.bf16 %v6276_v31, %v6275_v14  ;;  %v6297_v14 = vld [vmem:[%s11745_s3 + $0xd0] sm:$0xff] }
 0x169   : > { %8040 = vmatprep.subr.bf16.mxu0 %v8039_v0  ;;  %v3471_v54 = vcombine.low %v12113_v24, %v12112_v44  ;;  %v3508_v28 = vcombine.low %v3425_v21, %v3428_v16  ;;  %v8051_v51 = vpack.c.bf16 %v6274_v19, %v6273_v62  ;;  %v3532_v57 = vrot.slane %v3524_v40, %v8891_v10  ;;  %v12122_v16 = vld [vmem:[#allocation81_spill] sm:$0xff]  ;;  %v12130_v24 = vld [vmem:[#allocation60_spill] sm:$0xff]  ;;  %v12132_v19 = vld [vmem:[#allocation19_spill] sm:$0xff] }
 0x16a   : > { %v3733_v30 = vcombine.low %v12123_v20, %v12122_v16  ;;  %v3735_v44 = vcombine.low %v12127_v12, %v12126_v45  ;;  %v6298_v31 = vld [vmem:[%s11745_s3 + $0xd8] sm:$0xff]  ;;  %v4675_v16 = vld [vmem:[%s11745_s3 + $0x30] sm:$0xff] }
 0x16b   : > { %7313 = vmatmul.mubr.f32.gmra.mrb[2].mxu0 %v3467_v22  ;;  %v3445_v22 = vrot.slane %v10686_v35, 7  ;;  %v3540_v6 = vcombine.low %v3532_v57, %v3539_v61  ;;  %v6301_v61 = vld [vmem:[%s11745_s3 + $0xf0] sm:$0xff]  ;;  %v4676_v20 = vld [vmem:[%s11745_s3 + $0x38] sm:$0xff] }
 0x16c   : > { %8042 = vmatpush3.bf16.msra.mxu0 %v8039_v0  ;;  %7315 = vmatprep.mubr.f32.mxu0 %v3468_v13  ;;  %v12114_v0 = vld [vmem:[#allocation94_spill] sm:$0xff]  ;;  %v3443_v13 = vsel %vm8935_vm6, %v3441_v3, %v3442_v2  ;;  %v12124_v2 = vld [vmem:[#allocation17_spill] sm:$0xff]  ;;  %v3774_v3 = vcombine.low %v10610_v49, %v10686_v35 }
 0x16d   : > { %8044 = vmatprep.subr.bf16.mxu0 %v8043_v55  ;;  %v3472_v47 = vcombine.low %v12115_v37, %v12114_v0  ;;  %v3446_v5 = vsel %vm8935_vm6, %v3444_v41, %v3445_v22  ;;  %v3734_v4 = vcombine.low %v12125_v43, %v12124_v2  ;;  %v12133_v0 = vld [vmem:[#allocation16_spill] sm:$0xff]  ;;  %v6290_v49 = vld [vmem:[%s11745_s3 + $0x98] sm:$0xff]  ;;  %v6295_v41 = vld [vmem:[%s11745_s3 + $0xc0] sm:$0xff] }
 0x16e   : > { %v3541_v36 = vcombine.low %v3443_v13, %v3446_v5  ;;  %v3738_v37 = vcombine.low %v12133_v0, %v12132_v19  ;;  %v3781_v40 = vrot.slane %v3774_v3, %v8891_v10  ;;  %v8071_v35 = vpack.c.bf16 %v6290_v49, %v6289_v8  ;;  %v6296_v22 = vld [vmem:[%s11745_s3 + $0xc8] sm:$0xff]  ;;  %v6302_v5 = vld [vmem:[%s11745_s3 + $0xf8] sm:$0xff] }
 0x16f   : > { %7316 = vmatmul.mubr.f32.gmra.mrb[4].mxu0 %v3469_v9  ;;  %v6279_v9 = vld [vmem:[%s11743_s1 + $0x470] sm:$0xff]  ;;  %v6300_v13 = vld [vmem:[%s11745_s3 + $0xe8] sm:$0xff] }
 0x170   : > { %8046 = vmatpush3.bf16.msra.mxu0 %v8043_v55  ;;  %7318 = vmatprep.mubr.f32.mxu0 %v3470_v52  ;;  %v3522_v55 = vrot.slane %v3508_v28, %v8891_v10  ;;  %v3548_v56 = vrot.slane %v3541_v36, %v8891_v10  ;;  %v12120_v52 = vld [vmem:[#allocation77_spill] sm:$0xff] }
 0x171   : > { %8048 = vmatprep.subr.bf16.mxu0 %v8047_v50  ;;  %v3732_v21 = vcombine.low %v12121_v17, %v12120_v52  ;;  %8072 = vmatprep.subr.bf16.mxu1 %v8071_v35 }
 0x172   : > { %v3523_v25 = vcombine.low %v3515_v1, %v3522_v55  ;;  %8074 = vmatpush3.bf16.msra.mxu1 %v8071_v35  ;;  %v8087_v1 = vpack.c.bf16 %v6298_v31, %v6297_v14  ;;  %v6299_v55 = vld [vmem:[%s11745_s3 + $0xe0] sm:$0xff] }
 0x173   : > { %7319 = vmatmul.mubr.f32.gmra.mrb[6].mxu0 %v3471_v54  ;;  %v12131_v54 = vld [vmem:[#allocation48_spill] sm:$0xff]  ;;  %v8091_v57 = vpack.c.bf16 %v6300_v13, %v6299_v55 }
 0x174   : > { %8050 = vmatpush3.bf16.msra.mxu0 %v8047_v50  ;;  %7321 = vmatprep.mubr.f32.mxu0 %v3472_v47  ;;  %v6280_v50 = vld [vmem:[%s11743_s1 + $0x478] sm:$0xff]  ;;  %v3737_v62 = vcombine.low %v12131_v54, %v12130_v24  ;;  %v12134_v47 = vld [vmem:[#allocation20_spill] sm:$0xff]  ;;  %v10874_v54 = vpack.c.bf16 %v4676_v20, %v4675_v16 }
 0x175   : > { %8052 = vmatprep.subr.bf16.mxu0 %v8051_v51  ;;  %v8063_v27 = vpack.c.bf16 %v6280_v50, %v6279_v9  ;;  %v3739_v28 = vcombine.low %v12135_v53, %v12134_v47 }
 0x177   : > { %7322 = vmatmul.mubr.f32.gmra.mrb[8].mxu0 %v12116_v48  ;;  %v10822_v48 = vpack.c.bf16 %v4670_v59, %v4669_v58 }
 0x178   : > { %8054 = vmatpush3.bf16.msra.mxu0 %v8051_v51  ;;  %7324 = vmatprep.mubr.f32.mxu0 %v12117_v34  ;;  %v8083_v51 = vpack.c.bf16 %v6296_v22, %v6295_v41  ;;  %v10830_v34 = vld [vmem:[%s11744_s2] ss:$0 sm:$0xff] }
 0x179   : > { %8056 = vmatprep.subr.bf16.mxu0 %v8055_v42 }
 0x17b   : > { %7325 = vmatmul.mubr.f32.gmra.mrb[10].mxu0 %v3523_v25  ;;  %v12136_v25 = vld [vmem:[#allocation8_spill] sm:$0xff] }
 0x17c   : > { %8058 = vmatpush3.bf16.msra.mxu0 %v8055_v42  ;;  %7327 = vmatprep.mubr.f32.mxu0 %v3540_v6  ;;  %v8095_v42 = vpack.c.bf16 %v6302_v5, %v6301_v61  ;;  %v4261_v36 = vadd.s32 16, %v12136_v25  ;;  %v4252_v6 = vstv %s6283_s15 }
 0x17d   : > { %8060 = vmatprep.subr.bf16.mxu0 %v8059_v18  ;;  %vm4265_vm7 = vcmp.ge.s32.totalorder %v4252_v6, 0  ;;  %vm4271_vm8 = vcmp.lt.s32.totalorder %v4252_v6, 16  ;;  %v10848_v52 = vadd.s32 1, %v4252_v6  ;;  %v10850_v17 = vadd.s32 2, %v4252_v6 }
 0x17e   : > { %v10862_v2 = vadd.s32 3, %v4252_v6  ;;  %v10864_v43 = vadd.s32 4, %v4252_v6  ;;  %v10866_v12 = vadd.s32 5, %v4252_v6  ;;  %vm10888_vm1 = vmand %vm4265_vm7, %vm4271_vm8 }
 0x17f   : > { %7328 = vmatmul.mubr.f32.gmra.mrb[12].mxu0 %v3548_v56  ;;  %vm4266_vm15 = vcmp.ge.s32.totalorder %v10848_v52, 0  ;;  %vm4272_vm0 = vcmp.lt.s32.totalorder %v10848_v52, 16  ;;  %vm4267_vm6 = vcmp.ge.s32.totalorder %v10850_v17, 0  ;;  %vm4273_vm7 = vcmp.lt.s32.totalorder %v10850_v17, 16 }
 0x180   : > { %8062 = vmatpush3.bf16.msra.mxu0 %v8059_v18  ;;  %7362 = vmatprep.mubr.f32.mxu0 %v3729_v46  ;;  %v10832_v18 = vadd.s32 4294967295, %v4261_v36  ;;  %v10836_v46 = vadd.s32 4294967295, %v12136_v25  ;;  %vm10949_vm8 = vmand %vm4266_vm15, %vm4272_vm0  ;;  %vm4268_vm15 = vcmp.ge.s32.totalorder %v10862_v2, 0  ;;  %vm4274_vm0 = vcmp.lt.s32.totalorder %v10862_v2, 16 }
 0x181   : > { %8064 = vmatprep.subr.bf16.mxu0 %v8063_v27 }
 0x182   : > { %vm11884_vm10 = vcmp.lt.s32.totalorder %v10832_v18, 16  ;;  %vm4283_vm12 = vcmp.ge.s32.totalorder %v10836_v46, 0 }
 0x183   : > { %vm10903_vm3 = vmand %vm10888_vm1, %vm11884_vm10 }
 0x184   : > { %8066 = vmatpush3.bf16.msra.mxu0 %v8063_v27  ;;  %v4671_v27 = vld [vmem:[%s11745_s3 + $0x10] sm:$0xff]  ;;  %vm10919_vm4 = vmand %vm10888_vm1, %vm4283_vm12 }
 0x187   : > { %7363 = vmatmul.mubr.f32.vlgmr.msra.gmra.mrb[0].mxu0 %v12119_v29 }
 0x188   : > { %7365 = vmatprep.mubr.f32.mxu0 %v3731_v15  ;;  %v4672_v15 = vld [vmem:[%s11745_s3 + $0x18] sm:$0xff] }
 0x18b   : > { %7366 = vmatmul.mubr.f32.gmra.mrb[2].mxu0 %v3732_v21  ;;  %v4674_v21 = vld [vmem:[%s11745_s3 + $0x28] sm:$0xff] }
 0x18c   : > { %7368 = vmatprep.mubr.f32.mxu0 %v3733_v30  ;;  %v10872_v24 = vpack.c.bf16 %v4674_v21, %v4673_v7 }
 0x18f   : > { %7369 = vmatmul.mubr.f32.gmra.mrb[4].mxu0 %v3734_v4 }
 0x190   : > { %7371 = vmatprep.mubr.f32.mxu0 %v3735_v44  ;;  %v10868_v44 = vpack.c.bf16 %v4672_v15, %v4671_v27 }
 0x193   : > { %7372 = vmatmul.mubr.f32.gmra.mrb[6].mxu0 %v3736_v33 }
 0x194   : > { %7374 = vmatprep.mubr.f32.mxu0 %v3737_v62 }
 0x197   : > { %7375 = vmatmul.mubr.f32.gmra.mrb[8].mxu0 %v3738_v37 }
 0x198   : > { %7377 = vmatprep.mubr.f32.mxu0 %v3739_v28 }
 0x19b   : > { %7378 = vmatmul.mubr.f32.gmra.mrb[10].mxu0 %v3756_v32  ;;  %v8075_v32 = vpack.c.bf16 %v6292_v63, %v6291_v60 }
 0x19c   : > { %7380 = vmatprep.mubr.f32.mxu0 %v3773_v23  ;;  %v8079_v23 = vpack.c.bf16 %v6294_v26, %v6293_v38 }
 0x19d   : > { %8076 = vmatprep.subr.bf16.mxu1 %v8075_v32 }
 0x19e   : > { %8078 = vmatpush3.bf16.msra.mxu1 %v8075_v32 }
 0x19f   : > { %7381 = vmatmul.mubr.f32.gmra.mrb[12].mxu0 %v3781_v40  ;;  %8080 = vmatprep.subr.bf16.mxu1 %v8079_v23 }
 0x1a2   : > { %8082 = vmatpush3.bf16.msra.mxu1 %v8079_v23 }
 0x1a3   : > { %8084 = vmatprep.subr.bf16.mxu1 %v8083_v51 }
 0x1a6   : > { %8086 = vmatpush3.bf16.msra.mxu1 %v8083_v51 }
 0x1a7   : > { %8088 = vmatprep.subr.bf16.mxu1 %v8087_v1 }
 0x1aa   : > { %8090 = vmatpush3.bf16.msra.mxu1 %v8087_v1  ;;  %v6310_v1 = vld [vmem:[%s11745_s3 + $0x138] sm:$0xff] }
 0x1ab   : > { %8092 = vmatprep.subr.bf16.mxu1 %v8091_v57 }
 0x1ae   : > { %8094 = vmatpush3.bf16.msra.mxu1 %v8091_v57 }
 0x1af   : > { %8096 = vmatprep.subr.bf16.mxu1 %v8095_v42 }
 0x1b2   : > { %8098 = vmatpush3.bf16.msra.mxu1 %v8095_v42 }
 0x1b3   : > { %8100 = vmatprep.subr.bf16.mxu1 %v10822_v48 }
 0x25a   : > { %v7364_v9 = vpop.f32.mrb[0].mxu0 }
 0x25b   : > { %v3953_v50 = vadd.f32 %v7364_v9, %v10830_v34  ;;  %v3862_v56 = vpop.f32.mrb[1].mxu0 }
 0x25c   : > { %v3952_v29 = vadd.f32 %v10830_v34, %v3862_v56 }
 0x25d   : > { %vm3967_vm9 = vcmp.ge.f32.partialorder %v3953_v50, 0.0  ;;  %v3981_v30 = vmul.f32 0.125, %v3953_v50 }
 0x25e   : > { %vm3966_vm11 = vcmp.ge.f32.partialorder %v3952_v29, 0.0  ;;  %v3980_v4 = vmul.f32 0.125, %v3952_v29  ;;  %v7367_v45 = vpop.f32.mrb[2].mxu0 }
 0x25f   : > { %v3995_v39 = vsel %vm3967_vm9, %v3953_v50, %v3981_v30  ;;  %v3955_v11 = vadd.f32 %v7367_v45, %v10830_v34  ;;  %v3872_v33 = vpop.f32.mrb[3].mxu0  ;;  %vm10960_vm9 = vmand %vm10949_vm8, %vm4283_vm12  ;;  %v6305_v30 = vld [vmem:[%s11745_s3 + $0x110] sm:$0xff] }
 0x260   : > { %v4039_v62 = vcombine.high %v3995_v39, %v3995_v39  ;;  %v4046_v19 = vrot.slane %v3995_v39, %v8891_v10  ;;  %v3994_v0 = vsel %vm3966_vm11, %v3952_v29, %v3980_v4  ;;  %v3954_v37 = vadd.f32 %v10830_v34, %v3872_v33 }
 0x261   : > { %v4022_v47 = vcombine.high %v3994_v0, %v3994_v0  ;;  %v4029_v53 = vrot.slane %v3994_v0, %v8891_v10  ;;  %vm3969_vm13 = vcmp.ge.f32.partialorder %v3955_v11, 0.0  ;;  %v3983_v28 = vmul.f32 0.125, %v3955_v11 }
 0x262   : > { %v4053_v3 = vrot.slane %v4039_v62, %v8891_v10  ;;  %v4054_v40 = vcombine.high %v4046_v19, %v4046_v19  ;;  %vm3968_vm14 = vcmp.ge.f32.partialorder %v3954_v37, 0.0  ;;  %v3982_v8 = vmul.f32 0.125, %v3954_v37  ;;  %v7370_v49 = vpop.f32.mrb[4].mxu0 }
 0x263   : > { %v4036_v35 = vrot.slane %v4022_v47, %v8891_v10  ;;  %v4037_v60 = vcombine.high %v4029_v53, %v4029_v53  ;;  %v3997_v63 = vsel %vm3969_vm13, %v3955_v11, %v3983_v28  ;;  %v3957_v32 = vadd.f32 %v7370_v49, %v10830_v34  ;;  %v3882_v38 = vpop.f32.mrb[5].mxu0  ;;  %vm10974_vm13 = vmand %vm10949_vm8, %vm11884_vm10 }
 0x264   : > { %v4055_v26 = vcombine.high %v4053_v3, %v4053_v3  ;;  %v4378_v23 = vcombine.low %v4046_v19, %v4054_v40  ;;  %v4073_v41 = vcombine.high %v3997_v63, %v3997_v63  ;;  %v4080_v22 = vrot.slane %v3997_v63, %v8891_v10 }
 0x265   : > { %v4038_v51 = vcombine.high %v4036_v35, %v4036_v35  ;;  %v4361_v14 = vcombine.low %v4029_v53, %v4037_v60  ;;  %v3996_v31 = vsel %vm3968_vm14, %v3954_v37, %v3982_v8  ;;  %vm3971_vm2 = vcmp.ge.f32.partialorder %v3957_v32, 0.0 }
 0x266   : > { %v4379_v55 = vcombine.low %v4053_v3, %v4055_v26  ;;  %v4386_v13 = vrot.slane %v4378_v23, %v8891_v10  ;;  %v4087_v57 = vrot.slane %v4073_v41, %v8891_v10  ;;  %v4088_v61 = vcombine.high %v4080_v22, %v4080_v22  ;;  %v7373_v5 = vpop.f32.mrb[6].mxu0 }
 0x267   : > { %v4362_v42 = vcombine.low %v4036_v35, %v4038_v51  ;;  %v4369_v58 = vrot.slane %v4361_v14, %v8891_v10  ;;  %v4056_v59 = vcombine.high %v3996_v31, %v3996_v31  ;;  %v4063_v25 = vrot.slane %v3996_v31, %v8891_v10  ;;  %v3892_v36 = vpop.f32.mrb[7].mxu0 }
 0x268   : > { %v4393_v6 = vrot.slane %v4379_v55, %v8891_v10  ;;  %v10897_v9 = vcombine.low %v4088_v61, %v4087_v57  ;;  %v3985_v56 = vmul.f32 0.125, %v3957_v32  ;;  %v3956_v27 = vadd.f32 %v10830_v34, %v3882_v38  ;;  %v6334_v55 = vld [vmem:[%s11745_s3 + $0x1f8] sm:$0xff] }
 0x269   : > { %v4376_v15 = vrot.slane %v4362_v42, %v8891_v10  ;;  %v4070_v7 = vrot.slane %v4056_v59, %v8891_v10  ;;  %v4071_v29 = vcombine.high %v4063_v25, %v4063_v25  ;;  %v4401_v21 = vrot.slane %v4063_v25, %v8891_v10 }
 0x26a   : > { %v10911_v16 = vcombine.low %v4386_v13, %v4393_v6  ;;  %v4427_v20 = vrot.slane %v10897_v9, %v8891_v10  ;;  %v3999_v4 = vsel %vm3971_vm2, %v3957_v32, %v3985_v56  ;;  %vm3970_vm5 = vcmp.ge.f32.partialorder %v3956_v27, 0.0  ;;  %v7376_v45 = vpop.f32.mrb[8].mxu0 }
 0x26b   : > { %v10924_v39 = vcombine.low %v4369_v58, %v4376_v15  ;;  %v4072_v11 = vcombine.high %v4070_v7, %v4070_v7  ;;  %v4402_v33 = vcombine.low %v4071_v29, %v4070_v7  ;;  %v4627_v62 = vsel %vm10903_vm3, %v4401_v21, 0.0  ;;  %v3902_v19 = vpop.f32.mrb[9].mxu0 }
 0x26c   : > { %v4626_v0 = vsel %vm10888_vm1, %v10911_v16, 0.0  ;;  %4645 = vst [vmem:[#allocation3 + $0x10] sm:$0x3] %v4627_v62  ;;  %v4107_v37 = vcombine.high %v3999_v4, %v3999_v4  ;;  %v4114_v47 = vrot.slane %v3999_v4, %v8891_v10  ;;  %v3984_v53 = vmul.f32 0.125, %v3956_v27 }
 0x26d   : > { %v4403_v28 = vcombine.low %v4072_v11, %v4080_v22  ;;  %v4410_v3 = vrot.slane %v4402_v33, %v8891_v10  ;;  %v4625_v40 = vsel %vm10919_vm4, %v10924_v39, 0.0  ;;  %4644 = vst [vmem:[#allocation3 + $0x8] sm:$0xff] %v4626_v0  ;;  %v4089_v8 = vcombine.high %v4087_v57, %v4087_v57 }
 0x26e   : > { %4643 = vst [vmem:[#allocation3] sm:$0xff] %v4625_v40  ;;  %v4121_v49 = vrot.slane %v4107_v37, %v8891_v10  ;;  %v4122_v35 = vcombine.high %v4114_v47, %v4114_v47  ;;  %v3998_v60 = vsel %vm3970_vm5, %v3956_v27, %v3984_v53  ;;  %v3959_v63 = vadd.f32 %v7373_v5, %v10830_v34  ;;  %v10941_v32 = vpop.f32.mrb[10].mxu0  ;;  %vm11013_vm5 = vmand %vm4267_vm6, %vm4273_vm7 }
 0x26f   : > { %v4417_v38 = vrot.slane %v4403_v28, %v8891_v10  ;;  %v4090_v26 = vcombine.high %v3998_v60, %v3998_v60  ;;  %v4097_v23 = vrot.slane %v3998_v60, %v8891_v10  ;;  %v3958_v22 = vadd.f32 %v10830_v34, %v3892_v36  ;;  %v10954_v51 = vpop.f32.mrb[11].mxu0  ;;  %vm11036_vm6 = vmand %vm11013_vm5, %vm11884_vm10 }
 0x270   : > { %v4123_v14 = vcombine.high %v4121_v49, %v4121_v49  ;;  %v4444_v31 = vcombine.low %v4114_v47, %v4122_v35  ;;  %vm3973_vm11 = vcmp.ge.f32.partialorder %v3959_v63, 0.0  ;;  %v3987_v52 = vmul.f32 0.125, %v3959_v63  ;;  %v6382_v35 = vld [vmem:[%s11745_s3 + $0x378] sm:$0xff] }
 0x271   : > { %v10964_v13 = vcombine.low %v4410_v3, %v4417_v38  ;;  %v4104_v57 = vrot.slane %v4090_v26, %v8891_v10  ;;  %v4105_v61 = vcombine.high %v4097_v23, %v4097_v23  ;;  %v4420_v5 = vcombine.low %v4089_v8, %v4097_v23 }
 0x272   : > { %v4458_v42 = vrot.slane %v4444_v31, %v8891_v10  ;;  %v10968_v58 = vcombine.low %v4121_v49, %v4123_v14  ;;  %v4001_v25 = vsel %vm3973_vm11, %v3959_v63, %v3987_v52  ;;  %vm3972_vm14 = vcmp.ge.f32.partialorder %v3958_v22, 0.0  ;;  %v10980_v36 = vpop.f32.mrb[12].mxu0  ;;  %vm11022_vm11 = vmand %vm11013_vm5, %vm4283_vm12 }
 0x273   : > { %v4106_v6 = vcombine.high %v4104_v57, %v4104_v57  ;;  %v4434_v9 = vrot.slane %v4420_v5, %v8891_v10  ;;  %v4442_v50 = vrot.slane %v4105_v61, %v8891_v10  ;;  %v4628_v56 = vsel %vm10960_vm9, %v10964_v13, 0.0  ;;  %v10987_v27 = vpop.f32.mrb[13].mxu0 }
 0x274   : > { %v4468_v15 = vrot.slane %v10968_v58, %v8891_v10  ;;  %4646 = vst [vmem:[#allocation3 + $0x18] sm:$0xff] %v4628_v56  ;;  %v4141_v7 = vcombine.high %v4001_v25, %v4001_v25  ;;  %v4148_v29 = vrot.slane %v4001_v25, %v8891_v10  ;;  %v3986_v21 = vmul.f32 0.125, %v3958_v22 }
 0x275   : > { %v10992_v4 = vcombine.low %v4427_v20, %v4434_v9  ;;  %v4443_v11 = vcombine.low %v4104_v57, %v4106_v6  ;;  %v4630_v33 = vsel %vm10974_vm13, %v4442_v50, 0.0  ;;  %v3961_v62 = vadd.f32 %v7376_v45, %v10830_v34  ;;  %v4685_v0 = vld [vmem:[#allocation3 + $0x1] sm:$0xff]  ;;  %v4686_v20 = vld [vmem:[#allocation3 + $0x9] sm:$0xff] }
 0x276   : > { %4648 = vst [vmem:[#allocation3 + $0x28] sm:$0x3] %v4630_v33  ;;  %v10998_v37 = vrot.slane %v4141_v7, %v8891_v10  ;;  %v4156_v47 = vcombine.high %v4148_v29, %v4148_v29  ;;  %v4000_v53 = vsel %vm3972_vm14, %v3958_v22, %v3986_v21  ;;  %v3960_v28 = vadd.f32 %v10830_v34, %v3902_v19 }
 0x277   : > { %vm4269_vm2 = vcmp.ge.s32.totalorder %v10864_v43, 0  ;;  %vm4275_vm3 = vcmp.lt.s32.totalorder %v10864_v43, 16  ;;  %7415 = vmatprep.mubr.f32.mxu1 %v4685_v0  ;;  %v4451_v3 = vrot.slane %v4443_v11, %v8891_v10  ;;  %v4629_v45 = vsel %vm10949_vm8, %v10992_v4, 0.0  ;;  %v4677_v11 = vld [vmem:[%s11745_s3 + $0x40] sm:$0xff] }
 0x278   : > { %v4124_v40 = vcombine.high %v4000_v53, %v4000_v53  ;;  %v4131_v8 = vrot.slane %v4000_v53, %v8891_v10  ;;  %7416 = vmatmul.mubr.f32.vlgmr.msra.gmra.mrb[0].mxu1 %v4686_v20  ;;  %4647 = vst [vmem:[#allocation3 + $0x20] sm:$0xff] %v4629_v45  ;;  %v4485_v49 = vcombine.low %v4156_v47, %v10998_v37  ;;  %vm3975_vm13 = vcmp.ge.f32.partialorder %v3961_v62, 0.0  ;;  %v4678_v53 = vld [vmem:[%s11745_s3 + $0x48] sm:$0xff] }
 0x279   : > { %v3989_v60 = vmul.f32 0.125, %v3961_v62  ;;  %vm3974_vm14 = vcmp.ge.f32.partialorder %v3960_v28, 0.0  ;;  %8102 = vmatpush3.bf16.msra.mxu1 %v10822_v48  ;;  %v11027_v17 = vcombine.low %v4451_v3, %v4458_v42  ;;  %v3988_v26 = vmul.f32 0.125, %v3960_v28 }
 0x27a   : > { %v4138_v63 = vrot.slane %v4124_v40, %v8891_v10  ;;  %v4139_v38 = vcombine.high %v4131_v8, %v4131_v8  ;;  %8104 = vmatprep.subr.bf16.mxu1 %v10868_v44  ;;  %v4499_v23 = vrot.slane %v4485_v49, %v8891_v10  ;;  %v4157_v48 = vcombine.high %v10998_v37, %v10998_v37 }
 0x27b   : > { %v4003_v14 = vsel %vm3975_vm13, %v3961_v62, %v3989_v60  ;;  %v3963_v31 = vadd.f32 %v10941_v32, %v10830_v34  ;;  %v4631_v5 = vsel %vm11022_vm11, %v11027_v17, 0.0  ;;  %v4002_v25 = vsel %vm3974_vm14, %v3960_v28, %v3988_v26  ;;  %vm11058_vm13 = vmand %vm4268_vm15, %vm4274_vm0 }
 0x27c   : > { %v4140_v52 = vcombine.high %v4138_v63, %v4138_v63  ;;  %v4461_v57 = vcombine.low %v4131_v8, %v4139_v38  ;;  %v4483_v61 = vrot.slane %v4138_v63, %v8891_v10  ;;  %4649 = vst [vmem:[#allocation3 + $0x30] sm:$0xff] %v4631_v5  ;;  %v4175_v42 = vcombine.high %v4003_v14, %v4003_v14  ;;  %vm11088_vm15 = vmand %vm11058_vm13, %vm4283_vm12  ;;  %v4680_v5 = vld [vmem:[%s11745_s3 + $0x58] sm:$0xff] }
 0x27d   : > { %v4182_v59 = vrot.slane %v4003_v14, %v8891_v10  ;;  %vm3977_vm7 = vcmp.ge.f32.partialorder %v3963_v31, 0.0  ;;  %8106 = vmatpush3.bf16.msra.mxu1 %v10868_v44  ;;  %v4158_v50 = vcombine.high %v4002_v25, %v4002_v25  ;;  %v3991_v21 = vmul.f32 0.125, %v3963_v31  ;;  %vm11104_vm14 = vmand %vm4269_vm2, %vm4275_vm3 }
 0x27e   : > { %v4475_v6 = vrot.slane %v4461_v57, %v8891_v10  ;;  %v4484_v32 = vcombine.low %v4140_v52, %v4148_v29  ;;  %v4633_v9 = vsel %vm11036_vm6, %v4483_v61, 0.0  ;;  %8108 = vmatprep.subr.bf16.mxu1 %v10872_v24  ;;  %v4189_v44 = vrot.slane %v4175_v42, %v8891_v10  ;;  %vm11114_vm6 = vmand %vm11058_vm13, %vm11884_vm10  ;;  %v4679_v61 = vld [vmem:[%s11745_s3 + $0x50] sm:$0xff] }
 0x27f   : > { %4651 = vst [vmem:[#allocation3 + $0x40] sm:$0x3] %v4633_v9  ;;  %v4190_v7 = vcombine.high %v4182_v59, %v4182_v59  ;;  %v4165_v29 = vrot.slane %v4002_v25, %v8891_v10  ;;  %v4172_v62 = vrot.slane %v4158_v50, %v8891_v10  ;;  %v3962_v0 = vadd.f32 %v10830_v34, %v10954_v51  ;;  %v11077_v37 = vld [vmem:[#allocation3 + $0x19] sm:$0xff]  ;;  %v11079_v47 = vld [vmem:[#allocation3 + $0x21] sm:$0xff]  ;;  %vm11134_vm2 = vmand %vm11104_vm14, %vm11884_vm10 }
 0x280   : > { %v11071_v2 = vcombine.low %v4468_v15, %v4475_v6  ;;  %v4492_v33 = vrot.slane %v4484_v32, %v8891_v10  ;;  %v4191_v28 = vcombine.high %v4189_v44, %v4189_v44  ;;  %vm4270_vm0 = vcmp.ge.s32.totalorder %v10866_v12, 0  ;;  %7418 = vmatprep.mubr.f32.mxu1 %v11077_v37  ;;  %v6392_v15 = vld [vmem:[%s11745_s3 + $0x3c8] sm:$0xff]  ;;  %v6394_v25 = vld [vmem:[%s11745_s3 + $0x3d8] sm:$0xff] }
 0x281   : > { %v4525_v20 = vcombine.low %v4182_v59, %v4190_v7  ;;  %v4173_v58 = vcombine.high %v4165_v29, %v4165_v29  ;;  %v4501_v51 = vcombine.low %v4157_v48, %v4165_v29  ;;  %v4174_v40 = vcombine.high %v4172_v62, %v4172_v62  ;;  %7419 = vmatmul.mubr.f32.gmra.mrb[2].mxu1 %v11079_v47 }
 0x282   : > { %v11094_v3 = vcombine.low %v4492_v33, %v4499_v23  ;;  %v4632_v45 = vsel %vm11013_vm5, %v11071_v2, 0.0  ;;  %v4005_v8 = vsel %vm3977_vm7, %v3963_v31, %v3991_v21  ;;  %v4526_v60 = vcombine.low %v4189_v44, %v4191_v28  ;;  %8110 = vmatpush3.bf16.msra.mxu1 %v10872_v24  ;;  %vm11150_vm7 = vmand %vm11104_vm14, %vm4283_vm12  ;;  %v4681_v33 = vld [vmem:[%s11745_s3 + $0x60] sm:$0xff] }
 0x283   : > { %4650 = vst [vmem:[#allocation3 + $0x38] sm:$0xff] %v4632_v45  ;;  %v4533_v63 = vrot.slane %v4525_v20, %v8891_v10  ;;  %v4502_v26 = vcombine.low %v4173_v58, %v4172_v62  ;;  %v8115_v43 = vpack.c.bf16 %v4678_v53, %v4677_v11  ;;  %v4509_v23 = vrot.slane %v4501_v51, %v8891_v10  ;;  %v4682_v62 = vld [vmem:[%s11745_s3 + $0x68] sm:$0xff] }
 0x284   : > { %v4524_v22 = vrot.slane %v4174_v40, %v8891_v10  ;;  %v4634_v14 = vsel %vm11088_vm15, %v11094_v3, 0.0  ;;  %v11125_v48 = vrot.slane %v4005_v8, %v8891_v10  ;;  %8112 = vmatprep.subr.bf16.mxu1 %v10874_v54  ;;  %v4540_v31 = vrot.slane %v4526_v60, %v8891_v10 }
 0x285   : > { %v4516_v52 = vrot.slane %v4502_v26, %v8891_v10  ;;  %4652 = vst [vmem:[#allocation3 + $0x48] sm:$0xff] %v4634_v14  ;;  %vm3976_vm3 = vcmp.ge.f32.partialorder %v3962_v0, 0.0  ;;  %v3990_v57 = vmul.f32 0.125, %v3962_v0  ;;  %v4209_v59 = vcombine.high %v4005_v8, %v4005_v8 }
 0x286   : > { %v4636_v42 = vsel %vm11114_vm6, %v4524_v22, 0.0  ;;  %v4565_v6 = vrot.slane %v11125_v48, %v8891_v10  ;;  %vm4276_vm10 = vcmp.lt.s32.totalorder %v10866_v12, 16  ;;  %v11157_v32 = vcombine.low %v4533_v63, %v4540_v31  ;;  %8114 = vmatpush3.bf16.msra.mxu1 %v10874_v54  ;;  %v4683_v22 = vld [vmem:[%s11745_s3 + $0x70] sm:$0xff]  ;;  %v4684_v12 = vld [vmem:[%s11745_s3 + $0x78] sm:$0xff] }
 0x287   : > { %v11159_v9 = vcombine.low %v4509_v23, %v4516_v52  ;;  %4654 = vst [vmem:[#allocation3 + $0x58] sm:$0x3] %v4636_v42  ;;  %v4004_v50 = vsel %vm3976_vm3, %v3962_v0, %v3990_v57  ;;  %v3965_v44 = vadd.f32 %v10980_v36, %v10830_v34  ;;  %8116 = vmatprep.subr.bf16.mxu1 %v8115_v43  ;;  %v6313_v31 = vld [vmem:[%s11745_s3 + $0x150] sm:$0xff] }
 0x288   : > { %v4639_v7 = vsel %vm11134_vm2, %v4565_v6, 0.0  ;;  %v4192_v29 = vcombine.high %v4004_v50, %v4004_v50  ;;  %v4199_v21 = vrot.slane %v4004_v50, %v8891_v10  ;;  %v8119_v11 = vpack.c.bf16 %v4680_v5, %v4679_v61  ;;  %vm11193_vm2 = vmand %vm4270_vm0, %vm4276_vm10 }
 0x289   : > { %v4635_v54 = vsel %vm11058_vm13, %v11159_v9, 0.0  ;;  %v4637_v36 = vsel %vm11150_vm7, %v11157_v32, 0.0  ;;  %4657 = vst [vmem:[#allocation3 + $0x70] sm:$0x3] %v4639_v7  ;;  %vm3979_vm6 = vcmp.ge.f32.partialorder %v3965_v44, 0.0  ;;  %v3993_v0 = vmul.f32 0.125, %v3965_v44 }
 0x28a   : > { %4653 = vst [vmem:[#allocation3 + $0x50] sm:$0xff] %v4635_v54  ;;  %4655 = vst [vmem:[#allocation3 + $0x60] sm:$0xff] %v4637_v36  ;;  %v4206_v53 = vrot.slane %v4192_v29, %v8891_v10  ;;  %v4207_v28 = vcombine.high %v4199_v21, %v4199_v21  ;;  %v3964_v20 = vadd.f32 %v10830_v34, %v10987_v27  ;;  %v11182_v58 = vld [vmem:[#allocation3 + $0x31] sm:$0xff]  ;;  %v11184_v51 = vld [vmem:[#allocation3 + $0x39] sm:$0xff]  ;;  %8118 = vmatpush3.bf16.msra.mxu1 %v8115_v43 }
 0x28b   : > { %v4223_v45 = vrot.slane %v4209_v59, %v8891_v10  ;;  %v4007_v40 = vsel %vm3979_vm6, %v3965_v44, %v3993_v0  ;;  %7421 = vmatprep.mubr.f32.mxu1 %v11182_v58  ;;  %v8123_v8 = vpack.c.bf16 %v4682_v62, %v4681_v33  ;;  %8120 = vmatprep.subr.bf16.mxu1 %v8119_v11  ;;  %vm12169_vm10 = vcmp.lt.s32.totalorder %v10832_v18, 16  ;;  %vm11247_vm6 = vmand %vm11193_vm2, %vm4283_vm12  ;;  %v6397_v34 = vld [vmem:[%s11745_s3 + $0x3f0] sm:$0xff] }
 0x28c   : > { %v4208_v60 = vcombine.high %v4206_v53, %v4206_v53  ;;  %v4542_v63 = vcombine.low %v4199_v21, %v4207_v28  ;;  %v4249_v38 = vrot.slane %v4007_v40, %v8891_v10  ;;  %vm3978_vm3 = vcmp.ge.f32.partialorder %v3964_v20, 0.0  ;;  %7422 = vmatmul.mubr.f32.gmra.mrb[4].mxu1 %v11184_v51  ;;  %vm11211_vm0 = vmand %vm11193_vm2, %vm12169_vm10  ;;  %v6303_v21 = vld [vmem:[%s11745_s3 + $0x100] sm:$0xff] }
 0x28d   : > { %v4224_v27 = vcombine.high %v11125_v48, %v11125_v48  ;;  %v3992_v26 = vmul.f32 0.125, %v3964_v20  ;;  %v4225_v52 = vcombine.high %v4223_v45, %v4223_v45  ;;  %v8127_v6 = vpack.c.bf16 %v4684_v12, %v4683_v22  ;;  %v6311_v22 = vld [vmem:[%s11745_s3 + $0x140] sm:$0xff]  ;;  %v6312_v12 = vld [vmem:[%s11745_s3 + $0x148] sm:$0xff] }
 0x28e   : > { %v4543_v43 = vcombine.low %v4206_v53, %v4208_v60  ;;  %v4250_v23 = vcombine.high %v4249_v38, %v4249_v38  ;;  %v4550_v14 = vrot.slane %v4542_v63, %v8891_v10  ;;  %8122 = vmatpush3.bf16.msra.mxu1 %v8119_v11  ;;  %v6304_v11 = vld [vmem:[%s11745_s3 + $0x108] sm:$0xff] }
 0x28f   : > { %v4006_v48 = vsel %vm3978_vm3, %v3964_v20, %v3992_v26  ;;  %8124 = vmatprep.subr.bf16.mxu1 %v8123_v8  ;;  %v4566_v42 = vcombine.low %v4224_v27, %v4223_v45  ;;  %v8131_v28 = vpack.c.bf16 %v6304_v11, %v6303_v21  ;;  %v6307_v27 = vld [vmem:[%s11745_s3 + $0x120] sm:$0xff]  ;;  %v6308_v26 = vld [vmem:[%s11745_s3 + $0x128] sm:$0xff]  ;;  %v6321_v11 = vld [vmem:[%s11745_s3 + $0x190] sm:$0xff] }
 0x290   : > { %v4557_v24 = vrot.slane %v4543_v43, %v8891_v10  ;;  %v4606_v57 = vrot.slane %v4250_v23, %v8891_v10  ;;  %v4226_v61 = vcombine.high %v4006_v48, %v4006_v48  ;;  %v4233_v5 = vrot.slane %v4006_v48, %v8891_v10  ;;  %v6309_v23 = vld [vmem:[%s11745_s3 + $0x130] sm:$0xff]  ;;  %v6314_v48 = vld [vmem:[%s11745_s3 + $0x158] sm:$0xff] }
 0x291   : > { %v11218_v59 = vld [vmem:[#allocation3 + $0x49] sm:$0xff]  ;;  %v11220_v18 = vld [vmem:[#allocation3 + $0x51] sm:$0xff]  ;;  %v4574_v0 = vrot.slane %v4566_v42, %v8891_v10  ;;  %v8139_v43 = vpack.c.bf16 %v6308_v26, %v6307_v27 }
 0x292   : > { %v11222_v50 = vcombine.low %v4550_v14, %v4557_v24  ;;  %v4642_v44 = vsel %vm11211_vm0, %v4606_v57, 0.0  ;;  %v4240_v7 = vrot.slane %v4226_v61, %v8891_v10  ;;  %v4241_v29 = vcombine.high %v4233_v5, %v4233_v5  ;;  %7424 = vmatprep.mubr.f32.mxu1 %v11218_v59  ;;  %8126 = vmatpush3.bf16.msra.mxu1 %v8123_v8  ;;  %v6315_v57 = vld [vmem:[%s11745_s3 + $0x160] sm:$0xff]  ;;  %v6316_v61 = vld [vmem:[%s11745_s3 + $0x168] sm:$0xff]  ;;  %v6317_v42 = vld [vmem:[%s11745_s3 + $0x170] sm:$0xff] }
 0x293   : > { %4660 = vst [vmem:[#allocation3 + $0x88] sm:$0x3] %v4642_v44  ;;  %v4567_v33 = vcombine.low %v4225_v52, %v4233_v5  ;;  %7425 = vmatmul.mubr.f32.gmra.mrb[6].mxu1 %v11220_v18  ;;  %8128 = vmatprep.subr.bf16.mxu1 %v8127_v6  ;;  %v8147_v14 = vpack.c.bf16 %v6312_v12, %v6311_v22  ;;  %v4920_v52 = vld [vmem:[#allocation3 + $0x2] sm:$0xff]  ;;  %v11368_v26 = vld [vmem:[#allocation3 + $0x4a] sm:$0xff] }
 0x294   : > { %v4638_v62 = vsel %vm11104_vm14, %v11222_v50, 0.0  ;;  %v4242_v54 = vcombine.high %v4240_v7, %v4240_v7  ;;  %v4583_v36 = vcombine.low %v4241_v29, %v4240_v7  ;;  %8592 = vmatprep.mubr.msk.f32.mxu1 %vm10919_vm4, %v10924_v39  ;;  %v6306_v39 = vld [vmem:[%s11745_s3 + $0x118] sm:$0xff]  ;;  %v8151_v24 = vpack.c.bf16 %v6314_v48, %v6313_v31  ;;  %v6319_v7 = vld [vmem:[%s11745_s3 + $0x180] sm:$0xff]  ;;  %v6320_v29 = vld [vmem:[%s11745_s3 + $0x188] sm:$0xff] }
 0x295   : > { %4656 = vst [vmem:[#allocation3 + $0x68] sm:$0xff] %v4638_v62  ;;  %v4581_v53 = vrot.slane %v4567_v33, %v8891_v10  ;;  %v8135_v63 = vpack.c.bf16 %v6306_v39, %v6305_v30  ;;  %v8155_v5 = vpack.c.bf16 %v6316_v61, %v6315_v57  ;;  %v8163_v21 = vpack.c.bf16 %v6320_v29, %v6319_v7  ;;  %v6322_v33 = vld [vmem:[%s11745_s3 + $0x198] sm:$0xff]  ;;  %v6325_v30 = vld [vmem:[%s11745_s3 + $0x1b0] sm:$0xff]  ;;  %v6328_v27 = vld [vmem:[%s11745_s3 + $0x1c8] sm:$0xff] }
 0x296   : > { %v4584_v45 = vcombine.low %v4242_v54, %v4249_v38  ;;  %v4591_v8 = vrot.slane %v4583_v36, %v8891_v10  ;;  %8130 = vmatpush3.bf16.msra.mxu1 %v8127_v6  ;;  %v6318_v6 = vld [vmem:[%s11745_s3 + $0x178] sm:$0xff]  ;;  %v8167_v62 = vpack.c.bf16 %v6322_v33, %v6321_v11  ;;  %v4921_v54 = vld [vmem:[#allocation3 + $0xa] sm:$0xff]  ;;  %v6323_v36 = vld [vmem:[%s11745_s3 + $0x1a0] sm:$0xff] }
 0x297   : > { %v11257_v40 = vcombine.low %v4574_v0, %v4581_v53  ;;  %8132 = vmatprep.subr.bf16.mxu1 %v8131_v28  ;;  %v8159_v44 = vpack.c.bf16 %v6318_v6, %v6317_v42  ;;  %v6324_v0 = vld [vmem:[%s11745_s3 + $0x1a8] sm:$0xff]  ;;  %v11344_v53 = vld [vmem:[#allocation3 + $0x1a] sm:$0xff]  ;;  %v6333_v31 = vld [vmem:[%s11745_s3 + $0x1f0] sm:$0xff] }
 0x298   : > { %v4598_v46 = vrot.slane %v4584_v45, %v8891_v10  ;;  %v11347_v45 = vld [vmem:[#allocation3 + $0x22] sm:$0xff]  ;;  %v6326_v39 = vld [vmem:[%s11745_s3 + $0x1b8] sm:$0xff]  ;;  %v6337_v57 = vld [vmem:[%s11745_s3 + $0x210] sm:$0xff] }
 0x299   : > { %v4640_v60 = vsel %vm11247_vm6, %v11257_v40, 0.0  ;;  %8593 = vmatmul.mubr.msk.f32.vlgmr.msra.gmra.mrb[0].mxu1 %vm10888_vm1, %v10911_v16  ;;  %v8143_v16 = vpack.c.bf16 %v6310_v1, %v6309_v23  ;;  %v6329_v23 = vld [vmem:[%s11745_s3 + $0x1d0] sm:$0xff]  ;;  %v6330_v1 = vld [vmem:[%s11745_s3 + $0x1d8] sm:$0xff]  ;;  %v6331_v22 = vld [vmem:[%s11745_s3 + $0x1e0] sm:$0xff] }
 0x29a   : > { %v11264_v38 = vcombine.low %v4591_v8, %v4598_v46  ;;  %4658 = vst [vmem:[#allocation3 + $0x78] sm:$0xff] %v4640_v60  ;;  %8594 = vmatprep.mubr.msk.f32.mxu1 %vm10960_vm9, %v10964_v13  ;;  %8134 = vmatpush3.bf16.msra.mxu1 %v8131_v28  ;;  %v8171_v28 = vpack.c.bf16 %v6324_v0, %v6323_v36  ;;  %v11356_v8 = vld [vmem:[#allocation3 + $0x32] sm:$0xff]  ;;  %v11359_v60 = vld [vmem:[#allocation3 + $0x3a] sm:$0xff]  ;;  %v6332_v12 = vld [vmem:[%s11745_s3 + $0x1e8] sm:$0xff] }
 0x29b   : > { %8136 = vmatprep.subr.bf16.mxu1 %v8135_v63  ;;  %v8175_v46 = vpack.c.bf16 %v6326_v39, %v6325_v30  ;;  %v6335_v48 = vld [vmem:[%s11745_s3 + $0x200] sm:$0xff]  ;;  %v6338_v61 = vld [vmem:[%s11745_s3 + $0x218] sm:$0xff]  ;;  %v6340_v6 = vld [vmem:[%s11745_s3 + $0x228] sm:$0xff] }
 0x29c   : > { %v4641_v10 = vsel %vm11193_vm2, %v11264_v38, 0.0  ;;  %v6339_v42 = vld [vmem:[%s11745_s3 + $0x220] sm:$0xff]  ;;  %v6341_v7 = vld [vmem:[%s11745_s3 + $0x230] sm:$0xff]  ;;  %v6342_v29 = vld [vmem:[%s11745_s3 + $0x238] sm:$0xff] }
 0x29d   : > { %4659 = vst [vmem:[#allocation3 + $0x80] sm:$0xff] %v4641_v10  ;;  %8595 = vmatmul.mubr.msk.f32.gmra.mrb[2].mxu1 %vm10949_vm8, %v10992_v4  ;;  %v8207_v41 = vpack.c.bf16 %v6342_v29, %v6341_v7  ;;  %v6345_v33 = vld [vmem:[%s11745_s3 + $0x250] sm:$0xff]  ;;  %v6347_v36 = vld [vmem:[%s11745_s3 + $0x260] sm:$0xff]  ;;  %v6348_v0 = vld [vmem:[%s11745_s3 + $0x268] sm:$0xff] }
 0x29e   : > { %8596 = vmatprep.mubr.msk.f32.mxu1 %vm11022_vm11, %v11027_v17  ;;  %8138 = vmatpush3.bf16.msra.mxu1 %v8135_v63  ;;  %v6327_v63 = vld [vmem:[%s11745_s3 + $0x1c0] sm:$0xff]  ;;  %v6349_v30 = vld [vmem:[%s11745_s3 + $0x270] sm:$0xff] }
 0x29f   : > { %8140 = vmatprep.subr.bf16.mxu1 %v8139_v43  ;;  %v8179_v10 = vpack.c.bf16 %v6328_v27, %v6327_v63  ;;  %v6352_v63 = vld [vmem:[%s11745_s3 + $0x288] sm:$0xff]  ;;  %v6365_v7 = vld [vmem:[%s11745_s3 + $0x2f0] sm:$0xff] }
 0x2a1   : > { %8597 = vmatmul.mubr.msk.f32.gmra.mrb[4].mxu1 %vm11013_vm5, %v11071_v2 }
 0x2a2   : > { %8598 = vmatprep.mubr.msk.f32.mxu1 %vm11088_vm15, %v11094_v3  ;;  %8142 = vmatpush3.bf16.msra.mxu1 %v8139_v43  ;;  %v11371_v43 = vld [vmem:[#allocation3 + $0x52] sm:$0xff] }
 0x2a3   : > { %8144 = vmatprep.subr.bf16.mxu1 %v8143_v16 }
 0x2a5   : > { %8599 = vmatmul.mubr.msk.f32.gmra.mrb[6].mxu1 %vm11058_vm13, %v11159_v9 }
 0x2a6   : > { %8146 = vmatpush3.bf16.msra.mxu1 %v8143_v16  ;;  %7503 = vmatprep.mubr.f32.mxu1 %v4920_v52  ;;  %v8183_v16 = vpack.c.bf16 %v6330_v1, %v6329_v23  ;;  %v6336_v52 = vld [vmem:[%s11745_s3 + $0x208] sm:$0xff]  ;;  %v6354_v23 = vld [vmem:[%s11745_s3 + $0x298] sm:$0xff] }
 0x2a7   : > { %8148 = vmatprep.subr.bf16.mxu1 %v8147_v14 }
 0x2aa   : > { %8150 = vmatpush3.bf16.msra.mxu1 %v8147_v14  ;;  %v8187_v14 = vpack.c.bf16 %v6332_v12, %v6331_v22  ;;  %v6356_v22 = vld [vmem:[%s11745_s3 + $0x2a8] sm:$0xff] }
 0x2ab   : > { %8152 = vmatprep.subr.bf16.mxu1 %v8151_v24 }
 0x2ae   : > { %8154 = vmatpush3.bf16.msra.mxu1 %v8151_v24  ;;  %v8195_v24 = vpack.c.bf16 %v6336_v52, %v6335_v48  ;;  %v11500_v48 = vld [vmem:[#allocation3 + $0x61] sm:$0xff] }
 0x2af   : > { %8156 = vmatprep.subr.bf16.mxu1 %v8155_v5 }
 0x2b2   : > { %8158 = vmatpush3.bf16.msra.mxu1 %v8155_v5  ;;  %v8199_v5 = vpack.c.bf16 %v6338_v61, %v6337_v57  ;;  %v6361_v57 = vld [vmem:[%s11745_s3 + $0x2d0] sm:$0xff]  ;;  %v6362_v61 = vld [vmem:[%s11745_s3 + $0x2d8] sm:$0xff] }
 0x2b3   : > { %8160 = vmatprep.subr.bf16.mxu1 %v8159_v44 }
 0x2b6   : > { %8162 = vmatpush3.bf16.msra.mxu1 %v8159_v44  ;;  %v8203_v44 = vpack.c.bf16 %v6340_v6, %v6339_v42  ;;  %v6363_v42 = vld [vmem:[%s11745_s3 + $0x2e0] sm:$0xff]  ;;  %v6364_v6 = vld [vmem:[%s11745_s3 + $0x2e8] sm:$0xff] }
 0x2b7   : > { %8164 = vmatprep.subr.bf16.mxu1 %v8163_v21 }
 0x2b9   : > { %7504 = vmatmul.mubr.f32.vlgmr.msra.gmra.mrb[0].mxu1 %v4921_v54 }
 0x2ba   : > { %7506 = vmatprep.mubr.f32.mxu1 %v11344_v53  ;;  %8166 = vmatpush3.bf16.msra.mxu1 %v8163_v21  ;;  %v6344_v21 = vld [vmem:[%s11745_s3 + $0x248] sm:$0xff] }
 0x2bb   : > { %8168 = vmatprep.subr.bf16.mxu1 %v8167_v62 }
 0x2bd   : > { %7507 = vmatmul.mubr.f32.gmra.mrb[2].mxu1 %v11347_v45 }
 0x2be   : > { %7509 = vmatprep.mubr.f32.mxu1 %v11356_v8  ;;  %8170 = vmatpush3.bf16.msra.mxu1 %v8167_v62  ;;  %v6346_v62 = vld [vmem:[%s11745_s3 + $0x258] sm:$0xff] }
 0x2bf   : > { %8172 = vmatprep.subr.bf16.mxu1 %v8171_v28  ;;  %v8215_v54 = vpack.c.bf16 %v6346_v62, %v6345_v33  ;;  %v6370_v33 = vld [vmem:[%s11745_s3 + $0x318] sm:$0xff] }
 0x2c1   : > { %7510 = vmatmul.mubr.f32.gmra.mrb[4].mxu1 %v11359_v60 }
 0x2c2   : > { %7512 = vmatprep.mubr.f32.mxu1 %v11368_v26  ;;  %8174 = vmatpush3.bf16.msra.mxu1 %v8171_v28  ;;  %v8219_v28 = vpack.c.bf16 %v6348_v0, %v6347_v36  ;;  %v6372_v36 = vld [vmem:[%s11745_s3 + $0x328] sm:$0xff] }
 0x2c3   : > { %8176 = vmatprep.subr.bf16.mxu1 %v8175_v46 }
 0x2c5   : > { %7513 = vmatmul.mubr.f32.gmra.mrb[6].mxu1 %v11371_v43 }
 0x2c6   : > { %8178 = vmatpush3.bf16.msra.mxu1 %v8175_v46  ;;  %8600 = vmatprep.mubr.msk.f32.mxu1 %vm10960_vm9, %v10964_v13  ;;  %v8191_v13 = vpack.c.bf16 %v6334_v55, %v6333_v31  ;;  %v6351_v46 = vld [vmem:[%s11745_s3 + $0x280] sm:$0xff]  ;;  %v6358_v31 = vld [vmem:[%s11745_s3 + $0x2b8] sm:$0xff] }
 0x2c7   : > { %8180 = vmatprep.subr.bf16.mxu1 %v8179_v10  ;;  %v8227_v27 = vpack.c.bf16 %v6352_v63, %v6351_v46  ;;  %v6359_v55 = vld [vmem:[%s11745_s3 + $0x2c0] sm:$0xff] }
 0x2c8   : > { %v11560_v46 = vld [vmem:[#allocation3 + $0x62] sm:$0xff] }
 0x2ca   : > { %8182 = vmatpush3.bf16.msra.mxu1 %v8179_v10  ;;  %v6353_v10 = vld [vmem:[%s11745_s3 + $0x290] sm:$0xff] }
 0x2cb   : > { %8184 = vmatprep.subr.bf16.mxu1 %v8183_v16  ;;  %v8231_v1 = vpack.c.bf16 %v6354_v23, %v6353_v10  ;;  %v6377_v10 = vld [vmem:[%s11745_s3 + $0x350] sm:$0xff]  ;;  %v6378_v23 = vld [vmem:[%s11745_s3 + $0x358] sm:$0xff] }
 0x2ce   : > { %8186 = vmatpush3.bf16.msra.mxu1 %v8183_v16  ;;  %v6355_v16 = vld [vmem:[%s11745_s3 + $0x2a0] sm:$0xff] }
 0x2cf   : > { %8188 = vmatprep.subr.bf16.mxu1 %v8187_v14  ;;  %v8235_v12 = vpack.c.bf16 %v6356_v22, %v6355_v16  ;;  %v6379_v16 = vld [vmem:[%s11745_s3 + $0x360] sm:$0xff]  ;;  %v6380_v22 = vld [vmem:[%s11745_s3 + $0x368] sm:$0xff] }
 0x2d2   : > { %8190 = vmatpush3.bf16.msra.mxu1 %v8187_v14  ;;  %v6357_v14 = vld [vmem:[%s11745_s3 + $0x2b0] sm:$0xff] }
 0x2d3   : > { %8192 = vmatprep.subr.bf16.mxu1 %v8191_v13 }
 0x2d6   : > { %8194 = vmatpush3.bf16.msra.mxu1 %v8191_v13  ;;  %v6360_v13 = vld [vmem:[%s11745_s3 + $0x2c8] sm:$0xff] }
 0x2d7   : > { %8196 = vmatprep.subr.bf16.mxu1 %v8195_v24  ;;  %v8243_v52 = vpack.c.bf16 %v6360_v13, %v6359_v55  ;;  %v6385_v13 = vld [vmem:[%s11745_s3 + $0x390] sm:$0xff] }
 0x2d9   : > { %8601 = vmatmul.mubr.msk.f32.vlgmr.msra.gmra.mrb[0].mxu1 %vm10949_vm8, %v10992_v4  ;;  %v6343_v4 = vld [vmem:[%s11745_s3 + $0x240] sm:$0xff] }
 0x2da   : > { %8602 = vmatprep.mubr.msk.f32.mxu1 %vm11022_vm11, %v11027_v17  ;;  %8198 = vmatpush3.bf16.msra.mxu1 %v8195_v24  ;;  %v8211_v11 = vpack.c.bf16 %v6344_v21, %v6343_v4  ;;  %v11503_v24 = vld [vmem:[#allocation3 + $0x69] sm:$0xff] }
 0x2db   : > { %8200 = vmatprep.subr.bf16.mxu1 %v8199_v5  ;;  %v6368_v4 = vld [vmem:[%s11745_s3 + $0x308] sm:$0xff] }
 0x2dd   : > { %8603 = vmatmul.mubr.msk.f32.gmra.mrb[2].mxu1 %vm11013_vm5, %v11071_v2 }
 0x2de   : > { %8604 = vmatprep.mubr.msk.f32.mxu1 %vm11088_vm15, %v11094_v3  ;;  %8202 = vmatpush3.bf16.msra.mxu1 %v8199_v5  ;;  %v8247_v5 = vpack.c.bf16 %v6362_v61, %v6361_v57  ;;  %v6387_v61 = vld [vmem:[%s11745_s3 + $0x3a0] sm:$0xff] }
 0x2df   : > { %8204 = vmatprep.subr.bf16.mxu1 %v8203_v44 }
 0x2e1   : > { %8605 = vmatmul.mubr.msk.f32.gmra.mrb[4].mxu1 %vm11058_vm13, %v11159_v9 }
 0x2e2   : > { %8606 = vmatprep.mubr.msk.f32.mxu1 %vm11150_vm7, %v11157_v32  ;;  %8206 = vmatpush3.bf16.msra.mxu1 %v8203_v44  ;;  %v8251_v44 = vpack.c.bf16 %v6364_v6, %v6363_v42  ;;  %v6389_v6 = vld [vmem:[%s11745_s3 + $0x3b0] sm:$0xff] }
 0x2e3   : > { %8208 = vmatprep.subr.bf16.mxu1 %v8207_v41 }
 0x2e5   : > { %8607 = vmatmul.mubr.msk.f32.gmra.mrb[6].mxu1 %vm11104_vm14, %v11222_v50 }
 0x2e6   : > { %8210 = vmatpush3.bf16.msra.mxu1 %v8207_v41  ;;  %7591 = vmatprep.mubr.f32.mxu1 %v11077_v37  ;;  %v6350_v37 = vld [vmem:[%s11745_s3 + $0x278] sm:$0xff]  ;;  %v6367_v41 = vld [vmem:[%s11745_s3 + $0x300] sm:$0xff] }
 0x2e7   : > { %8212 = vmatprep.subr.bf16.mxu1 %v8211_v11  ;;  %v8223_v39 = vpack.c.bf16 %v6350_v37, %v6349_v30  ;;  %v8259_v21 = vpack.c.bf16 %v6368_v4, %v6367_v41  ;;  %v6374_v30 = vld [vmem:[%s11745_s3 + $0x338] sm:$0xff]  ;;  %v6375_v37 = vld [vmem:[%s11745_s3 + $0x340] sm:$0xff] }
 0x2e8   : > { %v6403_v4 = vld [vmem:[%s11745_s3 + $0x420] sm:$0xff] }
 0x2ea   : > { %8214 = vmatpush3.bf16.msra.mxu1 %v8211_v11  ;;  %v6369_v11 = vld [vmem:[%s11745_s3 + $0x310] sm:$0xff] }
 0x2eb   : > { %8216 = vmatprep.subr.bf16.mxu1 %v8215_v54  ;;  %v8263_v62 = vpack.c.bf16 %v6370_v33, %v6369_v11  ;;  %v6405_v33 = vld [vmem:[%s11745_s3 + $0x430] sm:$0xff] }
 0x2ee   : > { %8218 = vmatpush3.bf16.msra.mxu1 %v8215_v54  ;;  %v6371_v54 = vld [vmem:[%s11745_s3 + $0x320] sm:$0xff] }
 0x2ef   : > { %8220 = vmatprep.subr.bf16.mxu1 %v8219_v28  ;;  %v8267_v0 = vpack.c.bf16 %v6372_v36, %v6371_v54  ;;  %v6408_v54 = vld [vmem:[%s11745_s3 + $0x448] sm:$0xff]  ;;  %v5618_v36 = vld [vmem:[#allocation3 + $0x79] sm:$0xff] }
 0x2f2   : > { %8222 = vmatpush3.bf16.msra.mxu1 %v8219_v28  ;;  %v6373_v28 = vld [vmem:[%s11745_s3 + $0x330] sm:$0xff] }
 0x2f3   : > { %8224 = vmatprep.subr.bf16.mxu1 %v8223_v39 }
 0x2f6   : > { %8226 = vmatpush3.bf16.msra.mxu1 %v8223_v39  ;;  %v6376_v39 = vld [vmem:[%s11745_s3 + $0x348] sm:$0xff] }
 0x2f7   : > { %8228 = vmatprep.subr.bf16.mxu1 %v8227_v27  ;;  %v8275_v63 = vpack.c.bf16 %v6376_v39, %v6375_v37  ;;  %v6413_v39 = vld [vmem:[%s11745_s3 + $0x470] sm:$0xff] }
 0x2f9   : > { %7592 = vmatmul.mubr.f32.vlgmr.msra.gmra.mrb[0].mxu1 %v11079_v47  ;;  %v8239_v47 = vpack.c.bf16 %v6358_v31, %v6357_v14  ;;  %v6381_v14 = vld [vmem:[%s11745_s3 + $0x370] sm:$0xff]  ;;  %v6383_v31 = vld [vmem:[%s11745_s3 + $0x380] sm:$0xff] }
 0x2fa   : > { %7594 = vmatprep.mubr.f32.mxu1 %v11182_v58  ;;  %8230 = vmatpush3.bf16.msra.mxu1 %v8227_v27  ;;  %v11563_v27 = vld [vmem:[#allocation3 + $0x6a] sm:$0xff] }
 0x2fb   : > { %8232 = vmatprep.subr.bf16.mxu1 %v8231_v1 }
 0x2fd   : > { %7595 = vmatmul.mubr.f32.gmra.mrb[2].mxu1 %v11184_v51 }
 0x2fe   : > { %7597 = vmatprep.mubr.f32.mxu1 %v11218_v59  ;;  %8234 = vmatpush3.bf16.msra.mxu1 %v8231_v1  ;;  %v8279_v1 = vpack.c.bf16 %v6378_v23, %v6377_v10  ;;  %v5756_v10 = vld [vmem:[#allocation3 + $0x7a] sm:$0xff]  ;;  %v5757_v23 = vld [vmem:[#allocation3 + $0x82] sm:$0xff] }
 0x2ff   : > { %8236 = vmatprep.subr.bf16.mxu1 %v8235_v12 }
 0x301   : > { %7598 = vmatmul.mubr.f32.gmra.mrb[4].mxu1 %v11220_v18 }
 0x302   : > { %7600 = vmatprep.mubr.f32.mxu1 %v11500_v48  ;;  %8238 = vmatpush3.bf16.msra.mxu1 %v8235_v12  ;;  %v8283_v12 = vpack.c.bf16 %v6380_v22, %v6379_v16 }
 0x303   : > { %8240 = vmatprep.subr.bf16.mxu1 %v8239_v47 }
 0x305   : > { %7601 = vmatmul.mubr.f32.gmra.mrb[6].mxu1 %v11503_v24 }
 0x306   : > { %8242 = vmatpush3.bf16.msra.mxu1 %v8239_v47  ;;  %7635 = vmatprep.mubr.f32.mxu1 %v11344_v53  ;;  %v6366_v53 = vld [vmem:[%s11745_s3 + $0x2f8] sm:$0xff]  ;;  %v6384_v47 = vld [vmem:[%s11745_s3 + $0x388] sm:$0xff] }
 0x307   : > { %8244 = vmatprep.subr.bf16.mxu1 %v8243_v52  ;;  %v8255_v29 = vpack.c.bf16 %v6366_v53, %v6365_v7  ;;  %v8291_v55 = vpack.c.bf16 %v6384_v47, %v6383_v31  ;;  %v6401_v53 = vld [vmem:[%s11745_s3 + $0x410] sm:$0xff] }
 0x30a   : > { %8246 = vmatpush3.bf16.msra.mxu1 %v8243_v52  ;;  %v6386_v52 = vld [vmem:[%s11745_s3 + $0x398] sm:$0xff] }
 0x30b   : > { %8248 = vmatprep.subr.bf16.mxu1 %v8247_v5  ;;  %v8295_v57 = vpack.c.bf16 %v6386_v52, %v6385_v13 }
 0x30e   : > { %8250 = vmatpush3.bf16.msra.mxu1 %v8247_v5  ;;  %v6388_v5 = vld [vmem:[%s11745_s3 + $0x3a8] sm:$0xff] }
 0x30f   : > { %8252 = vmatprep.subr.bf16.mxu1 %v8251_v44  ;;  %v8299_v42 = vpack.c.bf16 %v6388_v5, %v6387_v61 }
 0x312   : > { %8254 = vmatpush3.bf16.msra.mxu1 %v8251_v44  ;;  %v6390_v44 = vld [vmem:[%s11745_s3 + $0x3b8] sm:$0xff] }
 0x313   : > { %8256 = vmatprep.subr.bf16.mxu1 %v8255_v29  ;;  %v8303_v19 = vpack.c.bf16 %v6390_v44, %v6389_v6 }
 0x316   : > { %8258 = vmatpush3.bf16.msra.mxu1 %v8255_v29  ;;  %v6402_v29 = vld [vmem:[%s11745_s3 + $0x418] sm:$0xff] }
 0x317   : > { %8260 = vmatprep.subr.bf16.mxu1 %v8259_v21  ;;  %v8327_v41 = vpack.c.bf16 %v6402_v29, %v6401_v53 }
 0x319   : > { %7636 = vmatmul.mubr.f32.vlgmr.msra.gmra.mrb[0].mxu1 %v11347_v45  ;;  %v8271_v45 = vpack.c.bf16 %v6374_v30, %v6373_v28  ;;  %v6410_v28 = vld [vmem:[%s11745_s3 + $0x458] sm:$0xff]  ;;  %v6411_v30 = vld [vmem:[%s11745_s3 + $0x460] sm:$0xff] }
 0x31a   : > { %7638 = vmatprep.mubr.f32.mxu1 %v11356_v8  ;;  %8262 = vmatpush3.bf16.msra.mxu1 %v8259_v21  ;;  %v6404_v21 = vld [vmem:[%s11745_s3 + $0x428] sm:$0xff] }
 0x31b   : > { %8264 = vmatprep.subr.bf16.mxu1 %v8263_v62  ;;  %v8331_v11 = vpack.c.bf16 %v6404_v21, %v6403_v4 }
 0x31d   : > { %7639 = vmatmul.mubr.f32.gmra.mrb[2].mxu1 %v11359_v60 }
 0x31e   : > { %7641 = vmatprep.mubr.f32.mxu1 %v11368_v26  ;;  %8266 = vmatpush3.bf16.msra.mxu1 %v8263_v62  ;;  %v6406_v62 = vld [vmem:[%s11745_s3 + $0x438] sm:$0xff] }
 0x31f   : > { %8268 = vmatprep.subr.bf16.mxu1 %v8267_v0 }
 0x321   : > { %7642 = vmatmul.mubr.f32.gmra.mrb[4].mxu1 %v11371_v43 }
 0x322   : > { %7644 = vmatprep.mubr.f32.mxu1 %v11560_v46  ;;  %8270 = vmatpush3.bf16.msra.mxu1 %v8267_v0  ;;  %v5619_v0 = vld [vmem:[#allocation3 + $0x81] sm:$0xff] }
 0x323   : > { %8272 = vmatprep.subr.bf16.mxu1 %v8271_v45 }
 0x325   : > { %7645 = vmatmul.mubr.f32.gmra.mrb[6].mxu1 %v11563_v27 }
 0x326   : > { %8274 = vmatpush3.bf16.msra.mxu1 %v8271_v45  ;;  %8608 = vmatprep.mubr.msk.f32.mxu1 %vm11022_vm11, %v11027_v17  ;;  %v8287_v17 = vpack.c.bf16 %v6382_v35, %v6381_v14  ;;  %v6412_v45 = vld [vmem:[%s11745_s3 + $0x468] sm:$0xff] }
 0x327   : > { %8276 = vmatprep.subr.bf16.mxu1 %v8275_v63  ;;  %v8347_v37 = vpack.c.bf16 %v6412_v45, %v6411_v30 }
 0x32a   : > { %8278 = vmatpush3.bf16.msra.mxu1 %v8275_v63 }
 0x32b   : > { %8280 = vmatprep.subr.bf16.mxu1 %v8279_v1 }
 0x32e   : > { %8282 = vmatpush3.bf16.msra.mxu1 %v8279_v1  ;;  %v6415_v1 = vld [vmem:[%s11746_s4] ss:$0 sm:$0xff] }
 0x32f   : > { %8284 = vmatprep.subr.bf16.mxu1 %v8283_v12 }
 0x332   : > { %8286 = vmatpush3.bf16.msra.mxu1 %v8283_v12 }
 0x333   : > { %8288 = vmatprep.subr.bf16.mxu1 %v8287_v17 }
 0x336   : > { %8290 = vmatpush3.bf16.msra.mxu1 %v8287_v17 }
 0x337   : > { %8292 = vmatprep.subr.bf16.mxu1 %v8291_v55 }
 0x339   : > { %8609 = vmatmul.mubr.msk.f32.vlgmr.msra.gmra.mrb[0].mxu1 %vm11013_vm5, %v11071_v2  ;;  %v6391_v2 = vld [vmem:[%s11745_s3 + $0x3c0] sm:$0xff] }
 0x33a   : > { %8610 = vmatprep.mubr.msk.f32.mxu1 %vm11088_vm15, %v11094_v3  ;;  %8294 = vmatpush3.bf16.msra.mxu1 %v8291_v55  ;;  %v8307_v56 = vpack.c.bf16 %v6392_v15, %v6391_v2  ;;  %v6393_v3 = vld [vmem:[%s11745_s3 + $0x3d0] sm:$0xff] }
 0x33b   : > { %8296 = vmatprep.subr.bf16.mxu1 %v8295_v57  ;;  %v8311_v49 = vpack.c.bf16 %v6394_v25, %v6393_v3 }
 0x33d   : > { %8611 = vmatmul.mubr.msk.f32.gmra.mrb[2].mxu1 %vm11058_vm13, %v11159_v9  ;;  %v6396_v9 = vld [vmem:[%s11745_s3 + $0x3e8] sm:$0xff] }
 0x33e   : > { %8612 = vmatprep.mubr.msk.f32.mxu1 %vm11150_vm7, %v11157_v32  ;;  %8298 = vmatpush3.bf16.msra.mxu1 %v8295_v57  ;;  %v6395_v32 = vld [vmem:[%s11745_s3 + $0x3e0] sm:$0xff] }
 0x33f   : > { %8300 = vmatprep.subr.bf16.mxu1 %v8299_v42 }
 0x341   : > { %8613 = vmatmul.mubr.msk.f32.gmra.mrb[4].mxu1 %vm11104_vm14, %v11222_v50  ;;  %v8315_v50 = vpack.c.bf16 %v6396_v9, %v6395_v32 }
 0x342   : > { %8614 = vmatprep.mubr.msk.f32.mxu1 %vm11247_vm6, %v11257_v40  ;;  %8302 = vmatpush3.bf16.msra.mxu1 %v8299_v42  ;;  %v6399_v40 = vld [vmem:[%s11745_s3 + $0x400] sm:$0xff] }
 0x343   : > { %8304 = vmatprep.subr.bf16.mxu1 %v8303_v19 }
 0x345   : > { %8615 = vmatmul.mubr.msk.f32.gmra.mrb[6].mxu1 %vm11193_vm2, %v11264_v38  ;;  %v6400_v38 = vld [vmem:[%s11745_s3 + $0x408] sm:$0xff] }
 0x346   : > { %8306 = vmatpush3.bf16.msra.mxu1 %v8303_v19  ;;  %7723 = vmatprep.mubr.f32.mxu1 %v11182_v58  ;;  %v6398_v58 = vld [vmem:[%s11745_s3 + $0x3f8] sm:$0xff]  ;;  %v8323_v7 = vpack.c.bf16 %v6400_v38, %v6399_v40 }
 0x347   : > { %8308 = vmatprep.subr.bf16.mxu1 %v8307_v56  ;;  %v8319_v20 = vpack.c.bf16 %v6398_v58, %v6397_v34 }
 0x34a   : > { %8310 = vmatpush3.bf16.msra.mxu1 %v8307_v56 }
 0x34b   : > { %8312 = vmatprep.subr.bf16.mxu1 %v8311_v49 }
 0x34e   : > { %8314 = vmatpush3.bf16.msra.mxu1 %v8311_v49 }
 0x34f   : > { %8316 = vmatprep.subr.bf16.mxu1 %v8315_v50 }
 0x352   : > { %8318 = vmatpush3.bf16.msra.mxu1 %v8315_v50 }
 0x353   : > { %8320 = vmatprep.subr.bf16.mxu1 %v8319_v20 }
 0x356   : > { %8322 = vmatpush3.bf16.msra.mxu1 %v8319_v20 }
 0x357   : > { %8324 = vmatprep.subr.bf16.mxu1 %v8323_v7 }
 0x359   : > { %7724 = vmatmul.mubr.f32.vlgmr.msra.gmra.mrb[0].mxu1 %v11184_v51  ;;  %v8335_v51 = vpack.c.bf16 %v6406_v62, %v6405_v33 }
 0x35a   : > { %7726 = vmatprep.mubr.f32.mxu1 %v11218_v59  ;;  %8326 = vmatpush3.bf16.msra.mxu1 %v8323_v7  ;;  %v6407_v59 = vld [vmem:[%s11745_s3 + $0x440] sm:$0xff] }
 0x35b   : > { %8328 = vmatprep.subr.bf16.mxu1 %v8327_v41 }
 0x35d   : > { %7727 = vmatmul.mubr.f32.gmra.mrb[2].mxu1 %v11220_v18  ;;  %v8339_v18 = vpack.c.bf16 %v6408_v54, %v6407_v59 }
 0x35e   : > { %7729 = vmatprep.mubr.f32.mxu1 %v11500_v48  ;;  %8330 = vmatpush3.bf16.msra.mxu1 %v8327_v41  ;;  %v6409_v48 = vld [vmem:[%s11745_s3 + $0x450] sm:$0xff] }
 0x35f   : > { %8332 = vmatprep.subr.bf16.mxu1 %v8331_v11 }
 0x361   : > { %7730 = vmatmul.mubr.f32.gmra.mrb[4].mxu1 %v11503_v24  ;;  %v8343_v24 = vpack.c.bf16 %v6410_v28, %v6409_v48 }
 0x362   : > { %7732 = vmatprep.mubr.f32.mxu1 %v5618_v36  ;;  %8334 = vmatpush3.bf16.msra.mxu1 %v8331_v11 }
 0x363   : > { %8336 = vmatprep.subr.bf16.mxu1 %v8335_v51 }
 0x365   : > { %7733 = vmatmul.mubr.f32.gmra.mrb[6].mxu1 %v5619_v0 }
 0x366   : > { %8338 = vmatpush3.bf16.msra.mxu1 %v8335_v51  ;;  %7767 = vmatprep.mubr.f32.mxu1 %v11356_v8  ;;  %v6414_v8 = vld [vmem:[%s11745_s3 + $0x478] sm:$0xff] }
 0x367   : > { %8340 = vmatprep.subr.bf16.mxu1 %v8339_v18  ;;  %v8351_v63 = vpack.c.bf16 %v6414_v8, %v6413_v39 }
 0x36a   : > { %8342 = vmatpush3.bf16.msra.mxu1 %v8339_v18 }
 0x36b   : > { %8344 = vmatprep.subr.bf16.mxu1 %v8343_v24 }
 0x36e   : > { %8346 = vmatpush3.bf16.msra.mxu1 %v8343_v24 }
 0x36f   : > { %8348 = vmatprep.subr.bf16.mxu1 %v8347_v37 }
 0x372   : > { %8350 = vmatpush3.bf16.msra.mxu1 %v8347_v37 }
 0x373   : > { %8352 = vmatprep.subr.bf16.mxu1 %v8351_v63 }
 0x376   : > { %8354 = vmatpush3.bf16.msra.mxu1 %v8351_v63 }
 0x379   : > { %7768 = vmatmul.mubr.f32.vlgmr.msra.gmra.mrb[0].mxu1 %v11359_v60 }
 0x37a   : > { %7770 = vmatprep.mubr.f32.mxu1 %v11368_v26 }
 0x37d   : > { %7771 = vmatmul.mubr.f32.gmra.mrb[2].mxu1 %v11371_v43 }
 0x37e   : > { %7773 = vmatprep.mubr.f32.mxu1 %v11560_v46 }
 0x381   : > { %7774 = vmatmul.mubr.f32.gmra.mrb[4].mxu1 %v11563_v27 }
 0x382   : > { %7776 = vmatprep.mubr.f32.mxu1 %v5756_v10 }
 0x385   : > { %7777 = vmatmul.mubr.f32.gmra.mrb[6].mxu1 %v5757_v23 }
 0x44c   : > { %v7769_v16 = vpop.f32.mrb[0].mxu1 }
 0x44d   : > { %v5896_v60 = vadd.f32 %v7769_v16, %v6415_v1  ;;  %v5841_v22 = vpop.f32.mrb[1].mxu1 }
 0x44e   : > { %v5895_v26 = vadd.f32 %v6415_v1, %v5841_v22 }
 0x44f   : > { %vm5904_vm12 = vcmp.ge.f32.partialorder %v5896_v60, 0.0  ;;  %v5912_v43 = vmul.f32 0.125, %v5896_v60 }
 0x450   : > { %vm5903_vm1 = vcmp.ge.f32.partialorder %v5895_v26, 0.0  ;;  %v5911_v46 = vmul.f32 0.125, %v5895_v26  ;;  %v7772_v12 = vpop.f32.mrb[2].mxu1 }
 0x451   : > { %v5920_v27 = vsel %vm5904_vm12, %v5896_v60, %v5912_v43  ;;  %v5898_v14 = vadd.f32 %v7772_v12, %v6415_v1  ;;  %v5851_v35 = vpop.f32.mrb[3].mxu1 }
 0x452   : > { %5928 = vst [vmem:[%s8736_s13 + $0x8] sm:$0xff] %v5920_v27  ;;  %v5919_v17 = vsel %vm5903_vm1, %v5895_v26, %v5911_v46  ;;  %v5897_v31 = vadd.f32 %v6415_v1, %v5851_v35 }
 0x453   : > { %5927 = vst [vmem:[%s8736_s13] sm:$0xff] %v5919_v17  ;;  %vm5906_vm4 = vcmp.ge.f32.partialorder %v5898_v14, 0.0  ;;  %v5914_v47 = vmul.f32 0.125, %v5898_v14 }
 0x454   : > { %vm5905_vm8 = vcmp.ge.f32.partialorder %v5897_v31, 0.0  ;;  %v5913_v55 = vmul.f32 0.125, %v5897_v31  ;;  %v7775_v13 = vpop.f32.mrb[4].mxu1 }
 0x455   : > { %v5922_v52 = vsel %vm5906_vm4, %v5898_v14, %v5914_v47  ;;  %v5900_v57 = vadd.f32 %v7775_v13, %v6415_v1  ;;  %v5861_v61 = vpop.f32.mrb[5].mxu1 }
 0x456   : > { %5930 = vst [vmem:[%s8736_s13 + $0x18] sm:$0xff] %v5922_v52  ;;  %v5921_v5 = vsel %vm5905_vm8, %v5897_v31, %v5913_v55  ;;  %v5899_v42 = vadd.f32 %v6415_v1, %v5861_v61 }
 0x457   : > { %5929 = vst [vmem:[%s8736_s13 + $0x10] sm:$0xff] %v5921_v5  ;;  %vm5908_vm9 = vcmp.ge.f32.partialorder %v5900_v57, 0.0  ;;  %v5916_v6 = vmul.f32 0.125, %v5900_v57 }
 0x458   : > { %vm5907_vm5 = vcmp.ge.f32.partialorder %v5899_v42, 0.0  ;;  %v5915_v44 = vmul.f32 0.125, %v5899_v42  ;;  %v7778_v19 = vpop.f32.mrb[6].mxu1 }
 0x459   : > { %v5924_v2 = vsel %vm5908_vm9, %v5900_v57, %v5916_v6  ;;  %v5902_v15 = vadd.f32 %v7778_v19, %v6415_v1  ;;  %v5871_v56 = vpop.f32.mrb[7].mxu1 }
 0x45a   : > { %5932 = vst [vmem:[%s8736_s13 + $0x28] sm:$0xff] %v5924_v2  ;;  %v5923_v3 = vsel %vm5907_vm5, %v5899_v42, %v5915_v44  ;;  %v5901_v25 = vadd.f32 %v6415_v1, %v5871_v56 }
 0x45b   : > { %5931 = vst [vmem:[%s8736_s13 + $0x20] sm:$0xff] %v5923_v3  ;;  %vm5910_vm11 = vcmp.ge.f32.partialorder %v5902_v15, 0.0  ;;  %v5918_v49 = vmul.f32 0.125, %v5902_v15 }
 0x45c   : > { %vm5909_vm13 = vcmp.ge.f32.partialorder %v5901_v25, 0.0  ;;  %v5917_v32 = vmul.f32 0.125, %v5901_v25 }
 0x45d   : > { %v5926_v9 = vsel %vm5910_vm11, %v5902_v15, %v5918_v49 }
 0x45e   : > { %5934 = vst [vmem:[%s8736_s13 + $0x38] sm:$0xff] %v5926_v9  ;;  %v5925_v50 = vsel %vm5909_vm13, %v5901_v25, %v5917_v32 }
 0x45f   : > { %5933 = vst [vmem:[%s8736_s13 + $0x30] sm:$0xff] %v5925_v50 }
 0x460 PF: > { %s15_s22 = sadd.s32 1, %s8656_s22   ;;  %s12174_s18 = smov %s8648_s20 }
 0x461   : > { %p12_p11 = scmp.ge.s32.totalorder %s15_s22, 10   ;;  %s12175_s19 = smov %s8652_s21 }
 0x462   : > { %s12176_s20 = smov %s12179_s23  ;;  %s12177_s21 = smov %s12183_s24 }
 0x463   :  { %14 = sbr.rel (!%p12_p11) target bundleno = 3 (0x3), region = 198 }
 0x46a   :  { %5967 = vsyncmov [#allocation4] }
 0x46d   :  { %s5968_s13 = vpop.sfrf %5967 }
 0x46e   :  { %p6418_p12 = scmp.ne.s32.totalorder %s5968_s13, 0 }
 0x470   :  { %5972 = shalt.err (%p6418_p12)  }
 0x471   :  { %5974 = vsyncmov [#allocation4 + $0x1] }
 0x474   :  { %s5975_s30 = vpop.sfrf %5974 }
 0x475   :  { %p6419_p13 = scmp.ne.s32.totalorder %s5975_s30, 0 }
 0x477   :  { %5979 = shalt.err (%p6419_p13)  }

</bundles_post_ra>
